<compile_context>
chip_gen: v5e
topology: v5e:2x2
jax: 0.10.0
libtpu: 0.0.40
codegen_flags: <defaults>
</compile_context>

<pallas_src>
import functools

import numpy as np
import jax
import jax.numpy as jnp
from jax.experimental import pallas as pl
from jax.experimental.pallas import tpu as pltpu

_EPS = 1e-5
_LEAKY_SLOPE = 0.05


# ----------------------------------------------------------------------------
# The single fused kernel: 6 x [ separable (de)conv -> BN (batch stats) -> act ]
# ----------------------------------------------------------------------------
def _g21_kernel(cfgs, n_p, x_ref, *refs):
    o_ref = refs[-1]
    nl = len(cfgs)
    rm_refs = refs[:2 * nl]
    p_refs = refs[2 * nl:2 * nl + n_p]
    gb_refs = refs[2 * nl + n_p:-1]

    a = x_ref[...]                       # (N*H, W*C) image-major activations, f32
    gb_i = 0
    for li, cfg in enumerate(cfgs):
        r_ref = rm_refs[2 * li]          # (k, N*Ho, N*Hin)      0/1 H-axis selection
        m_ref = rm_refs[2 * li + 1]      # (k, Win*Cin, Wo*Cout) weights + W-axis shift
        # (De)convolution as k pairs of MXU matmuls: Y = sum_i R_i @ (A @ M_i).
        y = None
        for i in range(cfg["k"]):
            z = jnp.dot(a, m_ref[i], preferred_element_type=jnp.float32)
            z = jnp.dot(r_ref[i], z, preferred_element_type=jnp.float32)
            y = z if y is None else y + z

        if cfg["bn"]:
            # Training-mode BatchNorm2d: batch statistics, biased variance, eps=1e-5.
            # One-pass sum / sum-of-squares; per-channel aggregation over the W axis
            # (columns are (w, c)) runs on the MXU via the constant 0/1 matrix P, which
            # also broadcasts the per-channel result back across the W positions.
            p_mat = p_refs[cfg["p_idx"]][...]
            gb = gb_refs[gb_i][...]                         # (2, Wo*C): [gamma; beta]
            gb_i += 1
            inv_cnt = 1.0 / cfg["count"]
            col_s = jnp.sum(y, axis=0, keepdims=True)
            col_ss = jnp.sum(y * y, axis=0, keepdims=True)
            mean = jnp.dot(col_s, p_mat, preferred_element_type=jnp.float32) * inv_cnt
            ex2 = jnp.dot(col_ss, p_mat, preferred_element_type=jnp.float32) * inv_cnt
            var = jnp.maximum(ex2 - mean * mean, 0.0)
            scale = gb[0:1, :] * jax.lax.rsqrt(var + _EPS)  # EUP rsqrt
            shift = gb[1:2, :] - mean * scale
            y = y * scale + shift

        if cfg["act"] == "leaky":
            y = jnp.maximum(y, _LEAKY_SLOPE * y)            # leaky_relu(0.05)
        else:
            y = jnp.tanh(y)
        a = y

    o_ref[...] = a.astype(o_ref.dtype)


# ----------------------------------------------------------------------------
# One-time parameter preparation: PyTorch-layout weights -> (R_i, M_i, P, gamma/beta)
# ----------------------------------------------------------------------------
def _conv_rm(w_torch, n, hin, win, stride, pad):
    """Conv2d(bias=False) -> per-kernel-row (R_i, M_i) separable matmul operands."""
    w = np.asarray(w_torch, dtype=np.float32)          # (Cout, Cin, kh, kw)
    cout, cin, k, _ = w.shape
    ho = (hin + 2 * pad - k) // stride + 1
    wo = (win + 2 * pad - k) // stride + 1
    r = np.zeros((k, n * ho, n * hin), np.float32)
    m = np.zeros((k, win * cin, wo * cout), np.float32)
    for i in range(k):
        for b in range(n):
            for oh in range(ho):
                ih = oh * stride + i - pad
                if 0 <= ih < hin:
                    r[i, b * ho + oh, b * hin + ih] = 1.0
        for ow in range(wo):
            for j in range(k):
                iw = ow * stride + j - pad
                if 0 <= iw < win:
                    m[i, iw * cin:(iw + 1) * cin, ow * cout:(ow + 1) * cout] = w[:, :, i, j].T
    return r, m, ho, wo, cout


def _deconv_rm(w_torch, n, hin, win, stride, pad):
    """ConvTranspose2d(bias=False) -> (R_i, M_i) via the scatter relation
    (ho = hi*stride - pad + i); no zero-dilated input / structural zeros are built."""
    w = np.asarray(w_torch, dtype=np.float32)          # (Cin, Cout, kh, kw)
    cin, cout, k, _ = w.shape
    ho = (hin - 1) * stride - 2 * pad + k
    wo = (win - 1) * stride - 2 * pad + k
    r = np.zeros((k, n * ho, n * hin), np.float32)
    m = np.zeros((k, win * cin, wo * cout), np.float32)
    for i in range(k):
        for b in range(n):
            for ih in range(hin):
                oh = ih * stride - pad + i
                if 0 <= oh < ho:
                    r[i, b * ho + oh, b * hin + ih] = 1.0
        for iw in range(win):
            for j in range(k):
                ow = iw * stride - pad + j
                if 0 <= ow < wo:
                    m[i, iw * cin:(iw + 1) * cin, ow * cout:(ow + 1) * cout] = w[:, :, i, j]
    return r, m, ho, wo, cout


def _bn_channel_agg(wo, c):
    """P[(w,c1),(w',c2)] = [c1 == c2]: per-channel aggregation + broadcast over W."""
    return np.tile(np.eye(c, dtype=np.float32), (wo, wo))


def init_g21_params(key, conv_dim=16):
    """PyTorch-layout params: Conv2d (Cout,Cin,kh,kw); ConvTranspose2d (Cin,Cout,kh,kw)."""
    ks = jax.random.split(key, 6)

    def w(k, shape):
        return (0.1 * jax.random.normal(k, shape)).astype(jnp.float32)

    def gb(c):
        return jnp.ones((c,), jnp.float32), jnp.zeros((c,), jnp.float32)

    d = conv_dim
    p = {}
    p["w1"] = w(ks[0], (d, 3, 4, 4));         p["g1"], p["b1"] = gb(d)
    p["w2"] = w(ks[1], (d * 2, d, 4, 4));     p["g2"], p["b2"] = gb(d * 2)
    p["w3"] = w(ks[2], (d * 2, d * 2, 3, 3)); p["g3"], p["b3"] = gb(d * 2)
    p["w4"] = w(ks[3], (d * 2, d * 2, 3, 3)); p["g4"], p["b4"] = gb(d * 2)
    p["dw1"] = w(ks[4], (d * 2, d, 4, 4));    p["dg1"], p["db1"] = gb(d)
    p["dw2"] = w(ks[5], (d, 3, 4, 4))         # deconv2: no BN
    return p


def prepare_g21(params, n, hin, win):
    """One-time conversion of PyTorch-layout parameters into the fused-kernel operands."""
    layer_defs = [
        ("conv",   params["w1"],  params["g1"],  params["b1"],  2, 1, True,  "leaky"),
        ("conv",   params["w2"],  params["g2"],  params["b2"],  2, 1, True,  "leaky"),
        ("conv",   params["w3"],  params["g3"],  params["b3"],  1, 1, True,  "leaky"),
        ("conv",   params["w4"],  params["g4"],  params["b4"],  1, 1, True,  "leaky"),
        ("deconv", params["dw1"], params["dg1"], params["db1"], 2, 1, True,  "leaky"),
        ("deconv", params["dw2"], None,          None,          2, 1, False, "tanh"),
    ]
    rm_arrays, p_arrays, gb_arrays, cfgs = [], [], [], []
    p_index = {}
    h, w_sp = hin, win
    c_out = None
    for kind, wt, g, b, stride, pad, bn, act in layer_defs:
        if kind == "conv":
            r, m, ho, wo, cout = _conv_rm(wt, n, h, w_sp, stride, pad)
        else:
            r, m, ho, wo, cout = _deconv_rm(wt, n, h, w_sp, stride, pad)
        rm_arrays += [jnp.asarray(r), jnp.asarray(m)]
        cfg = {"k": int(r.shape[0]), "bn": bn, "act": act,
               "count": float(n * ho * wo), "p_idx": 0}
        if bn:
            key = (wo, cout)
            if key not in p_index:
                p_index[key] = len(p_arrays)
                p_arrays.append(jnp.asarray(_bn_channel_agg(wo, cout)))
            cfg["p_idx"] = p_index[key]
            g_wide = jnp.tile(jnp.asarray(g, jnp.float32).reshape(1, cout), (1, wo))
            b_wide = jnp.tile(jnp.asarray(b, jnp.float32).reshape(1, cout), (1, wo))
            gb_arrays.append(jnp.concatenate([g_wide, b_wide], axis=0))   # (2, Wo*C)
        cfgs.append(cfg)
        h, w_sp, c_out = ho, wo, cout
    arrays = tuple(rm_arrays) + tuple(p_arrays) + tuple(gb_arrays)
    meta = {"n": n, "h_out": h, "w_out": w_sp, "c_out": c_out, "n_p": len(p_arrays)}
    return arrays, tuple(cfgs), meta


# ----------------------------------------------------------------------------
# Forward wrapper (one pallas_call; only layout plumbing stays in XLA)
# ----------------------------------------------------------------------------
def _full_block(shape):
    if len(shape) == 2:
        return pl.BlockSpec(shape, lambda i: (0, 0))
    return pl.BlockSpec(shape, lambda i: (0, 0, 0))


def make_g21_forward(cfgs, meta):
    kernel = functools.partial(_g21_kernel, cfgs, meta["n_p"])
    n, h_out, w_out, c_out = meta["n"], meta["h_out"], meta["w_out"], meta["c_out"]

    def forward(x_nchw, arrays):
        xb, cin, hin, win = x_nchw.shape
        # NCHW -> image-major 2-D activations A[(n,h), (w,c)] (thin XLA transpose).
        x2d = jnp.transpose(x_nchw.astype(jnp.float32),
                            (0, 2, 3, 1)).reshape(xb * hin, win * cin)
        inputs = (x2d,) + tuple(arrays)
        out_shape = (n * h_out, w_out * c_out)
        out2d = pl.pallas_call(
            kernel,
            out_shape=jax.ShapeDtypeStruct(out_shape, jnp.float32),
            grid=(1,),
            in_specs=[_full_block(a.shape) for a in inputs],
            out_specs=_full_block(out_shape),
            compiler_params=pltpu.CompilerParams(
                dimension_semantics=("arbitrary",)),
        )(*inputs)
        out = out2d.reshape(n, h_out, w_out, c_out)
        return jnp.transpose(out, (0, 3, 1, 2))     # NHWC -> NCHW

    return forward


# ----------------------------------------------------------------------------
# Plain-XLA reference (used only for in-script validation of the fused kernel)
# ----------------------------------------------------------------------------
def g21_reference(x_nchw, params):
    x = jnp.transpose(x_nchw.astype(jnp.float32), (0, 2, 3, 1))

    def conv(h, w, stride, pad):
        w_hwio = jnp.transpose(w, (2, 3, 1, 0))
        return jax.lax.conv_general_dilated(
            h, w_hwio, (stride, stride), [(pad, pad), (pad, pad)],
            dimension_numbers=("NHWC", "HWIO", "NHWC"),
            precision=jax.lax.Precision.HIGHEST)

    def deconv(h, w, stride, pad):
        k = w.shape[-1]
        w_hwio = jnp.transpose(jnp.transpose(w[:, :, ::-1, ::-1], (1, 0, 2, 3)),
                               (2, 3, 1, 0))
        return jax.lax.conv_general_dilated(
            h, w_hwio, (1, 1), [(k - 1 - pad,) * 2] * 2,
            lhs_dilation=(stride, stride),
            dimension_numbers=("NHWC", "HWIO", "NHWC"),
            precision=jax.lax.Precision.HIGHEST)

    def bn(h, g, b):
        mu = jnp.mean(h, axis=(0, 1, 2), keepdims=True)
        var = jnp.mean((h - mu) ** 2, axis=(0, 1, 2), keepdims=True)
        return (h - mu) * jax.lax.rsqrt(var + _EPS) * g + b

    def lrelu(h):
        return jnp.where(h > 0, h, _LEAKY_SLOPE * h)

    out = lrelu(bn(conv(x, params["w1"], 2, 1), params["g1"], params["b1"]))
    out = lrelu(bn(conv(out, params["w2"], 2, 1), params["g2"], params["b2"]))
    out = lrelu(bn(conv(out, params["w3"], 1, 1), params["g3"], params["b3"]))
    out = lrelu(bn(conv(out, params["w4"], 1, 1), params["g4"], params["b4"]))
    out = lrelu(bn(deconv(out, params["dw1"], 2, 1), params["dg1"], params["db1"]))
    out = jnp.tanh(deconv(out, params["dw2"], 2, 1))
    return jnp.transpose(out, (0, 3, 1, 2))


if __name__ == "__main__":
    key = jax.random.PRNGKey(0)
    k_x, k_p = jax.random.split(key)
    n, h, w = 2, 16, 16
    x = jax.random.normal(k_x, (n, 3, h, w), dtype=jnp.float32)      # NCHW like PyTorch
    params = init_g21_params(k_p, conv_dim=16)
    arrays, cfgs, meta = prepare_g21(params, n, h, w)                # one-time weight prep

    forward = jax.jit(make_g21_forward(cfgs, meta))
    out = jax.block_until_ready(forward(x, arrays))

    assert out.shape == (n, 3, h, w), out.shape
    assert bool(jnp.all(jnp.isfinite(out)))
    assert bool(jnp.all(jnp.abs(out) <= 1.0 + 1e-6))                 # tanh output range

    # Cross-check the fused Pallas kernel against the plain-XLA reference.
    ref = jax.block_until_ready(jax.jit(g21_reference)(x, params))
    max_err = float(jnp.max(jnp.abs(out - ref)))
    assert max_err < 5e-2, max_err
    print("KERNEL_OK")
</pallas_src>

<mosaic_0001>
module attributes {stable_mosaic.version = 11 : i64} {
  func.func @_g21_kernel(%arg0: i32, %arg1: memref<32x48xf32, #tpu.memory_space<vmem>>, %arg2: memref<4x16x32xf32, #tpu.memory_space<vmem>>, %arg3: memref<4x48x128xf32, #tpu.memory_space<vmem>>, %arg4: memref<4x8x16xf32, #tpu.memory_space<vmem>>, %arg5: memref<4x128x128xf32, #tpu.memory_space<vmem>>, %arg6: memref<3x8x8xf32, #tpu.memory_space<vmem>>, %arg7: memref<3x128x128xf32, #tpu.memory_space<vmem>>, %arg8: memref<3x8x8xf32, #tpu.memory_space<vmem>>, %arg9: memref<3x128x128xf32, #tpu.memory_space<vmem>>, %arg10: memref<4x16x8xf32, #tpu.memory_space<vmem>>, %arg11: memref<4x128x128xf32, #tpu.memory_space<vmem>>, %arg12: memref<4x32x16xf32, #tpu.memory_space<vmem>>, %arg13: memref<4x128x48xf32, #tpu.memory_space<vmem>>, %arg14: memref<128x128xf32, #tpu.memory_space<vmem>>, %arg15: memref<128x128xf32, #tpu.memory_space<vmem>>, %arg16: memref<2x128xf32, #tpu.memory_space<vmem>>, %arg17: memref<2x128xf32, #tpu.memory_space<vmem>>, %arg18: memref<2x128xf32, #tpu.memory_space<vmem>>, %arg19: memref<2x128xf32, #tpu.memory_space<vmem>>, %arg20: memref<2x128xf32, #tpu.memory_space<vmem>>, %arg21: memref<32x48xf32, #tpu.memory_space<vmem>>) attributes {dimension_semantics = [#tpu.dimension_semantics<arbitrary>], iteration_bounds = array<i64: 1>, scalar_prefetch = 0 : i64, scratch_operands = 0 : i64, tpu.core_type = #tpu.core_type<tc>, window_params = [{pipeline_mode = #tpu.pipeline_mode<synchronous>, transform_indices = @transform_0, window_bounds = array<i64: 32, 48>}, {pipeline_mode = #tpu.pipeline_mode<synchronous>, transform_indices = @transform_1, window_bounds = array<i64: 4, 16, 32>}, {pipeline_mode = #tpu.pipeline_mode<synchronous>, transform_indices = @transform_2, window_bounds = array<i64: 4, 48, 128>}, {pipeline_mode = #tpu.pipeline_mode<synchronous>, transform_indices = @transform_3, window_bounds = array<i64: 4, 8, 16>}, {pipeline_mode = #tpu.pipeline_mode<synchronous>, transform_indices = @transform_4, window_bounds = array<i64: 4, 128, 128>}, {pipeline_mode = #tpu.pipeline_mode<synchronous>, transform_indices = @transform_5, window_bounds = array<i64: 3, 8, 8>}, {pipeline_mode = #tpu.pipeline_mode<synchronous>, transform_indices = @transform_6, window_bounds = array<i64: 3, 128, 128>}, {pipeline_mode = #tpu.pipeline_mode<synchronous>, transform_indices = @transform_7, window_bounds = array<i64: 3, 8, 8>}, {pipeline_mode = #tpu.pipeline_mode<synchronous>, transform_indices = @transform_8, window_bounds = array<i64: 3, 128, 128>}, {pipeline_mode = #tpu.pipeline_mode<synchronous>, transform_indices = @transform_9, window_bounds = array<i64: 4, 16, 8>}, {pipeline_mode = #tpu.pipeline_mode<synchronous>, transform_indices = @transform_10, window_bounds = array<i64: 4, 128, 128>}, {pipeline_mode = #tpu.pipeline_mode<synchronous>, transform_indices = @transform_11, window_bounds = array<i64: 4, 32, 16>}, {pipeline_mode = #tpu.pipeline_mode<synchronous>, transform_indices = @transform_12, window_bounds = array<i64: 4, 128, 48>}, {pipeline_mode = #tpu.pipeline_mode<synchronous>, transform_indices = @transform_13, window_bounds = array<i64: 128, 128>}, {pipeline_mode = #tpu.pipeline_mode<synchronous>, transform_indices = @transform_14, window_bounds = array<i64: 128, 128>}, {pipeline_mode = #tpu.pipeline_mode<synchronous>, transform_indices = @transform_15, window_bounds = array<i64: 2, 128>}, {pipeline_mode = #tpu.pipeline_mode<synchronous>, transform_indices = @transform_16, window_bounds = array<i64: 2, 128>}, {pipeline_mode = #tpu.pipeline_mode<synchronous>, transform_indices = @transform_17, window_bounds = array<i64: 2, 128>}, {pipeline_mode = #tpu.pipeline_mode<synchronous>, transform_indices = @transform_18, window_bounds = array<i64: 2, 128>}, {pipeline_mode = #tpu.pipeline_mode<synchronous>, transform_indices = @transform_19, window_bounds = array<i64: 2, 128>}, {pipeline_mode = #tpu.pipeline_mode<synchronous>, transform_indices = @transform_20, window_bounds = array<i64: 32, 48>}]} {
    %c0 = arith.constant 0 : index
    %c0_0 = arith.constant 0 : index
    %0 = vector.load %arg1[%c0, %c0_0] : memref<32x48xf32, #tpu.memory_space<vmem>>, vector<32x48xf32>
    %c0_1 = arith.constant 0 : index
    %c0_2 = arith.constant 0 : index
    %c0_3 = arith.constant 0 : index
    %1 = vector.load %arg3[%c0_1, %c0_2, %c0_3] : memref<4x48x128xf32, #tpu.memory_space<vmem>>, vector<1x48x128xf32>
    %2 = vector.shape_cast %1 : vector<1x48x128xf32> to vector<48x128xf32>
    %cst = arith.constant dense<0.000000e+00> : vector<32x128xf32>
    %3 = tpu.matmul %0, %2, %cst {dimension_numbers = #tpu.dot_dimension_numbers<[1], [0], [0], [1], [0, 0, 1, 1], [], []>} : vector<32x48xf32>, vector<48x128xf32>, vector<32x128xf32> -> vector<32x128xf32>
    %c0_4 = arith.constant 0 : index
    %c0_5 = arith.constant 0 : index
    %c0_6 = arith.constant 0 : index
    %4 = vector.load %arg2[%c0_4, %c0_5, %c0_6] : memref<4x16x32xf32, #tpu.memory_space<vmem>>, vector<1x16x32xf32>
    %5 = vector.shape_cast %4 : vector<1x16x32xf32> to vector<16x32xf32>
    %cst_7 = arith.constant dense<0.000000e+00> : vector<16x128xf32>
    %6 = tpu.matmul %5, %3, %cst_7 {dimension_numbers = #tpu.dot_dimension_numbers<[1], [0], [0], [1], [0, 0, 1, 1], [], []>} : vector<16x32xf32>, vector<32x128xf32>, vector<16x128xf32> -> vector<16x128xf32>
    %c1 = arith.constant 1 : index
    %c0_8 = arith.constant 0 : index
    %c0_9 = arith.constant 0 : index
    %7 = vector.load %arg3[%c1, %c0_8, %c0_9] : memref<4x48x128xf32, #tpu.memory_space<vmem>>, vector<1x48x128xf32>
    %8 = vector.shape_cast %7 : vector<1x48x128xf32> to vector<48x128xf32>
    %cst_10 = arith.constant dense<0.000000e+00> : vector<32x128xf32>
    %9 = tpu.matmul %0, %8, %cst_10 {dimension_numbers = #tpu.dot_dimension_numbers<[1], [0], [0], [1], [0, 0, 1, 1], [], []>} : vector<32x48xf32>, vector<48x128xf32>, vector<32x128xf32> -> vector<32x128xf32>
    %c1_11 = arith.constant 1 : index
    %c0_12 = arith.constant 0 : index
    %c0_13 = arith.constant 0 : index
    %10 = vector.load %arg2[%c1_11, %c0_12, %c0_13] : memref<4x16x32xf32, #tpu.memory_space<vmem>>, vector<1x16x32xf32>
    %11 = vector.shape_cast %10 : vector<1x16x32xf32> to vector<16x32xf32>
    %cst_14 = arith.constant dense<0.000000e+00> : vector<16x128xf32>
    %12 = tpu.matmul %11, %9, %cst_14 {dimension_numbers = #tpu.dot_dimension_numbers<[1], [0], [0], [1], [0, 0, 1, 1], [], []>} : vector<16x32xf32>, vector<32x128xf32>, vector<16x128xf32> -> vector<16x128xf32>
    %13 = arith.addf %6, %12 : vector<16x128xf32>
    %c2 = arith.constant 2 : index
    %c0_15 = arith.constant 0 : index
    %c0_16 = arith.constant 0 : index
    %14 = vector.load %arg3[%c2, %c0_15, %c0_16] : memref<4x48x128xf32, #tpu.memory_space<vmem>>, vector<1x48x128xf32>
    %15 = vector.shape_cast %14 : vector<1x48x128xf32> to vector<48x128xf32>
    %cst_17 = arith.constant dense<0.000000e+00> : vector<32x128xf32>
    %16 = tpu.matmul %0, %15, %cst_17 {dimension_numbers = #tpu.dot_dimension_numbers<[1], [0], [0], [1], [0, 0, 1, 1], [], []>} : vector<32x48xf32>, vector<48x128xf32>, vector<32x128xf32> -> vector<32x128xf32>
    %c2_18 = arith.constant 2 : index
    %c0_19 = arith.constant 0 : index
    %c0_20 = arith.constant 0 : index
    %17 = vector.load %arg2[%c2_18, %c0_19, %c0_20] : memref<4x16x32xf32, #tpu.memory_space<vmem>>, vector<1x16x32xf32>
    %18 = vector.shape_cast %17 : vector<1x16x32xf32> to vector<16x32xf32>
    %cst_21 = arith.constant dense<0.000000e+00> : vector<16x128xf32>
    %19 = tpu.matmul %18, %16, %cst_21 {dimension_numbers = #tpu.dot_dimension_numbers<[1], [0], [0], [1], [0, 0, 1, 1], [], []>} : vector<16x32xf32>, vector<32x128xf32>, vector<16x128xf32> -> vector<16x128xf32>
    %20 = arith.addf %13, %19 : vector<16x128xf32>
    %c3 = arith.constant 3 : index
    %c0_22 = arith.constant 0 : index
    %c0_23 = arith.constant 0 : index
    %21 = vector.load %arg3[%c3, %c0_22, %c0_23] : memref<4x48x128xf32, #tpu.memory_space<vmem>>, vector<1x48x128xf32>
    %22 = vector.shape_cast %21 : vector<1x48x128xf32> to vector<48x128xf32>
    %cst_24 = arith.constant dense<0.000000e+00> : vector<32x128xf32>
    %23 = tpu.matmul %0, %22, %cst_24 {dimension_numbers = #tpu.dot_dimension_numbers<[1], [0], [0], [1], [0, 0, 1, 1], [], []>} : vector<32x48xf32>, vector<48x128xf32>, vector<32x128xf32> -> vector<32x128xf32>
    %c3_25 = arith.constant 3 : index
    %c0_26 = arith.constant 0 : index
    %c0_27 = arith.constant 0 : index
    %24 = vector.load %arg2[%c3_25, %c0_26, %c0_27] : memref<4x16x32xf32, #tpu.memory_space<vmem>>, vector<1x16x32xf32>
    %25 = vector.shape_cast %24 : vector<1x16x32xf32> to vector<16x32xf32>
    %cst_28 = arith.constant dense<0.000000e+00> : vector<16x128xf32>
    %26 = tpu.matmul %25, %23, %cst_28 {dimension_numbers = #tpu.dot_dimension_numbers<[1], [0], [0], [1], [0, 0, 1, 1], [], []>} : vector<16x32xf32>, vector<32x128xf32>, vector<16x128xf32> -> vector<16x128xf32>
    %27 = arith.addf %20, %26 : vector<16x128xf32>
    %c0_29 = arith.constant 0 : index
    %c0_30 = arith.constant 0 : index
    %28 = vector.load %arg14[%c0_29, %c0_30] : memref<128x128xf32, #tpu.memory_space<vmem>>, vector<128x128xf32>
    %c0_31 = arith.constant 0 : index
    %c0_32 = arith.constant 0 : index
    %29 = vector.load %arg16[%c0_31, %c0_32] : memref<2x128xf32, #tpu.memory_space<vmem>>, vector<2x128xf32>
    %cst_33 = arith.constant dense<0.000000e+00> : vector<128xf32>
    %30 = vector.multi_reduction <add>, %27, %cst_33 [0] : vector<16x128xf32> to vector<128xf32>
    %31 = vector.shape_cast %30 : vector<128xf32> to vector<1x128xf32>
    %32 = arith.mulf %27, %27 : vector<16x128xf32>
    %cst_34 = arith.constant dense<0.000000e+00> : vector<128xf32>
    %33 = vector.multi_reduction <add>, %32, %cst_34 [0] : vector<16x128xf32> to vector<128xf32>
    %34 = vector.shape_cast %33 : vector<128xf32> to vector<1x128xf32>
    %cst_35 = arith.constant dense<0.000000e+00> : vector<1x128xf32>
    %35 = tpu.matmul %31, %28, %cst_35 {dimension_numbers = #tpu.dot_dimension_numbers<[1], [0], [0], [1], [0, 0, 1, 1], [], []>} : vector<1x128xf32>, vector<128x128xf32>, vector<1x128xf32> -> vector<1x128xf32>
    %cst_36 = arith.constant 7.812500e-03 : f32
    %36 = vector.broadcast %cst_36 : f32 to vector<1x128xf32>
    %37 = arith.mulf %35, %36 : vector<1x128xf32>
    %cst_37 = arith.constant dense<0.000000e+00> : vector<1x128xf32>
    %38 = tpu.matmul %34, %28, %cst_37 {dimension_numbers = #tpu.dot_dimension_numbers<[1], [0], [0], [1], [0, 0, 1, 1], [], []>} : vector<1x128xf32>, vector<128x128xf32>, vector<1x128xf32> -> vector<1x128xf32>
    %cst_38 = arith.constant 7.812500e-03 : f32
    %39 = vector.broadcast %cst_38 : f32 to vector<1x128xf32>
    %40 = arith.mulf %38, %39 : vector<1x128xf32>
    %41 = arith.mulf %37, %37 : vector<1x128xf32>
    %42 = arith.subf %40, %41 : vector<1x128xf32>
    %cst_39 = arith.constant 0.000000e+00 : f32
    %43 = vector.broadcast %cst_39 : f32 to vector<1x128xf32>
    %44 = arith.maximumf %42, %43 : vector<1x128xf32>
    %45 = vector.extract_strided_slice %29 {offsets = [0, 0], sizes = [1, 128], strides = [1, 1]} : vector<2x128xf32> to vector<1x128xf32>
    %cst_40 = arith.constant 9.99999974E-6 : f32
    %46 = vector.broadcast %cst_40 : f32 to vector<1x128xf32>
    %47 = arith.addf %44, %46 : vector<1x128xf32>
    %48 = math.rsqrt %47 : vector<1x128xf32>
    %49 = arith.mulf %45, %48 : vector<1x128xf32>
    %50 = vector.extract_strided_slice %29 {offsets = [1, 0], sizes = [1, 128], strides = [1, 1]} : vector<2x128xf32> to vector<1x128xf32>
    %51 = arith.mulf %37, %49 : vector<1x128xf32>
    %52 = arith.subf %50, %51 : vector<1x128xf32>
    %53 = vector.broadcast %49 : vector<1x128xf32> to vector<16x128xf32>
    %54 = arith.mulf %27, %53 : vector<16x128xf32>
    %55 = vector.broadcast %52 : vector<1x128xf32> to vector<16x128xf32>
    %56 = arith.addf %54, %55 : vector<16x128xf32>
    %cst_41 = arith.constant 5.000000e-02 : f32
    %57 = vector.broadcast %cst_41 : f32 to vector<16x128xf32>
    %58 = arith.mulf %57, %56 : vector<16x128xf32>
    %59 = arith.maximumf %56, %58 : vector<16x128xf32>
    %c0_42 = arith.constant 0 : index
    %c0_43 = arith.constant 0 : index
    %c0_44 = arith.constant 0 : index
    %60 = vector.load %arg5[%c0_42, %c0_43, %c0_44] : memref<4x128x128xf32, #tpu.memory_space<vmem>>, vector<1x128x128xf32>
    %61 = vector.shape_cast %60 : vector<1x128x128xf32> to vector<128x128xf32>
    %cst_45 = arith.constant dense<0.000000e+00> : vector<16x128xf32>
    %62 = tpu.matmul %59, %61, %cst_45 {dimension_numbers = #tpu.dot_dimension_numbers<[1], [0], [0], [1], [0, 0, 1, 1], [], []>} : vector<16x128xf32>, vector<128x128xf32>, vector<16x128xf32> -> vector<16x128xf32>
    %c0_46 = arith.constant 0 : index
    %c0_47 = arith.constant 0 : index
    %c0_48 = arith.constant 0 : index
    %63 = vector.load %arg4[%c0_46, %c0_47, %c0_48] : memref<4x8x16xf32, #tpu.memory_space<vmem>>, vector<1x8x16xf32>
    %64 = vector.shape_cast %63 : vector<1x8x16xf32> to vector<8x16xf32>
    %cst_49 = arith.constant dense<0.000000e+00> : vector<8x128xf32>
    %65 = tpu.matmul %64, %62, %cst_49 {dimension_numbers = #tpu.dot_dimension_numbers<[1], [0], [0], [1], [0, 0, 1, 1], [], []>} : vector<8x16xf32>, vector<16x128xf32>, vector<8x128xf32> -> vector<8x128xf32>
    %c1_50 = arith.constant 1 : index
    %c0_51 = arith.constant 0 : index
    %c0_52 = arith.constant 0 : index
    %66 = vector.load %arg5[%c1_50, %c0_51, %c0_52] : memref<4x128x128xf32, #tpu.memory_space<vmem>>, vector<1x128x128xf32>
    %67 = vector.shape_cast %66 : vector<1x128x128xf32> to vector<128x128xf32>
    %cst_53 = arith.constant dense<0.000000e+00> : vector<16x128xf32>
    %68 = tpu.matmul %59, %67, %cst_53 {dimension_numbers = #tpu.dot_dimension_numbers<[1], [0], [0], [1], [0, 0, 1, 1], [], []>} : vector<16x128xf32>, vector<128x128xf32>, vector<16x128xf32> -> vector<16x128xf32>
    %c1_54 = arith.constant 1 : index
    %c0_55 = arith.constant 0 : index
    %c0_56 = arith.constant 0 : index
    %69 = vector.load %arg4[%c1_54, %c0_55, %c0_56] : memref<4x8x16xf32, #tpu.memory_space<vmem>>, vector<1x8x16xf32>
    %70 = vector.shape_cast %69 : vector<1x8x16xf32> to vector<8x16xf32>
    %cst_57 = arith.constant dense<0.000000e+00> : vector<8x128xf32>
    %71 = tpu.matmul %70, %68, %cst_57 {dimension_numbers = #tpu.dot_dimension_numbers<[1], [0], [0], [1], [0, 0, 1, 1], [], []>} : vector<8x16xf32>, vector<16x128xf32>, vector<8x128xf32> -> vector<8x128xf32>
    %72 = arith.addf %65, %71 : vector<8x128xf32>
    %c2_58 = arith.constant 2 : index
    %c0_59 = arith.constant 0 : index
    %c0_60 = arith.constant 0 : index
    %73 = vector.load %arg5[%c2_58, %c0_59, %c0_60] : memref<4x128x128xf32, #tpu.memory_space<vmem>>, vector<1x128x128xf32>
    %74 = vector.shape_cast %73 : vector<1x128x128xf32> to vector<128x128xf32>
    %cst_61 = arith.constant dense<0.000000e+00> : vector<16x128xf32>
    %75 = tpu.matmul %59, %74, %cst_61 {dimension_numbers = #tpu.dot_dimension_numbers<[1], [0], [0], [1], [0, 0, 1, 1], [], []>} : vector<16x128xf32>, vector<128x128xf32>, vector<16x128xf32> -> vector<16x128xf32>
    %c2_62 = arith.constant 2 : index
    %c0_63 = arith.constant 0 : index
    %c0_64 = arith.constant 0 : index
    %76 = vector.load %arg4[%c2_62, %c0_63, %c0_64] : memref<4x8x16xf32, #tpu.memory_space<vmem>>, vector<1x8x16xf32>
    %77 = vector.shape_cast %76 : vector<1x8x16xf32> to vector<8x16xf32>
    %cst_65 = arith.constant dense<0.000000e+00> : vector<8x128xf32>
    %78 = tpu.matmul %77, %75, %cst_65 {dimension_numbers = #tpu.dot_dimension_numbers<[1], [0], [0], [1], [0, 0, 1, 1], [], []>} : vector<8x16xf32>, vector<16x128xf32>, vector<8x128xf32> -> vector<8x128xf32>
    %79 = arith.addf %72, %78 : vector<8x128xf32>
    %c3_66 = arith.constant 3 : index
    %c0_67 = arith.constant 0 : index
    %c0_68 = arith.constant 0 : index
    %80 = vector.load %arg5[%c3_66, %c0_67, %c0_68] : memref<4x128x128xf32, #tpu.memory_space<vmem>>, vector<1x128x128xf32>
    %81 = vector.shape_cast %80 : vector<1x128x128xf32> to vector<128x128xf32>
    %cst_69 = arith.constant dense<0.000000e+00> : vector<16x128xf32>
    %82 = tpu.matmul %59, %81, %cst_69 {dimension_numbers = #tpu.dot_dimension_numbers<[1], [0], [0], [1], [0, 0, 1, 1], [], []>} : vector<16x128xf32>, vector<128x128xf32>, vector<16x128xf32> -> vector<16x128xf32>
    %c3_70 = arith.constant 3 : index
    %c0_71 = arith.constant 0 : index
    %c0_72 = arith.constant 0 : index
    %83 = vector.load %arg4[%c3_70, %c0_71, %c0_72] : memref<4x8x16xf32, #tpu.memory_space<vmem>>, vector<1x8x16xf32>
    %84 = vector.shape_cast %83 : vector<1x8x16xf32> to vector<8x16xf32>
    %cst_73 = arith.constant dense<0.000000e+00> : vector<8x128xf32>
    %85 = tpu.matmul %84, %82, %cst_73 {dimension_numbers = #tpu.dot_dimension_numbers<[1], [0], [0], [1], [0, 0, 1, 1], [], []>} : vector<8x16xf32>, vector<16x128xf32>, vector<8x128xf32> -> vector<8x128xf32>
    %86 = arith.addf %79, %85 : vector<8x128xf32>
    %c0_74 = arith.constant 0 : index
    %c0_75 = arith.constant 0 : index
    %87 = vector.load %arg15[%c0_74, %c0_75] : memref<128x128xf32, #tpu.memory_space<vmem>>, vector<128x128xf32>
    %c0_76 = arith.constant 0 : index
    %c0_77 = arith.constant 0 : index
    %88 = vector.load %arg17[%c0_76, %c0_77] : memref<2x128xf32, #tpu.memory_space<vmem>>, vector<2x128xf32>
    %cst_78 = arith.constant dense<0.000000e+00> : vector<128xf32>
    %89 = vector.multi_reduction <add>, %86, %cst_78 [0] : vector<8x128xf32> to vector<128xf32>
    %90 = vector.shape_cast %89 : vector<128xf32> to vector<1x128xf32>
    %91 = arith.mulf %86, %86 : vector<8x128xf32>
    %cst_79 = arith.constant dense<0.000000e+00> : vector<128xf32>
    %92 = vector.multi_reduction <add>, %91, %cst_79 [0] : vector<8x128xf32> to vector<128xf32>
    %93 = vector.shape_cast %92 : vector<128xf32> to vector<1x128xf32>
    %cst_80 = arith.constant dense<0.000000e+00> : vector<1x128xf32>
    %94 = tpu.matmul %90, %87, %cst_80 {dimension_numbers = #tpu.dot_dimension_numbers<[1], [0], [0], [1], [0, 0, 1, 1], [], []>} : vector<1x128xf32>, vector<128x128xf32>, vector<1x128xf32> -> vector<1x128xf32>
    %cst_81 = arith.constant 3.125000e-02 : f32
    %95 = vector.broadcast %cst_81 : f32 to vector<1x128xf32>
    %96 = arith.mulf %94, %95 : vector<1x128xf32>
    %cst_82 = arith.constant dense<0.000000e+00> : vector<1x128xf32>
    %97 = tpu.matmul %93, %87, %cst_82 {dimension_numbers = #tpu.dot_dimension_numbers<[1], [0], [0], [1], [0, 0, 1, 1], [], []>} : vector<1x128xf32>, vector<128x128xf32>, vector<1x128xf32> -> vector<1x128xf32>
    %cst_83 = arith.constant 3.125000e-02 : f32
    %98 = vector.broadcast %cst_83 : f32 to vector<1x128xf32>
    %99 = arith.mulf %97, %98 : vector<1x128xf32>
    %100 = arith.mulf %96, %96 : vector<1x128xf32>
    %101 = arith.subf %99, %100 : vector<1x128xf32>
    %cst_84 = arith.constant 0.000000e+00 : f32
    %102 = vector.broadcast %cst_84 : f32 to vector<1x128xf32>
    %103 = arith.maximumf %101, %102 : vector<1x128xf32>
    %104 = vector.extract_strided_slice %88 {offsets = [0, 0], sizes = [1, 128], strides = [1, 1]} : vector<2x128xf32> to vector<1x128xf32>
    %cst_85 = arith.constant 9.99999974E-6 : f32
    %105 = vector.broadcast %cst_85 : f32 to vector<1x128xf32>
    %106 = arith.addf %103, %105 : vector<1x128xf32>
    %107 = math.rsqrt %106 : vector<1x128xf32>
    %108 = arith.mulf %104, %107 : vector<1x128xf32>
    %109 = vector.extract_strided_slice %88 {offsets = [1, 0], sizes = [1, 128], strides = [1, 1]} : vector<2x128xf32> to vector<1x128xf32>
    %110 = arith.mulf %96, %108 : vector<1x128xf32>
    %111 = arith.subf %109, %110 : vector<1x128xf32>
    %112 = vector.broadcast %108 : vector<1x128xf32> to vector<8x128xf32>
    %113 = arith.mulf %86, %112 : vector<8x128xf32>
    %114 = vector.broadcast %111 : vector<1x128xf32> to vector<8x128xf32>
    %115 = arith.addf %113, %114 : vector<8x128xf32>
    %cst_86 = arith.constant 5.000000e-02 : f32
    %116 = vector.broadcast %cst_86 : f32 to vector<8x128xf32>
    %117 = arith.mulf %116, %115 : vector<8x128xf32>
    %118 = arith.maximumf %115, %117 : vector<8x128xf32>
    %c0_87 = arith.constant 0 : index
    %c0_88 = arith.constant 0 : index
    %c0_89 = arith.constant 0 : index
    %119 = vector.load %arg7[%c0_87, %c0_88, %c0_89] : memref<3x128x128xf32, #tpu.memory_space<vmem>>, vector<1x128x128xf32>
    %120 = vector.shape_cast %119 : vector<1x128x128xf32> to vector<128x128xf32>
    %cst_90 = arith.constant dense<0.000000e+00> : vector<8x128xf32>
    %121 = tpu.matmul %118, %120, %cst_90 {dimension_numbers = #tpu.dot_dimension_numbers<[1], [0], [0], [1], [0, 0, 1, 1], [], []>} : vector<8x128xf32>, vector<128x128xf32>, vector<8x128xf32> -> vector<8x128xf32>
    %c0_91 = arith.constant 0 : index
    %c0_92 = arith.constant 0 : index
    %c0_93 = arith.constant 0 : index
    %122 = vector.load %arg6[%c0_91, %c0_92, %c0_93] : memref<3x8x8xf32, #tpu.memory_space<vmem>>, vector<1x8x8xf32>
    %123 = vector.shape_cast %122 : vector<1x8x8xf32> to vector<8x8xf32>
    %cst_94 = arith.constant dense<0.000000e+00> : vector<8x128xf32>
    %124 = tpu.matmul %123, %121, %cst_94 {dimension_numbers = #tpu.dot_dimension_numbers<[1], [0], [0], [1], [0, 0, 1, 1], [], []>} : vector<8x8xf32>, vector<8x128xf32>, vector<8x128xf32> -> vector<8x128xf32>
    %c1_95 = arith.constant 1 : index
    %c0_96 = arith.constant 0 : index
    %c0_97 = arith.constant 0 : index
    %125 = vector.load %arg7[%c1_95, %c0_96, %c0_97] : memref<3x128x128xf32, #tpu.memory_space<vmem>>, vector<1x128x128xf32>
    %126 = vector.shape_cast %125 : vector<1x128x128xf32> to vector<128x128xf32>
    %cst_98 = arith.constant dense<0.000000e+00> : vector<8x128xf32>
    %127 = tpu.matmul %118, %126, %cst_98 {dimension_numbers = #tpu.dot_dimension_numbers<[1], [0], [0], [1], [0, 0, 1, 1], [], []>} : vector<8x128xf32>, vector<128x128xf32>, vector<8x128xf32> -> vector<8x128xf32>
    %c1_99 = arith.constant 1 : index
    %c0_100 = arith.constant 0 : index
    %c0_101 = arith.constant 0 : index
    %128 = vector.load %arg6[%c1_99, %c0_100, %c0_101] : memref<3x8x8xf32, #tpu.memory_space<vmem>>, vector<1x8x8xf32>
    %129 = vector.shape_cast %128 : vector<1x8x8xf32> to vector<8x8xf32>
    %cst_102 = arith.constant dense<0.000000e+00> : vector<8x128xf32>
    %130 = tpu.matmul %129, %127, %cst_102 {dimension_numbers = #tpu.dot_dimension_numbers<[1], [0], [0], [1], [0, 0, 1, 1], [], []>} : vector<8x8xf32>, vector<8x128xf32>, vector<8x128xf32> -> vector<8x128xf32>
    %131 = arith.addf %124, %130 : vector<8x128xf32>
    %c2_103 = arith.constant 2 : index
    %c0_104 = arith.constant 0 : index
    %c0_105 = arith.constant 0 : index
    %132 = vector.load %arg7[%c2_103, %c0_104, %c0_105] : memref<3x128x128xf32, #tpu.memory_space<vmem>>, vector<1x128x128xf32>
    %133 = vector.shape_cast %132 : vector<1x128x128xf32> to vector<128x128xf32>
    %cst_106 = arith.constant dense<0.000000e+00> : vector<8x128xf32>
    %134 = tpu.matmul %118, %133, %cst_106 {dimension_numbers = #tpu.dot_dimension_numbers<[1], [0], [0], [1], [0, 0, 1, 1], [], []>} : vector<8x128xf32>, vector<128x128xf32>, vector<8x128xf32> -> vector<8x128xf32>
    %c2_107 = arith.constant 2 : index
    %c0_108 = arith.constant 0 : index
    %c0_109 = arith.constant 0 : index
    %135 = vector.load %arg6[%c2_107, %c0_108, %c0_109] : memref<3x8x8xf32, #tpu.memory_space<vmem>>, vector<1x8x8xf32>
    %136 = vector.shape_cast %135 : vector<1x8x8xf32> to vector<8x8xf32>
    %cst_110 = arith.constant dense<0.000000e+00> : vector<8x128xf32>
    %137 = tpu.matmul %136, %134, %cst_110 {dimension_numbers = #tpu.dot_dimension_numbers<[1], [0], [0], [1], [0, 0, 1, 1], [], []>} : vector<8x8xf32>, vector<8x128xf32>, vector<8x128xf32> -> vector<8x128xf32>
    %138 = arith.addf %131, %137 : vector<8x128xf32>
    %c0_111 = arith.constant 0 : index
    %c0_112 = arith.constant 0 : index
    %139 = vector.load %arg15[%c0_111, %c0_112] : memref<128x128xf32, #tpu.memory_space<vmem>>, vector<128x128xf32>
    %c0_113 = arith.constant 0 : index
    %c0_114 = arith.constant 0 : index
    %140 = vector.load %arg18[%c0_113, %c0_114] : memref<2x128xf32, #tpu.memory_space<vmem>>, vector<2x128xf32>
    %cst_115 = arith.constant dense<0.000000e+00> : vector<128xf32>
    %141 = vector.multi_reduction <add>, %138, %cst_115 [0] : vector<8x128xf32> to vector<128xf32>
    %142 = vector.shape_cast %141 : vector<128xf32> to vector<1x128xf32>
    %143 = arith.mulf %138, %138 : vector<8x128xf32>
    %cst_116 = arith.constant dense<0.000000e+00> : vector<128xf32>
    %144 = vector.multi_reduction <add>, %143, %cst_116 [0] : vector<8x128xf32> to vector<128xf32>
    %145 = vector.shape_cast %144 : vector<128xf32> to vector<1x128xf32>
    %cst_117 = arith.constant dense<0.000000e+00> : vector<1x128xf32>
    %146 = tpu.matmul %142, %139, %cst_117 {dimension_numbers = #tpu.dot_dimension_numbers<[1], [0], [0], [1], [0, 0, 1, 1], [], []>} : vector<1x128xf32>, vector<128x128xf32>, vector<1x128xf32> -> vector<1x128xf32>
    %cst_118 = arith.constant 3.125000e-02 : f32
    %147 = vector.broadcast %cst_118 : f32 to vector<1x128xf32>
    %148 = arith.mulf %146, %147 : vector<1x128xf32>
    %cst_119 = arith.constant dense<0.000000e+00> : vector<1x128xf32>
    %149 = tpu.matmul %145, %139, %cst_119 {dimension_numbers = #tpu.dot_dimension_numbers<[1], [0], [0], [1], [0, 0, 1, 1], [], []>} : vector<1x128xf32>, vector<128x128xf32>, vector<1x128xf32> -> vector<1x128xf32>
    %cst_120 = arith.constant 3.125000e-02 : f32
    %150 = vector.broadcast %cst_120 : f32 to vector<1x128xf32>
    %151 = arith.mulf %149, %150 : vector<1x128xf32>
    %152 = arith.mulf %148, %148 : vector<1x128xf32>
    %153 = arith.subf %151, %152 : vector<1x128xf32>
    %cst_121 = arith.constant 0.000000e+00 : f32
    %154 = vector.broadcast %cst_121 : f32 to vector<1x128xf32>
    %155 = arith.maximumf %153, %154 : vector<1x128xf32>
    %156 = vector.extract_strided_slice %140 {offsets = [0, 0], sizes = [1, 128], strides = [1, 1]} : vector<2x128xf32> to vector<1x128xf32>
    %cst_122 = arith.constant 9.99999974E-6 : f32
    %157 = vector.broadcast %cst_122 : f32 to vector<1x128xf32>
    %158 = arith.addf %155, %157 : vector<1x128xf32>
    %159 = math.rsqrt %158 : vector<1x128xf32>
    %160 = arith.mulf %156, %159 : vector<1x128xf32>
    %161 = vector.extract_strided_slice %140 {offsets = [1, 0], sizes = [1, 128], strides = [1, 1]} : vector<2x128xf32> to vector<1x128xf32>
    %162 = arith.mulf %148, %160 : vector<1x128xf32>
    %163 = arith.subf %161, %162 : vector<1x128xf32>
    %164 = vector.broadcast %160 : vector<1x128xf32> to vector<8x128xf32>
    %165 = arith.mulf %138, %164 : vector<8x128xf32>
    %166 = vector.broadcast %163 : vector<1x128xf32> to vector<8x128xf32>
    %167 = arith.addf %165, %166 : vector<8x128xf32>
    %cst_123 = arith.constant 5.000000e-02 : f32
    %168 = vector.broadcast %cst_123 : f32 to vector<8x128xf32>
    %169 = arith.mulf %168, %167 : vector<8x128xf32>
    %170 = arith.maximumf %167, %169 : vector<8x128xf32>
    %c0_124 = arith.constant 0 : index
    %c0_125 = arith.constant 0 : index
    %c0_126 = arith.constant 0 : index
    %171 = vector.load %arg9[%c0_124, %c0_125, %c0_126] : memref<3x128x128xf32, #tpu.memory_space<vmem>>, vector<1x128x128xf32>
    %172 = vector.shape_cast %171 : vector<1x128x128xf32> to vector<128x128xf32>
    %cst_127 = arith.constant dense<0.000000e+00> : vector<8x128xf32>
    %173 = tpu.matmul %170, %172, %cst_127 {dimension_numbers = #tpu.dot_dimension_numbers<[1], [0], [0], [1], [0, 0, 1, 1], [], []>} : vector<8x128xf32>, vector<128x128xf32>, vector<8x128xf32> -> vector<8x128xf32>
    %c0_128 = arith.constant 0 : index
    %c0_129 = arith.constant 0 : index
    %c0_130 = arith.constant 0 : index
    %174 = vector.load %arg8[%c0_128, %c0_129, %c0_130] : memref<3x8x8xf32, #tpu.memory_space<vmem>>, vector<1x8x8xf32>
    %175 = vector.shape_cast %174 : vector<1x8x8xf32> to vector<8x8xf32>
    %cst_131 = arith.constant dense<0.000000e+00> : vector<8x128xf32>
    %176 = tpu.matmul %175, %173, %cst_131 {dimension_numbers = #tpu.dot_dimension_numbers<[1], [0], [0], [1], [0, 0, 1, 1], [], []>} : vector<8x8xf32>, vector<8x128xf32>, vector<8x128xf32> -> vector<8x128xf32>
    %c1_132 = arith.constant 1 : index
    %c0_133 = arith.constant 0 : index
    %c0_134 = arith.constant 0 : index
    %177 = vector.load %arg9[%c1_132, %c0_133, %c0_134] : memref<3x128x128xf32, #tpu.memory_space<vmem>>, vector<1x128x128xf32>
    %178 = vector.shape_cast %177 : vector<1x128x128xf32> to vector<128x128xf32>
    %cst_135 = arith.constant dense<0.000000e+00> : vector<8x128xf32>
    %179 = tpu.matmul %170, %178, %cst_135 {dimension_numbers = #tpu.dot_dimension_numbers<[1], [0], [0], [1], [0, 0, 1, 1], [], []>} : vector<8x128xf32>, vector<128x128xf32>, vector<8x128xf32> -> vector<8x128xf32>
    %c1_136 = arith.constant 1 : index
    %c0_137 = arith.constant 0 : index
    %c0_138 = arith.constant 0 : index
    %180 = vector.load %arg8[%c1_136, %c0_137, %c0_138] : memref<3x8x8xf32, #tpu.memory_space<vmem>>, vector<1x8x8xf32>
    %181 = vector.shape_cast %180 : vector<1x8x8xf32> to vector<8x8xf32>
    %cst_139 = arith.constant dense<0.000000e+00> : vector<8x128xf32>
    %182 = tpu.matmul %181, %179, %cst_139 {dimension_numbers = #tpu.dot_dimension_numbers<[1], [0], [0], [1], [0, 0, 1, 1], [], []>} : vector<8x8xf32>, vector<8x128xf32>, vector<8x128xf32> -> vector<8x128xf32>
    %183 = arith.addf %176, %182 : vector<8x128xf32>
    %c2_140 = arith.constant 2 : index
    %c0_141 = arith.constant 0 : index
    %c0_142 = arith.constant 0 : index
    %184 = vector.load %arg9[%c2_140, %c0_141, %c0_142] : memref<3x128x128xf32, #tpu.memory_space<vmem>>, vector<1x128x128xf32>
    %185 = vector.shape_cast %184 : vector<1x128x128xf32> to vector<128x128xf32>
    %cst_143 = arith.constant dense<0.000000e+00> : vector<8x128xf32>
    %186 = tpu.matmul %170, %185, %cst_143 {dimension_numbers = #tpu.dot_dimension_numbers<[1], [0], [0], [1], [0, 0, 1, 1], [], []>} : vector<8x128xf32>, vector<128x128xf32>, vector<8x128xf32> -> vector<8x128xf32>
    %c2_144 = arith.constant 2 : index
    %c0_145 = arith.constant 0 : index
    %c0_146 = arith.constant 0 : index
    %187 = vector.load %arg8[%c2_144, %c0_145, %c0_146] : memref<3x8x8xf32, #tpu.memory_space<vmem>>, vector<1x8x8xf32>
    %188 = vector.shape_cast %187 : vector<1x8x8xf32> to vector<8x8xf32>
    %cst_147 = arith.constant dense<0.000000e+00> : vector<8x128xf32>
    %189 = tpu.matmul %188, %186, %cst_147 {dimension_numbers = #tpu.dot_dimension_numbers<[1], [0], [0], [1], [0, 0, 1, 1], [], []>} : vector<8x8xf32>, vector<8x128xf32>, vector<8x128xf32> -> vector<8x128xf32>
    %190 = arith.addf %183, %189 : vector<8x128xf32>
    %c0_148 = arith.constant 0 : index
    %c0_149 = arith.constant 0 : index
    %191 = vector.load %arg15[%c0_148, %c0_149] : memref<128x128xf32, #tpu.memory_space<vmem>>, vector<128x128xf32>
    %c0_150 = arith.constant 0 : index
    %c0_151 = arith.constant 0 : index
    %192 = vector.load %arg19[%c0_150, %c0_151] : memref<2x128xf32, #tpu.memory_space<vmem>>, vector<2x128xf32>
    %cst_152 = arith.constant dense<0.000000e+00> : vector<128xf32>
    %193 = vector.multi_reduction <add>, %190, %cst_152 [0] : vector<8x128xf32> to vector<128xf32>
    %194 = vector.shape_cast %193 : vector<128xf32> to vector<1x128xf32>
    %195 = arith.mulf %190, %190 : vector<8x128xf32>
    %cst_153 = arith.constant dense<0.000000e+00> : vector<128xf32>
    %196 = vector.multi_reduction <add>, %195, %cst_153 [0] : vector<8x128xf32> to vector<128xf32>
    %197 = vector.shape_cast %196 : vector<128xf32> to vector<1x128xf32>
    %cst_154 = arith.constant dense<0.000000e+00> : vector<1x128xf32>
    %198 = tpu.matmul %194, %191, %cst_154 {dimension_numbers = #tpu.dot_dimension_numbers<[1], [0], [0], [1], [0, 0, 1, 1], [], []>} : vector<1x128xf32>, vector<128x128xf32>, vector<1x128xf32> -> vector<1x128xf32>
    %cst_155 = arith.constant 3.125000e-02 : f32
    %199 = vector.broadcast %cst_155 : f32 to vector<1x128xf32>
    %200 = arith.mulf %198, %199 : vector<1x128xf32>
    %cst_156 = arith.constant dense<0.000000e+00> : vector<1x128xf32>
    %201 = tpu.matmul %197, %191, %cst_156 {dimension_numbers = #tpu.dot_dimension_numbers<[1], [0], [0], [1], [0, 0, 1, 1], [], []>} : vector<1x128xf32>, vector<128x128xf32>, vector<1x128xf32> -> vector<1x128xf32>
    %cst_157 = arith.constant 3.125000e-02 : f32
    %202 = vector.broadcast %cst_157 : f32 to vector<1x128xf32>
    %203 = arith.mulf %201, %202 : vector<1x128xf32>
    %204 = arith.mulf %200, %200 : vector<1x128xf32>
    %205 = arith.subf %203, %204 : vector<1x128xf32>
    %cst_158 = arith.constant 0.000000e+00 : f32
    %206 = vector.broadcast %cst_158 : f32 to vector<1x128xf32>
    %207 = arith.maximumf %205, %206 : vector<1x128xf32>
    %208 = vector.extract_strided_slice %192 {offsets = [0, 0], sizes = [1, 128], strides = [1, 1]} : vector<2x128xf32> to vector<1x128xf32>
    %cst_159 = arith.constant 9.99999974E-6 : f32
    %209 = vector.broadcast %cst_159 : f32 to vector<1x128xf32>
    %210 = arith.addf %207, %209 : vector<1x128xf32>
    %211 = math.rsqrt %210 : vector<1x128xf32>
    %212 = arith.mulf %208, %211 : vector<1x128xf32>
    %213 = vector.extract_strided_slice %192 {offsets = [1, 0], sizes = [1, 128], strides = [1, 1]} : vector<2x128xf32> to vector<1x128xf32>
    %214 = arith.mulf %200, %212 : vector<1x128xf32>
    %215 = arith.subf %213, %214 : vector<1x128xf32>
    %216 = vector.broadcast %212 : vector<1x128xf32> to vector<8x128xf32>
    %217 = arith.mulf %190, %216 : vector<8x128xf32>
    %218 = vector.broadcast %215 : vector<1x128xf32> to vector<8x128xf32>
    %219 = arith.addf %217, %218 : vector<8x128xf32>
    %cst_160 = arith.constant 5.000000e-02 : f32
    %220 = vector.broadcast %cst_160 : f32 to vector<8x128xf32>
    %221 = arith.mulf %220, %219 : vector<8x128xf32>
    %222 = arith.maximumf %219, %221 : vector<8x128xf32>
    %c0_161 = arith.constant 0 : index
    %c0_162 = arith.constant 0 : index
    %c0_163 = arith.constant 0 : index
    %223 = vector.load %arg11[%c0_161, %c0_162, %c0_163] : memref<4x128x128xf32, #tpu.memory_space<vmem>>, vector<1x128x128xf32>
    %224 = vector.shape_cast %223 : vector<1x128x128xf32> to vector<128x128xf32>
    %cst_164 = arith.constant dense<0.000000e+00> : vector<8x128xf32>
    %225 = tpu.matmul %222, %224, %cst_164 {dimension_numbers = #tpu.dot_dimension_numbers<[1], [0], [0], [1], [0, 0, 1, 1], [], []>} : vector<8x128xf32>, vector<128x128xf32>, vector<8x128xf32> -> vector<8x128xf32>
    %c0_165 = arith.constant 0 : index
    %c0_166 = arith.constant 0 : index
    %c0_167 = arith.constant 0 : index
    %226 = vector.load %arg10[%c0_165, %c0_166, %c0_167] : memref<4x16x8xf32, #tpu.memory_space<vmem>>, vector<1x16x8xf32>
    %227 = vector.shape_cast %226 : vector<1x16x8xf32> to vector<16x8xf32>
    %cst_168 = arith.constant dense<0.000000e+00> : vector<16x128xf32>
    %228 = tpu.matmul %227, %225, %cst_168 {dimension_numbers = #tpu.dot_dimension_numbers<[1], [0], [0], [1], [0, 0, 1, 1], [], []>} : vector<16x8xf32>, vector<8x128xf32>, vector<16x128xf32> -> vector<16x128xf32>
    %c1_169 = arith.constant 1 : index
    %c0_170 = arith.constant 0 : index
    %c0_171 = arith.constant 0 : index
    %229 = vector.load %arg11[%c1_169, %c0_170, %c0_171] : memref<4x128x128xf32, #tpu.memory_space<vmem>>, vector<1x128x128xf32>
    %230 = vector.shape_cast %229 : vector<1x128x128xf32> to vector<128x128xf32>
    %cst_172 = arith.constant dense<0.000000e+00> : vector<8x128xf32>
    %231 = tpu.matmul %222, %230, %cst_172 {dimension_numbers = #tpu.dot_dimension_numbers<[1], [0], [0], [1], [0, 0, 1, 1], [], []>} : vector<8x128xf32>, vector<128x128xf32>, vector<8x128xf32> -> vector<8x128xf32>
    %c1_173 = arith.constant 1 : index
    %c0_174 = arith.constant 0 : index
    %c0_175 = arith.constant 0 : index
    %232 = vector.load %arg10[%c1_173, %c0_174, %c0_175] : memref<4x16x8xf32, #tpu.memory_space<vmem>>, vector<1x16x8xf32>
    %233 = vector.shape_cast %232 : vector<1x16x8xf32> to vector<16x8xf32>
    %cst_176 = arith.constant dense<0.000000e+00> : vector<16x128xf32>
    %234 = tpu.matmul %233, %231, %cst_176 {dimension_numbers = #tpu.dot_dimension_numbers<[1], [0], [0], [1], [0, 0, 1, 1], [], []>} : vector<16x8xf32>, vector<8x128xf32>, vector<16x128xf32> -> vector<16x128xf32>
    %235 = arith.addf %228, %234 : vector<16x128xf32>
    %c2_177 = arith.constant 2 : index
    %c0_178 = arith.constant 0 : index
    %c0_179 = arith.constant 0 : index
    %236 = vector.load %arg11[%c2_177, %c0_178, %c0_179] : memref<4x128x128xf32, #tpu.memory_space<vmem>>, vector<1x128x128xf32>
    %237 = vector.shape_cast %236 : vector<1x128x128xf32> to vector<128x128xf32>
    %cst_180 = arith.constant dense<0.000000e+00> : vector<8x128xf32>
    %238 = tpu.matmul %222, %237, %cst_180 {dimension_numbers = #tpu.dot_dimension_numbers<[1], [0], [0], [1], [0, 0, 1, 1], [], []>} : vector<8x128xf32>, vector<128x128xf32>, vector<8x128xf32> -> vector<8x128xf32>
    %c2_181 = arith.constant 2 : index
    %c0_182 = arith.constant 0 : index
    %c0_183 = arith.constant 0 : index
    %239 = vector.load %arg10[%c2_181, %c0_182, %c0_183] : memref<4x16x8xf32, #tpu.memory_space<vmem>>, vector<1x16x8xf32>
    %240 = vector.shape_cast %239 : vector<1x16x8xf32> to vector<16x8xf32>
    %cst_184 = arith.constant dense<0.000000e+00> : vector<16x128xf32>
    %241 = tpu.matmul %240, %238, %cst_184 {dimension_numbers = #tpu.dot_dimension_numbers<[1], [0], [0], [1], [0, 0, 1, 1], [], []>} : vector<16x8xf32>, vector<8x128xf32>, vector<16x128xf32> -> vector<16x128xf32>
    %242 = arith.addf %235, %241 : vector<16x128xf32>
    %c3_185 = arith.constant 3 : index
    %c0_186 = arith.constant 0 : index
    %c0_187 = arith.constant 0 : index
    %243 = vector.load %arg11[%c3_185, %c0_186, %c0_187] : memref<4x128x128xf32, #tpu.memory_space<vmem>>, vector<1x128x128xf32>
    %244 = vector.shape_cast %243 : vector<1x128x128xf32> to vector<128x128xf32>
    %cst_188 = arith.constant dense<0.000000e+00> : vector<8x128xf32>
    %245 = tpu.matmul %222, %244, %cst_188 {dimension_numbers = #tpu.dot_dimension_numbers<[1], [0], [0], [1], [0, 0, 1, 1], [], []>} : vector<8x128xf32>, vector<128x128xf32>, vector<8x128xf32> -> vector<8x128xf32>
    %c3_189 = arith.constant 3 : index
    %c0_190 = arith.constant 0 : index
    %c0_191 = arith.constant 0 : index
    %246 = vector.load %arg10[%c3_189, %c0_190, %c0_191] : memref<4x16x8xf32, #tpu.memory_space<vmem>>, vector<1x16x8xf32>
    %247 = vector.shape_cast %246 : vector<1x16x8xf32> to vector<16x8xf32>
    %cst_192 = arith.constant dense<0.000000e+00> : vector<16x128xf32>
    %248 = tpu.matmul %247, %245, %cst_192 {dimension_numbers = #tpu.dot_dimension_numbers<[1], [0], [0], [1], [0, 0, 1, 1], [], []>} : vector<16x8xf32>, vector<8x128xf32>, vector<16x128xf32> -> vector<16x128xf32>
    %249 = arith.addf %242, %248 : vector<16x128xf32>
    %c0_193 = arith.constant 0 : index
    %c0_194 = arith.constant 0 : index
    %250 = vector.load %arg14[%c0_193, %c0_194] : memref<128x128xf32, #tpu.memory_space<vmem>>, vector<128x128xf32>
    %c0_195 = arith.constant 0 : index
    %c0_196 = arith.constant 0 : index
    %251 = vector.load %arg20[%c0_195, %c0_196] : memref<2x128xf32, #tpu.memory_space<vmem>>, vector<2x128xf32>
    %cst_197 = arith.constant dense<0.000000e+00> : vector<128xf32>
    %252 = vector.multi_reduction <add>, %249, %cst_197 [0] : vector<16x128xf32> to vector<128xf32>
    %253 = vector.shape_cast %252 : vector<128xf32> to vector<1x128xf32>
    %254 = arith.mulf %249, %249 : vector<16x128xf32>
    %cst_198 = arith.constant dense<0.000000e+00> : vector<128xf32>
    %255 = vector.multi_reduction <add>, %254, %cst_198 [0] : vector<16x128xf32> to vector<128xf32>
    %256 = vector.shape_cast %255 : vector<128xf32> to vector<1x128xf32>
    %cst_199 = arith.constant dense<0.000000e+00> : vector<1x128xf32>
    %257 = tpu.matmul %253, %250, %cst_199 {dimension_numbers = #tpu.dot_dimension_numbers<[1], [0], [0], [1], [0, 0, 1, 1], [], []>} : vector<1x128xf32>, vector<128x128xf32>, vector<1x128xf32> -> vector<1x128xf32>
    %cst_200 = arith.constant 7.812500e-03 : f32
    %258 = vector.broadcast %cst_200 : f32 to vector<1x128xf32>
    %259 = arith.mulf %257, %258 : vector<1x128xf32>
    %cst_201 = arith.constant dense<0.000000e+00> : vector<1x128xf32>
    %260 = tpu.matmul %256, %250, %cst_201 {dimension_numbers = #tpu.dot_dimension_numbers<[1], [0], [0], [1], [0, 0, 1, 1], [], []>} : vector<1x128xf32>, vector<128x128xf32>, vector<1x128xf32> -> vector<1x128xf32>
    %cst_202 = arith.constant 7.812500e-03 : f32
    %261 = vector.broadcast %cst_202 : f32 to vector<1x128xf32>
    %262 = arith.mulf %260, %261 : vector<1x128xf32>
    %263 = arith.mulf %259, %259 : vector<1x128xf32>
    %264 = arith.subf %262, %263 : vector<1x128xf32>
    %cst_203 = arith.constant 0.000000e+00 : f32
    %265 = vector.broadcast %cst_203 : f32 to vector<1x128xf32>
    %266 = arith.maximumf %264, %265 : vector<1x128xf32>
    %267 = vector.extract_strided_slice %251 {offsets = [0, 0], sizes = [1, 128], strides = [1, 1]} : vector<2x128xf32> to vector<1x128xf32>
    %cst_204 = arith.constant 9.99999974E-6 : f32
    %268 = vector.broadcast %cst_204 : f32 to vector<1x128xf32>
    %269 = arith.addf %266, %268 : vector<1x128xf32>
    %270 = math.rsqrt %269 : vector<1x128xf32>
    %271 = arith.mulf %267, %270 : vector<1x128xf32>
    %272 = vector.extract_strided_slice %251 {offsets = [1, 0], sizes = [1, 128], strides = [1, 1]} : vector<2x128xf32> to vector<1x128xf32>
    %273 = arith.mulf %259, %271 : vector<1x128xf32>
    %274 = arith.subf %272, %273 : vector<1x128xf32>
    %275 = vector.broadcast %271 : vector<1x128xf32> to vector<16x128xf32>
    %276 = arith.mulf %249, %275 : vector<16x128xf32>
    %277 = vector.broadcast %274 : vector<1x128xf32> to vector<16x128xf32>
    %278 = arith.addf %276, %277 : vector<16x128xf32>
    %cst_205 = arith.constant 5.000000e-02 : f32
    %279 = vector.broadcast %cst_205 : f32 to vector<16x128xf32>
    %280 = arith.mulf %279, %278 : vector<16x128xf32>
    %281 = arith.maximumf %278, %280 : vector<16x128xf32>
    %c0_206 = arith.constant 0 : index
    %c0_207 = arith.constant 0 : index
    %c0_208 = arith.constant 0 : index
    %282 = vector.load %arg13[%c0_206, %c0_207, %c0_208] : memref<4x128x48xf32, #tpu.memory_space<vmem>>, vector<1x128x48xf32>
    %283 = vector.shape_cast %282 : vector<1x128x48xf32> to vector<128x48xf32>
    %cst_209 = arith.constant dense<0.000000e+00> : vector<16x48xf32>
    %284 = tpu.matmul %281, %283, %cst_209 {dimension_numbers = #tpu.dot_dimension_numbers<[1], [0], [0], [1], [0, 0, 1, 1], [], []>} : vector<16x128xf32>, vector<128x48xf32>, vector<16x48xf32> -> vector<16x48xf32>
    %c0_210 = arith.constant 0 : index
    %c0_211 = arith.constant 0 : index
    %c0_212 = arith.constant 0 : index
    %285 = vector.load %arg12[%c0_210, %c0_211, %c0_212] : memref<4x32x16xf32, #tpu.memory_space<vmem>>, vector<1x32x16xf32>
    %286 = vector.shape_cast %285 : vector<1x32x16xf32> to vector<32x16xf32>
    %cst_213 = arith.constant dense<0.000000e+00> : vector<32x48xf32>
    %287 = tpu.matmul %286, %284, %cst_213 {dimension_numbers = #tpu.dot_dimension_numbers<[1], [0], [0], [1], [0, 0, 1, 1], [], []>} : vector<32x16xf32>, vector<16x48xf32>, vector<32x48xf32> -> vector<32x48xf32>
    %c1_214 = arith.constant 1 : index
    %c0_215 = arith.constant 0 : index
    %c0_216 = arith.constant 0 : index
    %288 = vector.load %arg13[%c1_214, %c0_215, %c0_216] : memref<4x128x48xf32, #tpu.memory_space<vmem>>, vector<1x128x48xf32>
    %289 = vector.shape_cast %288 : vector<1x128x48xf32> to vector<128x48xf32>
    %cst_217 = arith.constant dense<0.000000e+00> : vector<16x48xf32>
    %290 = tpu.matmul %281, %289, %cst_217 {dimension_numbers = #tpu.dot_dimension_numbers<[1], [0], [0], [1], [0, 0, 1, 1], [], []>} : vector<16x128xf32>, vector<128x48xf32>, vector<16x48xf32> -> vector<16x48xf32>
    %c1_218 = arith.constant 1 : index
    %c0_219 = arith.constant 0 : index
    %c0_220 = arith.constant 0 : index
    %291 = vector.load %arg12[%c1_218, %c0_219, %c0_220] : memref<4x32x16xf32, #tpu.memory_space<vmem>>, vector<1x32x16xf32>
    %292 = vector.shape_cast %291 : vector<1x32x16xf32> to vector<32x16xf32>
    %cst_221 = arith.constant dense<0.000000e+00> : vector<32x48xf32>
    %293 = tpu.matmul %292, %290, %cst_221 {dimension_numbers = #tpu.dot_dimension_numbers<[1], [0], [0], [1], [0, 0, 1, 1], [], []>} : vector<32x16xf32>, vector<16x48xf32>, vector<32x48xf32> -> vector<32x48xf32>
    %294 = arith.addf %287, %293 : vector<32x48xf32>
    %c2_222 = arith.constant 2 : index
    %c0_223 = arith.constant 0 : index
    %c0_224 = arith.constant 0 : index
    %295 = vector.load %arg13[%c2_222, %c0_223, %c0_224] : memref<4x128x48xf32, #tpu.memory_space<vmem>>, vector<1x128x48xf32>
    %296 = vector.shape_cast %295 : vector<1x128x48xf32> to vector<128x48xf32>
    %cst_225 = arith.constant dense<0.000000e+00> : vector<16x48xf32>
    %297 = tpu.matmul %281, %296, %cst_225 {dimension_numbers = #tpu.dot_dimension_numbers<[1], [0], [0], [1], [0, 0, 1, 1], [], []>} : vector<16x128xf32>, vector<128x48xf32>, vector<16x48xf32> -> vector<16x48xf32>
    %c2_226 = arith.constant 2 : index
    %c0_227 = arith.constant 0 : index
    %c0_228 = arith.constant 0 : index
    %298 = vector.load %arg12[%c2_226, %c0_227, %c0_228] : memref<4x32x16xf32, #tpu.memory_space<vmem>>, vector<1x32x16xf32>
    %299 = vector.shape_cast %298 : vector<1x32x16xf32> to vector<32x16xf32>
    %cst_229 = arith.constant dense<0.000000e+00> : vector<32x48xf32>
    %300 = tpu.matmul %299, %297, %cst_229 {dimension_numbers = #tpu.dot_dimension_numbers<[1], [0], [0], [1], [0, 0, 1, 1], [], []>} : vector<32x16xf32>, vector<16x48xf32>, vector<32x48xf32> -> vector<32x48xf32>
    %301 = arith.addf %294, %300 : vector<32x48xf32>
    %c3_230 = arith.constant 3 : index
    %c0_231 = arith.constant 0 : index
    %c0_232 = arith.constant 0 : index
    %302 = vector.load %arg13[%c3_230, %c0_231, %c0_232] : memref<4x128x48xf32, #tpu.memory_space<vmem>>, vector<1x128x48xf32>
    %303 = vector.shape_cast %302 : vector<1x128x48xf32> to vector<128x48xf32>
    %cst_233 = arith.constant dense<0.000000e+00> : vector<16x48xf32>
    %304 = tpu.matmul %281, %303, %cst_233 {dimension_numbers = #tpu.dot_dimension_numbers<[1], [0], [0], [1], [0, 0, 1, 1], [], []>} : vector<16x128xf32>, vector<128x48xf32>, vector<16x48xf32> -> vector<16x48xf32>
    %c3_234 = arith.constant 3 : index
    %c0_235 = arith.constant 0 : index
    %c0_236 = arith.constant 0 : index
    %305 = vector.load %arg12[%c3_234, %c0_235, %c0_236] : memref<4x32x16xf32, #tpu.memory_space<vmem>>, vector<1x32x16xf32>
    %306 = vector.shape_cast %305 : vector<1x32x16xf32> to vector<32x16xf32>
    %cst_237 = arith.constant dense<0.000000e+00> : vector<32x48xf32>
    %307 = tpu.matmul %306, %304, %cst_237 {dimension_numbers = #tpu.dot_dimension_numbers<[1], [0], [0], [1], [0, 0, 1, 1], [], []>} : vector<32x16xf32>, vector<16x48xf32>, vector<32x48xf32> -> vector<32x48xf32>
    %308 = arith.addf %301, %307 : vector<32x48xf32>
    %309 = math.tanh %308 : vector<32x48xf32>
    %c0_238 = arith.constant 0 : index
    %c0_239 = arith.constant 0 : index
    %310 = vector.load %arg21[%c0_238, %c0_239] : memref<32x48xf32, #tpu.memory_space<vmem>>, vector<32x48xf32>
    tpu.vector_store %arg21[%c0_238, %c0_239], %309 {strides = array<i32>} : memref<32x48xf32, #tpu.memory_space<vmem>>, vector<32x48xf32>,
    return
  }
  func.func @transform_0(%arg0: i32) -> (i32, i32) {
    %c0_i32 = arith.constant 0 : i32
    %c0_i32_0 = arith.constant 0 : i32
    %c0_i32_1 = arith.constant 0 : i32
    return %c0_i32, %c0_i32_0 : i32, i32
  }
  func.func @transform_1(%arg0: i32) -> (i32, i32, i32) {
    %c0_i32 = arith.constant 0 : i32
    %c0_i32_0 = arith.constant 0 : i32
    %c0_i32_1 = arith.constant 0 : i32
    %c0_i32_2 = arith.constant 0 : i32
    return %c0_i32, %c0_i32_0, %c0_i32_1 : i32, i32, i32
  }
  func.func @transform_2(%arg0: i32) -> (i32, i32, i32) {
    %c0_i32 = arith.constant 0 : i32
    %c0_i32_0 = arith.constant 0 : i32
    %c0_i32_1 = arith.constant 0 : i32
    %c0_i32_2 = arith.constant 0 : i32
    return %c0_i32, %c0_i32_0, %c0_i32_1 : i32, i32, i32
  }
  func.func @transform_3(%arg0: i32) -> (i32, i32, i32) {
    %c0_i32 = arith.constant 0 : i32
    %c0_i32_0 = arith.constant 0 : i32
    %c0_i32_1 = arith.constant 0 : i32
    %c0_i32_2 = arith.constant 0 : i32
    return %c0_i32, %c0_i32_0, %c0_i32_1 : i32, i32, i32
  }
  func.func @transform_4(%arg0: i32) -> (i32, i32, i32) {
    %c0_i32 = arith.constant 0 : i32
    %c0_i32_0 = arith.constant 0 : i32
    %c0_i32_1 = arith.constant 0 : i32
    %c0_i32_2 = arith.constant 0 : i32
    return %c0_i32, %c0_i32_0, %c0_i32_1 : i32, i32, i32
  }
  func.func @transform_5(%arg0: i32) -> (i32, i32, i32) {
    %c0_i32 = arith.constant 0 : i32
    %c0_i32_0 = arith.constant 0 : i32
    %c0_i32_1 = arith.constant 0 : i32
    %c0_i32_2 = arith.constant 0 : i32
    return %c0_i32, %c0_i32_0, %c0_i32_1 : i32, i32, i32
  }
  func.func @transform_6(%arg0: i32) -> (i32, i32, i32) {
    %c0_i32 = arith.constant 0 : i32
    %c0_i32_0 = arith.constant 0 : i32
    %c0_i32_1 = arith.constant 0 : i32
    %c0_i32_2 = arith.constant 0 : i32
    return %c0_i32, %c0_i32_0, %c0_i32_1 : i32, i32, i32
  }
  func.func @transform_7(%arg0: i32) -> (i32, i32, i32) {
    %c0_i32 = arith.constant 0 : i32
    %c0_i32_0 = arith.constant 0 : i32
    %c0_i32_1 = arith.constant 0 : i32
    %c0_i32_2 = arith.constant 0 : i32
    return %c0_i32, %c0_i32_0, %c0_i32_1 : i32, i32, i32
  }
  func.func @transform_8(%arg0: i32) -> (i32, i32, i32) {
    %c0_i32 = arith.constant 0 : i32
    %c0_i32_0 = arith.constant 0 : i32
    %c0_i32_1 = arith.constant 0 : i32
    %c0_i32_2 = arith.constant 0 : i32
    return %c0_i32, %c0_i32_0, %c0_i32_1 : i32, i32, i32
  }
  func.func @transform_9(%arg0: i32) -> (i32, i32, i32) {
    %c0_i32 = arith.constant 0 : i32
    %c0_i32_0 = arith.constant 0 : i32
    %c0_i32_1 = arith.constant 0 : i32
    %c0_i32_2 = arith.constant 0 : i32
    return %c0_i32, %c0_i32_0, %c0_i32_1 : i32, i32, i32
  }
  func.func @transform_10(%arg0: i32) -> (i32, i32, i32) {
    %c0_i32 = arith.constant 0 : i32
    %c0_i32_0 = arith.constant 0 : i32
    %c0_i32_1 = arith.constant 0 : i32
    %c0_i32_2 = arith.constant 0 : i32
    return %c0_i32, %c0_i32_0, %c0_i32_1 : i32, i32, i32
  }
  func.func @transform_11(%arg0: i32) -> (i32, i32, i32) {
    %c0_i32 = arith.constant 0 : i32
    %c0_i32_0 = arith.constant 0 : i32
    %c0_i32_1 = arith.constant 0 : i32
    %c0_i32_2 = arith.constant 0 : i32
    return %c0_i32, %c0_i32_0, %c0_i32_1 : i32, i32, i32
  }
  func.func @transform_12(%arg0: i32) -> (i32, i32, i32) {
    %c0_i32 = arith.constant 0 : i32
    %c0_i32_0 = arith.constant 0 : i32
    %c0_i32_1 = arith.constant 0 : i32
    %c0_i32_2 = arith.constant 0 : i32
    return %c0_i32, %c0_i32_0, %c0_i32_1 : i32, i32, i32
  }
  func.func @transform_13(%arg0: i32) -> (i32, i32) {
    %c0_i32 = arith.constant 0 : i32
    %c0_i32_0 = arith.constant 0 : i32
    %c0_i32_1 = arith.constant 0 : i32
    return %c0_i32, %c0_i32_0 : i32, i32
  }
  func.func @transform_14(%arg0: i32) -> (i32, i32) {
    %c0_i32 = arith.constant 0 : i32
    %c0_i32_0 = arith.constant 0 : i32
    %c0_i32_1 = arith.constant 0 : i32
    return %c0_i32, %c0_i32_0 : i32, i32
  }
  func.func @transform_15(%arg0: i32) -> (i32, i32) {
    %c0_i32 = arith.constant 0 : i32
    %c0_i32_0 = arith.constant 0 : i32
    %c0_i32_1 = arith.constant 0 : i32
    return %c0_i32, %c0_i32_0 : i32, i32
  }
  func.func @transform_16(%arg0: i32) -> (i32, i32) {
    %c0_i32 = arith.constant 0 : i32
    %c0_i32_0 = arith.constant 0 : i32
    %c0_i32_1 = arith.constant 0 : i32
    return %c0_i32, %c0_i32_0 : i32, i32
  }
  func.func @transform_17(%arg0: i32) -> (i32, i32) {
    %c0_i32 = arith.constant 0 : i32
    %c0_i32_0 = arith.constant 0 : i32
    %c0_i32_1 = arith.constant 0 : i32
    return %c0_i32, %c0_i32_0 : i32, i32
  }
  func.func @transform_18(%arg0: i32) -> (i32, i32) {
    %c0_i32 = arith.constant 0 : i32
    %c0_i32_0 = arith.constant 0 : i32
    %c0_i32_1 = arith.constant 0 : i32
    return %c0_i32, %c0_i32_0 : i32, i32
  }
  func.func @transform_19(%arg0: i32) -> (i32, i32) {
    %c0_i32 = arith.constant 0 : i32
    %c0_i32_0 = arith.constant 0 : i32
    %c0_i32_1 = arith.constant 0 : i32
    return %c0_i32, %c0_i32_0 : i32, i32
  }
  func.func @transform_20(%arg0: i32) -> (i32, i32) {
    %c0_i32 = arith.constant 0 : i32
    %c0_i32_0 = arith.constant 0 : i32
    %c0_i32_1 = arith.constant 0 : i32
    return %c0_i32, %c0_i32_0 : i32, i32
  }
}

</mosaic_0001>

<bundles_post_ra>
// kernel: forward.1
= control target key start
LH: loop header
LB: loop body
LE: loop exit
PB: predicated region body
PF: predicated region fallthrough
CT: control target
= control target key end

     0   :  { %s3821_s0 = inlined_call_operand.vmem [shape: f32[32,48], index: 0, kind: input, shape index: {}]   ;;  %s3822_s1 = inlined_call_operand.hbm [shape: f32[4,16,32], index: 1, kind: input, shape index: {}]   ;;  %s3823_s2 = inlined_call_operand.hbm [shape: f32[4,48,128], index: 2, kind: input, shape index: {}]   ;;  %s3824_s3 = inlined_call_operand.vmem [shape: f32[4,8,16], index: 3, kind: input, shape index: {}]   ;;  %s3825_s4 = inlined_call_operand.vmem [shape: f32[4,128,128], index: 4, kind: input, shape index: {}]   ;;  %s3826_s5 = inlined_call_operand.hbm [shape: f32[3,8,8], index: 5, kind: input, shape index: {}]   ;;  %s3827_s6 = inlined_call_operand.vmem [shape: f32[3,128,128], index: 6, kind: input, shape index: {}]   ;;  %s3828_s7 = inlined_call_operand.hbm [shape: f32[3,8,8], index: 7, kind: input, shape index: {}]   ;;  %s3829_s8 = inlined_call_operand.hbm [shape: f32[3,128,128], index: 8, kind: input, shape index: {}]   ;;  %s3830_s9 = inlined_call_operand.vmem [shape: f32[4,16,8], index: 9, kind: input, shape index: {}]   ;;  %s3831_s10 = inlined_call_operand.hbm [shape: f32[4,128,128], index: 10, kind: input, shape index: {}]   ;;  %s3832_s11 = inlined_call_operand.vmem [shape: f32[4,32,16], index: 11, kind: input, shape index: {}]   ;;  %s3833_s12 = inlined_call_operand.vmem [shape: f32[4,128,48], index: 12, kind: input, shape index: {}]   ;;  %s3834_s13 = inlined_call_operand.vmem [shape: f32[128,128], index: 13, kind: input, shape index: {}]   ;;  %s3835_s14 = inlined_call_operand.hbm [shape: f32[128,128], index: 14, kind: input, shape index: {}]   ;;  %s3836_s15 = inlined_call_operand.vmem [shape: f32[2,128], index: 15, kind: input, shape index: {}]   ;;  %s3837_s16 = inlined_call_operand.vmem [shape: f32[2,128], index: 16, kind: input, shape index: {}]   ;;  %s3838_s17 = inlined_call_operand.vmem [shape: f32[2,128], index: 17, kind: input, shape index: {}]   ;;  %s3839_s18 = inlined_call_operand.vmem [shape: f32[2,128], index: 18, kind: input, shape index: {}]   ;;  %s3840_s19 = inlined_call_operand.vmem [shape: f32[2,128], index: 19, kind: input, shape index: {}]   ;;  %s3841_s20 = inlined_call_operand.vmem [shape: f32[32,48], index: 20, kind: output, shape index: {}]  }
   0x1   :  { %3845 = sst [smem:[#allocation17_spill]] %s3821_s0 }
   0x2   :  { %3846 = sst [smem:[#allocation18_spill]] %s3822_s1 }
   0x3   :  { %3847 = sst [smem:[#allocation19_spill]] %s3823_s2 }
   0x4   :  { %3848 = sst [smem:[#allocation20_spill]] %s3824_s3 }
   0x5   :  { %3849 = sst [smem:[#allocation21_spill]] %s3825_s4 }
   0x6   :  { %25 = vsyncpa [#allocation3], 0 }
   0x7   :  { %26 = vsyncpa [#allocation5], 0 }
   0x8   :  { %27 = vsyncpa [#allocation8], 0 }
   0x9   :  { %28 = vsyncpa [#allocation11], 0  ;;  %s3850_s23 = sld [smem:[#allocation19_spill]]  ;;  %s2624_s2 = smov [#allocation4]  }
   0xa   :  { %s50_s25 = sshll.u32 %s2624_s2, 4  ;;  %s80_s27 = sshll.u32 %s3828_s7, 4  ;;  %s51_s25 = int_to_ptr.vmem [resolvable:$true] %s50_s25  ;;  %s81_s27 = int_to_ptr.hbm [resolvable:$true] %s80_s27 }
   0xb   :  { %s2625_s28 = smov 128   ;;  %s2626_s4 = smov 8  }
   0xc   :  { %s2627_s29 = smov [#allocation7]   ;;  %s108_s1 = sshll.u32 %s3831_s10, 4  ;;  %s109_s1 = int_to_ptr.hbm [resolvable:$true] %s108_s1 }
   0xd   :  { %s82_s30 = sshll.u32 %s2627_s29, 4  ;;  %s2628_s3 = smov [#allocation10]   ;;  %s83_s30 = int_to_ptr.vmem [resolvable:$true] %s82_s30 }
   0xe   :  { %88 = dma.hbm_to_vmem [thread:$0]  %s81_s27, 384, %s83_s30, [#allocation8], %s2625_s28, %s2625_s28, %s2626_s4  }
   0xf   :  { %s48_s24 = sshll.u32 %s3850_s23, 4  ;;  %s3851_s23 = sld [smem:[#allocation18_spill]]  ;;  %s49_s24 = int_to_ptr.hbm [resolvable:$true] %s48_s24 }
  0x10   :  { %56 = dma.hbm_to_vmem [thread:$0]  %s49_s24, 3072, %s51_s25, [#allocation5], %s2625_s28, %s2625_s28, %s2626_s4  }
  0x11   :  { %s110_s26 = sshll.u32 %s2628_s3, 4  ;;  %s2629_s24 = smov [#allocation2]   ;;  %s111_s26 = int_to_ptr.vmem [resolvable:$true] %s110_s26 }
  0x12   :  { %116 = dma.hbm_to_vmem [thread:$0]  %s109_s1, 8192, %s111_s26, [#allocation11], %s2625_s28, %s2625_s28, %s2626_s4  }
  0x13   :  { %s37_s10 = sshll.u32 %s2629_s24, 4  ;;  %s65_s0 = sshll.u32 %s3826_s5, 4  ;;  %s38_s10 = int_to_ptr.vmem [resolvable:$true] %s37_s10  ;;  %s66_s0 = int_to_ptr.hbm [resolvable:$true] %s65_s0 }
  0x14   :  { %s93_s21 = sshll.u32 %s3829_s8, 4  ;;  %s2630_s7 = smov [#allocation6]   ;;  %s94_s21 = int_to_ptr.hbm [resolvable:$true] %s93_s21 }
  0x15   :  { %s35_s2 = sshll.u32 %s3851_s23, 4  ;;  %s67_s22 = sshll.u32 %s2630_s7, 4  ;;  %s36_s2 = int_to_ptr.hbm [resolvable:$true] %s35_s2  ;;  %s68_s22 = int_to_ptr.vmem [resolvable:$true] %s67_s22 }
  0x16   :  { %43 = dma.hbm_to_vmem [thread:$0]  %s36_s2, 1024, %s38_s10, [#allocation3], %s2625_s28, %s2625_s28, %s2626_s4  }
  0x17   :  { %73 = dma.hbm_to_vmem [thread:$0]  %s66_s0, 384, %s68_s22, [#allocation5], %s2625_s28, %s2625_s28, %s2626_s4  }
  0x18   :  { %s2631_s1 = smov [#allocation9]   ;;  %s127_s26 = sshll.u32 %s3835_s14, 4  ;;  %s128_s26 = int_to_ptr.hbm [resolvable:$true] %s127_s26 }
  0x19   :  { %s95_s5 = sshll.u32 %s2631_s1, 4  ;;  %s2632_s8 = smov [#allocation12]   ;;  %s96_s5 = int_to_ptr.vmem [resolvable:$true] %s95_s5 }
  0x1a   :  { %101 = dma.hbm_to_vmem [thread:$0]  %s94_s21, 6144, %s96_s5, [#allocation8], %s2625_s28, %s2625_s28, %s2626_s4  }
  0x1b   :  { %s129_s2 = sshll.u32 %s2632_s8, 4  ;;  %s130_s2 = int_to_ptr.vmem [resolvable:$true] %s129_s2 }
  0x1c   :  { %135 = dma.hbm_to_vmem [thread:$0]  %s128_s26, 2048, %s130_s2, [#allocation11], %s2625_s28, %s2625_s28, %s2626_s4  }
  0x1d   :  { %2616 = dma.done.wait [#allocation3], 1024  }
  0x1e   :  { %2617 = vsyncadd [#allocation3], 4294966272 }
  0x1f   :  { %2618 = dma.done.wait [#allocation5], 3456  }
  0x20   :  { %2619 = vsyncadd [#allocation5], 4294963840 }
  0x21   :  { %2620 = dma.done.wait [#allocation8], 6528  }
  0x22   :  { %2621 = vsyncadd [#allocation8], 4294960768 }
  0x23   :  { %2622 = dma.done.wait [#allocation11], 10240  }
  0x24   :  { %2623 = vsyncadd [#allocation11], 4294957056  ;;  %v183_v0 = vld [vmem:[#allocation4 + $0x28] sm:$0xff]  ;;  %v234_v1 = vld [vmem:[#allocation4 + $0x58] sm:$0xff]  ;;  %s3852_s4 = sld [smem:[#allocation17_spill]]  ;;  %vm184_vm0 = vcmask 392192  }
  0x25   :  { %v182_v2 = vld [vmem:[#allocation4 + $0x20] sm:$0xff]  ;;  %207 = vmatpush.msra.mxu0 %v183_v0  ;;  %245 = vmatpush.msra.mxu1 %v234_v1  ;;  %v233_v3 = vld [vmem:[#allocation4 + $0x50] sm:$0xff]  ;;  %v181_v4 = vld [vmem:[#allocation4 + $0x18] sm:$0xff]  ;;  %vm267_vm1 = vcmask 261120   ;;  %s3853_s24 = sld [smem:[#allocation21_spill]]  ;;  %vm653_vm5 = vcmask 130048  }
  0x26   :  { %v232_v5 = vld [vmem:[#allocation4 + $0x48] sm:$0xff]  ;;  %v180_v6 = vld [vmem:[#allocation4 + $0x10] sm:$0xff]  ;;  %v231_v7 = vld [vmem:[#allocation4 + $0x40] sm:$0xff]  ;;  %s3854_s29 = sld [smem:[#allocation20_spill]]  ;;  %vm1006_vm9 = vcmask 64512  }
  0x27   :  { %208 = vmatpush.msra.mxu0 %v182_v2  ;;  %246 = vmatpush.msra.mxu1 %v233_v3  ;;  %v179_v8 = vld [vmem:[#allocation4 + $0x8] sm:$0xff]  ;;  %v230_v9 = vld [vmem:[#allocation4 + $0x38] sm:$0xff]  ;;  %v178_v10 = vld [vmem:[#allocation4] sm:$0xff] }
  0x28   :  { %v229_v11 = vld [vmem:[#allocation4 + $0x30] sm:$0xff]  ;;  %v226_v25 = vld [vmem:[#allocation2] sm:$0xff]  ;;  %v332_v26 = vld [vmem:[#allocation4 + $0x88] sm:$0xff] }
  0x29   :  { %209 = vmatpush.msra.mxu0 %v181_v4  ;;  %247 = vmatpush.msra.mxu1 %v232_v5  ;;  %v265_v24 = vld [vmem:[#allocation2 + $0x10] sm:$0xff]  ;;  %v331_v27 = vld [vmem:[#allocation4 + $0x80] sm:$0xff]  ;;  %v330_v28 = vld [vmem:[#allocation4 + $0x78] sm:$0xff] }
  0x2a   :  { %v2783_v12 = vld [vmem:[%s3852_s4] sm:$0xff]  ;;  %v2792_v13 = vld [vmem:[%s3852_s4 + $0x8] sm:$0xff]  ;;  %v2801_v14 = vld [vmem:[%s3852_s4 + $0x10] sm:$0xff] }
  0x2b   :  { %210 = vmatpush.msra.mxu0 %v180_v6  ;;  %248 = vmatpush.msra.mxu1 %v231_v7  ;;  %v2810_v15 = vld [vmem:[%s3852_s4 + $0x18] sm:$0xff]  ;;  %v329_v29 = vld [vmem:[#allocation4 + $0x70] sm:$0xff]  ;;  %v227_v31 = vld [vmem:[#allocation2 + $0x8] sm:$0xff] }
  0x2c   :  { %v266_v30 = vld [vmem:[#allocation2 + $0x18] sm:$0xff]  ;;  %v328_v32 = vld [vmem:[#allocation4 + $0x68] sm:$0xff]  ;;  %v327_v33 = vld [vmem:[#allocation4 + $0x60] sm:$0xff] }
  0x2d   :  { %211 = vmatpush.msra.mxu0 %v179_v8  ;;  %249 = vmatpush.msra.mxu1 %v230_v9  ;;  %v363_v40 = vld [vmem:[#allocation2 + $0x20] sm:$0xff]  ;;  %v402_v41 = vld [vmem:[#allocation4 + $0xb8] sm:$0xff]  ;;  %v401_v42 = vld [vmem:[#allocation4 + $0xb0] sm:$0xff] }
  0x2e   :  { %v400_v43 = vld [vmem:[#allocation4 + $0xa8] sm:$0xff]  ;;  %v399_v44 = vld [vmem:[#allocation4 + $0xa0] sm:$0xff]  ;;  %v398_v46 = vld [vmem:[#allocation4 + $0x98] sm:$0xff] }
  0x2f   :  { %212 = vmatpush.msra.mxu0 %v178_v10  ;;  %250 = vmatpush.msra.mxu1 %v229_v11  ;;  %v364_v45 = vld [vmem:[#allocation2 + $0x28] sm:$0xff]  ;;  %v397_v47 = vld [vmem:[#allocation4 + $0x90] sm:$0xff]  ;;  %v481_v58 = vld [vmem:[%s3834_s13 + $0x78] sm:$0xff] }
  0x30   :  { %2198 = vmatmul.msk.f32.vlgmr.msra.gmra.mxu0 %vm184_vm0, %v2783_v12  ;;  %2202 = vmatmul.msk.f32.vlgmr.msra.gmra.mxu1 %vm184_vm0, %v2783_v12  ;;  %v480_v59 = vld [vmem:[%s3834_s13 + $0x70] sm:$0xff]  ;;  %v479_v60 = vld [vmem:[%s3834_s13 + $0x68] sm:$0xff]  ;;  %v434_v0 = vld [vmem:[#allocation2 + $0x38] sm:$0xff] }
  0x31   :  { %499 = vmatpush.msrb.mxu1 %v481_v58  ;;  %v433_v63 = vld [vmem:[#allocation2 + $0x30] sm:$0xff]  ;;  %v478_v1 = vld [vmem:[%s3834_s13 + $0x60] sm:$0xff]  ;;  %v477_v2 = vld [vmem:[%s3834_s13 + $0x58] sm:$0xff] }
  0x32   :  { %v476_v3 = vld [vmem:[%s3834_s13 + $0x50] sm:$0xff]  ;;  %v475_v4 = vld [vmem:[%s3834_s13 + $0x48] sm:$0xff]  ;;  %v474_v5 = vld [vmem:[%s3834_s13 + $0x40] sm:$0xff] }
  0x33   :  { %500 = vmatpush.msrb.mxu1 %v480_v59  ;;  %v473_v6 = vld [vmem:[%s3834_s13 + $0x38] sm:$0xff]  ;;  %v472_v7 = vld [vmem:[%s3834_s13 + $0x30] sm:$0xff]  ;;  %v471_v8 = vld [vmem:[%s3834_s13 + $0x28] sm:$0xff] }
  0x34   :  { %v470_v9 = vld [vmem:[%s3834_s13 + $0x20] sm:$0xff]  ;;  %v469_v10 = vld [vmem:[%s3834_s13 + $0x18] sm:$0xff]  ;;  %v468_v11 = vld [vmem:[%s3834_s13 + $0x10] sm:$0xff] }
  0x35   :  { %501 = vmatpush.msrb.mxu1 %v479_v60 }
  0x37   :  { %502 = vmatpush.msrb.mxu1 %v478_v1 }
  0x38   :  { %2199 = vmatmul.msk.f32.gmra.mxu0 %vm184_vm0, %v2792_v13  ;;  %2203 = vmatmul.msk.f32.gmra.mxu1 %vm184_vm0, %v2792_v13 }
  0x39   :  { %503 = vmatpush.msrb.mxu1 %v477_v2 }
  0x3b   :  { %504 = vmatpush.msrb.mxu1 %v476_v3 }
  0x3d   :  { %505 = vmatpush.msrb.mxu1 %v475_v4 }
  0x3f   :  { %506 = vmatpush.msrb.mxu1 %v474_v5 }
  0x40   :  { %2200 = vmatmul.msk.f32.gmra.mxu0 %vm184_vm0, %v2801_v14  ;;  %2204 = vmatmul.msk.f32.gmra.mxu1 %vm184_vm0, %v2801_v14 }
  0x41   :  { %507 = vmatpush.msrb.mxu1 %v473_v6 }
  0x43   :  { %508 = vmatpush.msrb.mxu1 %v472_v7 }
  0x45   :  { %509 = vmatpush.msrb.mxu1 %v471_v8 }
  0x47   :  { %510 = vmatpush.msrb.mxu1 %v470_v9 }
  0x48   :  { %2201 = vmatmul.msk.f32.gmra.mxu0 %vm184_vm0, %v2810_v15  ;;  %2205 = vmatmul.msk.f32.gmra.mxu1 %vm184_vm0, %v2810_v15 }
  0x49   :  { %511 = vmatpush.msrb.mxu1 %v469_v10 }
  0x4b   :  { %512 = vmatpush.msrb.mxu1 %v468_v11 }
  0xad   :  { %v214_v16 = vpop.f32.mrf.mxu0  ;;  %v252_v17 = vpop.f32.mrf.mxu1 }
  0xb5   :  { %v217_v18 = vpop.f32.mrf.mxu0  ;;  %v255_v19 = vpop.f32.mrf.mxu1 }
  0xbd   :  { %v220_v20 = vpop.f32.mrf.mxu0  ;;  %v258_v21 = vpop.f32.mrf.mxu1 }
  0xc5   :  { %v223_v22 = vpop.f32.mrf.mxu0  ;;  %v261_v23 = vpop.f32.mrf.mxu1 }
  0xc6   :  { %286 = vmatpush.msra.mxu2 %v261_v23  ;;  %315 = vmatpush.msra.mxu3 %v223_v22 }
  0xc8   :  { %287 = vmatpush.msra.mxu2 %v258_v21  ;;  %316 = vmatpush.msra.mxu3 %v220_v20 }
  0xca   :  { %288 = vmatpush.msra.mxu2 %v255_v19  ;;  %317 = vmatpush.msra.mxu3 %v217_v18 }
  0xcc   :  { %289 = vmatpush.msra.mxu2 %v252_v17  ;;  %318 = vmatpush.msra.mxu3 %v214_v16 }
  0xcd   :  { %2206 = vmatmul.msk.f32.vlgmr.msra.gmra.mxu2 %vm267_vm1, %v265_v24  ;;  %2208 = vmatmul.msk.f32.vlgmr.msra.gmra.mxu3 %vm267_vm1, %v226_v25 }
  0xce   :  { %343 = vmatpush.msrb.mxu2 %v332_v26 }
  0xd0   :  { %344 = vmatpush.msrb.mxu2 %v331_v27 }
  0xd2   :  { %345 = vmatpush.msrb.mxu2 %v330_v28 }
  0xd4   :  { %346 = vmatpush.msrb.mxu2 %v329_v29 }
  0xd5   :  { %2207 = vmatmul.msk.f32.gmra.mxu2 %vm267_vm1, %v266_v30  ;;  %2209 = vmatmul.msk.f32.gmra.mxu3 %vm267_vm1, %v227_v31 }
  0xd6   :  { %347 = vmatpush.msrb.mxu2 %v328_v32 }
  0xd8   :  { %348 = vmatpush.msrb.mxu2 %v327_v33 }
  0xda   :  { %520 = vmatpush.msra.mxu2 %v481_v58 }
  0xdc   :  { %521 = vmatpush.msra.mxu2 %v480_v59  ;;  %v578_v59 = vld [vmem:[%s3853_s24 + $0x38] sm:$0xff] }
  0xdd   :  { %2210 = vmatmul.msk.f32.vlgmr.msrb.gmra.mxu2 %vm184_vm0, %v2783_v12 }
  0xde   :  { %522 = vmatpush.msra.mxu2 %v479_v60  ;;  %v2229_v60 = vld [vmem:[%s3853_s24 + $0xb8] sm:$0xff] }
  0xe0   :  { %523 = vmatpush.msra.mxu2 %v478_v1  ;;  %v2247_v1 = vld [vmem:[%s3853_s24 + $0x130] sm:$0xff] }
  0xe2   :  { %524 = vmatpush.msra.mxu2 %v477_v2  ;;  %v576_v2 = vld [vmem:[%s3853_s24 + $0x28] sm:$0xff] }
  0xe4   :  { %525 = vmatpush.msra.mxu2 %v476_v3  ;;  %v2227_v3 = vld [vmem:[%s3853_s24 + $0xa8] sm:$0xff] }
  0xe5   :  { %2211 = vmatmul.msk.f32.gmra.mxu2 %vm184_vm0, %v2792_v13 }
  0xe6   :  { %526 = vmatpush.msra.mxu2 %v475_v4  ;;  %v2246_v4 = vld [vmem:[%s3853_s24 + $0x128] sm:$0xff] }
  0xe8   :  { %527 = vmatpush.msra.mxu2 %v474_v5  ;;  %v575_v5 = vld [vmem:[%s3853_s24 + $0x20] sm:$0xff] }
  0xea   :  { %528 = vmatpush.msra.mxu2 %v473_v6  ;;  %v2226_v6 = vld [vmem:[%s3853_s24 + $0xa0] sm:$0xff] }
  0xec   :  { %529 = vmatpush.msra.mxu2 %v472_v7 }
  0xed   :  { %2212 = vmatmul.msk.f32.gmra.mxu2 %vm184_vm0, %v2801_v14 }
  0xee   :  { %530 = vmatpush.msra.mxu2 %v471_v8  ;;  %v2245_v8 = vld [vmem:[%s3853_s24 + $0x120] sm:$0xff] }
  0xf0   :  { %531 = vmatpush.msra.mxu2 %v470_v9 }
  0xf2   :  { %532 = vmatpush.msra.mxu2 %v469_v10 }
  0xf4   :  { %533 = vmatpush.msra.mxu2 %v468_v11  ;;  %v574_v11 = vld [vmem:[%s3853_s24 + $0x18] sm:$0xff] }
  0xf5   :  { %2213 = vmatmul.msk.f32.gmra.mxu2 %vm184_vm0, %v2810_v15 }
 0x150   :  { %v291_v34 = vpop.f32.mrf.mxu2  ;;  %v320_v48 = vpop.f32.mrf.mxu3 }
 0x151   :  { %v321_v50 = vadd.f32 %v320_v48, %v291_v34  ;;  %v586_v34 = vld [vmem:[%s3853_s24 + $0x78] sm:$0xff] }
 0x152   :  { %v2252_v48 = vld [vmem:[%s3853_s24 + $0x158] sm:$0xff] }
 0x158   :  { %v294_v35 = vpop.f32.mrf.mxu2  ;;  %v323_v49 = vpop.f32.mrf.mxu3 }
 0x159   :  { %v324_v53 = vadd.f32 %v323_v49, %v294_v35  ;;  %v2237_v35 = vld [vmem:[%s3853_s24 + $0xf8] sm:$0xff]  ;;  %v581_v49 = vld [vmem:[%s3853_s24 + $0x50] sm:$0xff] }
 0x160   :  { %v350_v36 = vpop.f32.mrf.mxu2 }
 0x168   :  { %v353_v37 = vpop.f32.mrf.mxu2 }
 0x170   :  { %v356_v38 = vpop.f32.mrf.mxu2 }
 0x178   :  { %v359_v39 = vpop.f32.mrf.mxu2 }
 0x179   :  { %383 = vmatpush.msrb.mxu3 %v359_v39  ;;  %v2255_v39 = vld [vmem:[%s3853_s24 + $0x170] sm:$0xff] }
 0x17b   :  { %384 = vmatpush.msrb.mxu3 %v356_v38  ;;  %v2236_v38 = vld [vmem:[%s3853_s24 + $0xf0] sm:$0xff] }
 0x17d   :  { %385 = vmatpush.msrb.mxu3 %v353_v37  ;;  %v585_v37 = vld [vmem:[%s3853_s24 + $0x70] sm:$0xff] }
 0x17f   :  { %386 = vmatpush.msrb.mxu3 %v350_v36  ;;  %v2256_v36 = vld [vmem:[%s3853_s24 + $0x178] sm:$0xff] }
 0x180   :  { %2214 = vmatmul.msk.f32.vlgmr.msrb.gmra.mxu3 %vm267_vm1, %v363_v40  ;;  %v584_v40 = vld [vmem:[%s3853_s24 + $0x68] sm:$0xff] }
 0x181   :  { %413 = vmatpush.msra.mxu3 %v402_v41  ;;  %v2235_v41 = vld [vmem:[%s3853_s24 + $0xe8] sm:$0xff] }
 0x183   :  { %414 = vmatpush.msra.mxu3 %v401_v42  ;;  %v2254_v42 = vld [vmem:[%s3853_s24 + $0x168] sm:$0xff] }
 0x185   :  { %415 = vmatpush.msra.mxu3 %v400_v43  ;;  %v583_v43 = vld [vmem:[%s3853_s24 + $0x60] sm:$0xff] }
 0x187   :  { %416 = vmatpush.msra.mxu3 %v399_v44  ;;  %v2234_v44 = vld [vmem:[%s3853_s24 + $0xe0] sm:$0xff] }
 0x188   :  { %2215 = vmatmul.msk.f32.gmra.mxu3 %vm267_vm1, %v364_v45  ;;  %v2253_v45 = vld [vmem:[%s3853_s24 + $0x160] sm:$0xff] }
 0x189   :  { %417 = vmatpush.msra.mxu3 %v398_v46  ;;  %v582_v46 = vld [vmem:[%s3853_s24 + $0x58] sm:$0xff] }
 0x18b   :  { %418 = vmatpush.msra.mxu3 %v397_v47  ;;  %v2233_v47 = vld [vmem:[%s3853_s24 + $0xd8] sm:$0xff] }
 0x18d   :  { %587 = vmatpush.msrb.mxu3 %v586_v34 }
 0x18f   :  { %588 = vmatpush.msrb.mxu3 %v585_v37 }
 0x190   :  { %2216 = vmatmul.msk.f32.vlgmr.msra.gmra.mxu3 %vm184_vm0, %v2783_v12  ;;  %v467_v12 = vld [vmem:[%s3834_s13 + $0x8] sm:$0xff] }
 0x191   :  { %513 = vmatpush.msrb.mxu1 %v467_v12  ;;  %534 = vmatpush.msra.mxu2 %v467_v12  ;;  %v2225_v12 = vld [vmem:[%s3853_s24 + $0x98] sm:$0xff] }
 0x192   :  { %589 = vmatpush.msrb.mxu3 %v584_v40 }
 0x194   :  { %590 = vmatpush.msrb.mxu3 %v583_v43 }
 0x196   :  { %591 = vmatpush.msrb.mxu3 %v582_v46 }
 0x198   :  { %2217 = vmatmul.msk.f32.gmra.mxu3 %vm184_vm0, %v2792_v13  ;;  %v466_v13 = vld [vmem:[%s3834_s13] sm:$0xff] }
 0x199   :  { %514 = vmatpush.msrb.mxu1 %v466_v13  ;;  %535 = vmatpush.msra.mxu2 %v466_v13  ;;  %v2244_v13 = vld [vmem:[%s3853_s24 + $0x118] sm:$0xff] }
 0x19a   :  { %592 = vmatpush.msrb.mxu3 %v581_v49 }
 0x19b   :  { %717 = vmatpush.msrb.mxu2 %v2256_v36 }
 0x19d   :  { %718 = vmatpush.msrb.mxu2 %v2255_v39 }
 0x19f   :  { %719 = vmatpush.msrb.mxu2 %v2254_v42 }
 0x1a0   :  { %2218 = vmatmul.msk.f32.gmra.mxu3 %vm184_vm0, %v2801_v14 }
 0x1a1   :  { %720 = vmatpush.msrb.mxu2 %v2253_v45 }
 0x1a3   :  { %721 = vmatpush.msrb.mxu2 %v2252_v48 }
 0x1a8   :  { %2219 = vmatmul.msk.f32.gmra.mxu3 %vm184_vm0, %v2810_v15 }
 0x203   :  { %v388_v51 = vpop.f32.mrf.mxu3 }
 0x204   :  { %v2838_v52 = vadd.f32 %v388_v51, %v321_v50  ;;  %v2232_v50 = vld [vmem:[%s3853_s24 + $0xd0] sm:$0xff] }
 0x205   :  { %v2251_v51 = vld [vmem:[%s3853_s24 + $0x150] sm:$0xff] }
 0x206   :  { %722 = vmatpush.msrb.mxu2 %v2251_v51 }
 0x20b   :  { %v391_v54 = vpop.f32.mrf.mxu3 }
 0x20c   :  { %v2840_v55 = vadd.f32 %v391_v54, %v324_v53  ;;  %v2231_v53 = vld [vmem:[%s3853_s24 + $0xc8] sm:$0xff] }
 0x20d   :  { %v2250_v54 = vld [vmem:[%s3853_s24 + $0x148] sm:$0xff] }
 0x20e   :  { %723 = vmatpush.msrb.mxu2 %v2250_v54 }
 0x213   :  { %v420_v56 = vpop.f32.mrf.mxu3 }
 0x21b   :  { %v423_v57 = vpop.f32.mrf.mxu3 }
 0x223   :  { %v426_v61 = vpop.f32.mrf.mxu3 }
 0x22b   :  { %v429_v62 = vpop.f32.mrf.mxu3 }
 0x22c   :  { %453 = vmatpush.msrb.mxu0 %v429_v62 }
 0x22e   :  { %454 = vmatpush.msrb.mxu0 %v426_v61  ;;  %v2248_v61 = vld [vmem:[%s3853_s24 + $0x138] sm:$0xff] }
 0x230   :  { %455 = vmatpush.msrb.mxu0 %v423_v57  ;;  %v2249_v57 = vld [vmem:[%s3853_s24 + $0x140] sm:$0xff] }
 0x231   :  { %724 = vmatpush.msrb.mxu2 %v2249_v57  ;;  %v2273_v57 = vld [vmem:[%s3853_s24 + $0x1f0] sm:$0xff] }
 0x232   :  { %456 = vmatpush.msrb.mxu0 %v420_v56  ;;  %v2230_v56 = vld [vmem:[%s3853_s24 + $0xc0] sm:$0xff] }
 0x233   :  { %2220 = vmatmul.msk.f32.vlgmr.msrb.gmra.mxu0 %vm267_vm1, %v433_v63  ;;  %725 = vmatpush.msrb.mxu2 %v2248_v61  ;;  %v577_v63 = vld [vmem:[%s3853_s24 + $0x30] sm:$0xff]  ;;  %v2270_v61 = vld [vmem:[%s3853_s24 + $0x1d8] sm:$0xff] }
 0x234   :  { %628 = vmatpush.msra.mxu0 %v2237_v35 }
 0x235   :  { %726 = vmatpush.msrb.mxu2 %v2247_v1  ;;  %v2266_v1 = vld [vmem:[%s3853_s24 + $0x1b8] sm:$0xff] }
 0x236   :  { %629 = vmatpush.msra.mxu0 %v2236_v38 }
 0x237   :  { %727 = vmatpush.msrb.mxu2 %v2246_v4  ;;  %v2263_v4 = vld [vmem:[%s3853_s24 + $0x1a0] sm:$0xff] }
 0x238   :  { %630 = vmatpush.msra.mxu0 %v2235_v41 }
 0x239   :  { %728 = vmatpush.msrb.mxu2 %v2245_v8  ;;  %v2259_v8 = vld [vmem:[%s3853_s24 + $0x180] sm:$0xff] }
 0x23a   :  { %631 = vmatpush.msra.mxu0 %v2234_v44 }
 0x23b   :  { %2221 = vmatmul.msk.f32.gmra.mxu0 %vm267_vm1, %v434_v0  ;;  %v2228_v0 = vld [vmem:[%s3853_s24 + $0xb0] sm:$0xff]  ;;  %729 = vmatpush.msrb.mxu2 %v2244_v13 }
 0x23c   :  { %632 = vmatpush.msra.mxu0 %v2233_v47 }
 0x23e   :  { %633 = vmatpush.msra.mxu0 %v2232_v50 }
 0x240   :  { %634 = vmatpush.msra.mxu0 %v2231_v53 }
 0x242   :  { %635 = vmatpush.msra.mxu0 %v2230_v56  ;;  %v2274_v56 = vld [vmem:[%s3853_s24 + $0x1f8] sm:$0xff] }
 0x244   :  { %636 = vmatpush.msra.mxu0 %v2229_v60  ;;  %v2257_v60 = vld [vmem:[%s3854_s29 + $0x10] sm:$0xff] }
 0x246   :  { %637 = vmatpush.msra.mxu0 %v2228_v0  ;;  %v2267_v0 = vld [vmem:[%s3853_s24 + $0x1c0] sm:$0xff] }
 0x248   :  { %638 = vmatpush.msra.mxu0 %v2227_v3  ;;  %v2264_v3 = vld [vmem:[%s3853_s24 + $0x1a8] sm:$0xff] }
 0x24a   :  { %639 = vmatpush.msra.mxu0 %v2226_v6  ;;  %v2261_v6 = vld [vmem:[%s3853_s24 + $0x190] sm:$0xff] }
 0x24c   :  { %640 = vmatpush.msra.mxu0 %v2225_v12 }
 0x2b0   :  { %v458_v14 = vpop.f32.mrf.mxu0 }
 0x2b1   :  { %v2893_v15 = vadd.f32 %v458_v14, %v2838_v52  ;;  %v580_v52 = vld [vmem:[%s3853_s24 + $0x48] sm:$0xff] }
 0x2b2   :  { %593 = vmatpush.msrb.mxu3 %v580_v52 }
 0x2b3   :  { %v490_v18 = vmul.f32 %v2893_v15, %v2893_v15 }
 0x2b8   :  { %v461_v16 = vpop.f32.mrf.mxu0 }
 0x2b9   :  { %v2896_v17 = vadd.f32 %v461_v16, %v2840_v55  ;;  %v579_v55 = vld [vmem:[%s3853_s24 + $0x40] sm:$0xff]  ;;  %v573_v16 = vld [vmem:[%s3853_s24 + $0x10] sm:$0xff] }
 0x2ba   :  { %594 = vmatpush.msrb.mxu3 %v579_v55  ;;  %v610_v55 = vld [vmem:[%s3854_s29] sm:$0xff] }
 0x2bb   :  { %v483_v19 = vadd.f32 %v2896_v17, %v2893_v15  ;;  %v491_v20 = vmul.f32 %v2896_v17, %v2896_v17 }
 0x2bc   :  { %595 = vmatpush.msrb.mxu3 %v578_v59  ;;  %v2271_v59 = vld [vmem:[%s3853_s24 + $0x1e0] sm:$0xff] }
 0x2bd   :  { %v484_v21 = vrot.slane %v483_v19, 4  ;;  %v492_v22 = vadd.f32 %v491_v20, %v490_v18  ;;  %v2224_v18 = vld [vmem:[%s3853_s24 + $0x90] sm:$0xff] }
 0x2be   :  { %596 = vmatpush.msrb.mxu3 %v577_v63  ;;  %641 = vmatpush.msra.mxu0 %v2224_v18  ;;  %v2268_v63 = vld [vmem:[%s3853_s24 + $0x1c8] sm:$0xff]  ;;  %v3124_v18 = vld [vmem:[#allocation12 + $0x68] sm:$0xff] }
 0x2bf   :  { %v485_v23 = vadd.f32 %v484_v21, %v483_v19  ;;  %v493_v24 = vrot.slane %v492_v22, 4  ;;  %v2243_v19 = vld [vmem:[%s3853_s24 + $0x110] sm:$0xff]  ;;  %v572_v21 = vld [vmem:[%s3853_s24 + $0x8] sm:$0xff] }
 0x2c0   :  { %597 = vmatpush.msrb.mxu3 %v576_v2  ;;  %730 = vmatpush.msrb.mxu2 %v2243_v19  ;;  %v2265_v2 = vld [vmem:[%s3853_s24 + $0x1b0] sm:$0xff] }
 0x2c1   :  { %v494_v25 = vadd.f32 %v493_v24, %v492_v22  ;;  %v486_v26 = vrot.slane %v485_v23, 2  ;;  %v2223_v22 = vld [vmem:[%s3853_s24 + $0x88] sm:$0xff]  ;;  %v3128_v19 = vld [vmem:[#allocation12 + $0x60] sm:$0xff] }
 0x2c2   :  { %598 = vmatpush.msrb.mxu3 %v575_v5  ;;  %642 = vmatpush.msra.mxu0 %v2223_v22  ;;  %v2262_v5 = vld [vmem:[%s3853_s24 + $0x198] sm:$0xff] }
 0x2c3   :  { %v495_v27 = vrot.slane %v494_v25, 2  ;;  %v487_v28 = vadd.f32 %v486_v26, %v485_v23  ;;  %v2242_v23 = vld [vmem:[%s3853_s24 + $0x108] sm:$0xff]  ;;  %v2222_v26 = vld [vmem:[%s3853_s24 + $0x80] sm:$0xff]  ;;  %v3140_v22 = vld [vmem:[#allocation12 + $0x48] sm:$0xff] }
 0x2c4   :  { %599 = vmatpush.msrb.mxu3 %v574_v11  ;;  %731 = vmatpush.msrb.mxu2 %v2242_v23  ;;  %v3144_v23 = vld [vmem:[#allocation12 + $0x40] sm:$0xff] }
 0x2c5   :  { %v488_v29 = vrot.slane %v487_v28, 1  ;;  %v496_v30 = vadd.f32 %v495_v27, %v494_v25  ;;  %v571_v25 = vld [vmem:[%s3853_s24] sm:$0xff]  ;;  %643 = vmatpush.msra.mxu0 %v2222_v26  ;;  %v2275_v26 = vld [vmem:[%s3854_s29 + $0x18] sm:$0xff] }
 0x2c6   :  { %600 = vmatpush.msrb.mxu3 %v573_v16  ;;  %v2241_v27 = vld [vmem:[%s3853_s24 + $0x100] sm:$0xff] }
 0x2c7   :  { %v489_v31 = vadd.f32 %v488_v29, %v487_v28  ;;  %v497_v32 = vrot.slane %v496_v30, 1  ;;  %732 = vmatpush.msrb.mxu2 %v2241_v27  ;;  %v3120_v16 = vld [vmem:[#allocation12 + $0x70] sm:$0xff]  ;;  %v3154_v27 = vld [vmem:[#allocation12 + $0x38] sm:$0xff] }
 0x2c8   :  { %601 = vmatpush.msrb.mxu3 %v572_v21  ;;  %v3136_v21 = vld [vmem:[#allocation12 + $0x50] sm:$0xff] }
 0x2c9   :  { %515 = vmatmul.f32.vlgmr.msrb.gmra.mxu1 %v489_v31  ;;  %v498_v33 = vadd.f32 %v497_v32, %v496_v30 }
 0x2ca   :  { %602 = vmatpush.msrb.mxu3 %v571_v25 }
 0x2cb   :  { %536 = vmatmul.f32.vlgmr.msra.gmra.mxu2 %v498_v33  ;;  %v482_v33 = vld [vmem:[%s3836_s15] sm:$0x3] }
 0x346   :  { %v516_v58 = vpop.f32.mrf.mxu1 }
 0x347   :  { %v2985_v62 = vmul.f32 0.0078125, %v516_v58  ;;  %v2272_v58 = vld [vmem:[%s3853_s24 + $0x1e8] sm:$0xff] }
 0x349   :  { %v541_v9 = vmul.f32 %v2985_v62, %v2985_v62 }
 0x34e   :  { %v537_v7 = vpop.f32.mrf.mxu2 }
 0x34f   :  { %v540_v10 = vmul.f32 0.0078125, %v537_v7  ;;  %v2260_v7 = vld [vmem:[%s3853_s24 + $0x188] sm:$0xff] }
 0x351   :  { %v542_v14 = vsub.f32 %v540_v10, %v541_v9 }
 0x353   :  { %v543_v20 = vmax.f32 %v542_v14, 0.0  ;;  %v3118_v14 = vld [vmem:[#allocation12 + $0x78] sm:$0xff] }
 0x354   :  { %862 = vmatpush.msrb.mxu0 %v3118_v14  ;;  %883 = vmatpush.msra.mxu2 %v3118_v14 }
 0x355   :  { %v544_v24 = vadd.f32 1e-05, %v543_v20  ;;  %v3132_v20 = vld [vmem:[#allocation12 + $0x58] sm:$0xff] }
 0x356   :  { %863 = vmatpush.msrb.mxu0 %v3120_v16  ;;  %884 = vmatpush.msra.mxu2 %v3120_v16 }
 0x357   :  { %2414 = vrsqrt.f32 %v544_v24  ;;  %vm551_vm3 = vweird.f32 %v544_v24 }
 0x358   :  { %864 = vmatpush.msrb.mxu0 %v3124_v18  ;;  %885 = vmatpush.msra.mxu2 %v3124_v18 }
 0x35a   :  { %865 = vmatpush.msrb.mxu0 %v3128_v19  ;;  %886 = vmatpush.msra.mxu2 %v3128_v19 }
 0x35c   :  { %866 = vmatpush.msrb.mxu0 %v3132_v20  ;;  %887 = vmatpush.msra.mxu2 %v3132_v20 }
 0x35d   :  { %v2415_v28 = vpop.eup %2414 }
 0x35e   :  { %v546_v29 = vmul.f32 %v2415_v28, %v544_v24  ;;  %vm552_vm2 = vweird.f32 %v2415_v28  ;;  %867 = vmatpush.msrb.mxu0 %v3136_v21  ;;  %888 = vmatpush.msra.mxu2 %v3136_v21 }
 0x35f   :  { %vm553_vm4 = vmor %vm551_vm3, %vm552_vm2 }
 0x360   :  { %v547_v30 = vmul.f32 %v2415_v28, %v546_v29  ;;  %868 = vmatpush.msrb.mxu0 %v3140_v22  ;;  %889 = vmatpush.msra.mxu2 %v3140_v22  ;;  %v3162_v29 = vld [vmem:[#allocation12 + $0x28] sm:$0xff] }
 0x362   :  { %v548_v31 = vmul.f32 0.5, %v547_v30  ;;  %869 = vmatpush.msrb.mxu0 %v3144_v23  ;;  %890 = vmatpush.msra.mxu2 %v3144_v23  ;;  %v3166_v30 = vld [vmem:[#allocation12 + $0x20] sm:$0xff] }
 0x364   :  { %v549_v32 = vsub.f32 1.5, %v548_v31  ;;  %870 = vmatpush.msrb.mxu0 %v3154_v27  ;;  %891 = vmatpush.msra.mxu2 %v3154_v27  ;;  %v3170_v31 = vld [vmem:[#allocation12 + $0x18] sm:$0xff] }
 0x366   :  { %v550_v34 = vmul.f32 %v2415_v28, %v549_v32  ;;  %v3172_v32 = vld [vmem:[#allocation12 + $0x10] sm:$0xff] }
 0x368   :  { %v554_v35 = vsel %vm553_vm4, %v2415_v28, %v550_v34  ;;  %v3158_v28 = vld [vmem:[#allocation12 + $0x30] sm:$0xff]  ;;  %v3180_v34 = vld [vmem:[#allocation12] sm:$0xff] }
 0x369   :  { %v555_v36 = vmul.f32 %v554_v35, %v482_v33  ;;  %871 = vmatpush.msrb.mxu0 %v3158_v28  ;;  %892 = vmatpush.msra.mxu2 %v3158_v28 }
 0x36b   :  { %v556_v37 = vmul.f32 %v555_v36, %v2985_v62  ;;  %v561_v39 = vperm.slane %v555_v36, 0  ;;  %v2269_v62 = vld [vmem:[%s3853_s24 + $0x1d0] sm:$0xff]  ;;  %872 = vmatpush.msrb.mxu0 %v3162_v29  ;;  %893 = vmatpush.msra.mxu2 %v3162_v29 }
 0x36d   :  { %v558_v38 = vrot.slane %v556_v37, 7  ;;  %v562_v41 = vmul.f32 %v561_v39, %v2893_v15  ;;  %v563_v45 = vmul.f32 %v561_v39, %v2896_v17  ;;  %v2238_v15 = vld [vmem:[%s3854_s29 + $0x8] sm:$0xff]  ;;  %873 = vmatpush.msrb.mxu0 %v3166_v30  ;;  %894 = vmatpush.msra.mxu2 %v3166_v30 }
 0x36f   :  { %v560_v40 = vsub.f32 %v482_v33, %v558_v38  ;;  %874 = vmatpush.msrb.mxu0 %v3170_v31  ;;  %895 = vmatpush.msra.mxu2 %v3170_v31  ;;  %v3176_v33 = vld [vmem:[#allocation12 + $0x8] sm:$0xff] }
 0x371   :  { %v564_v42 = vperm.slane %v560_v40, 1  ;;  %875 = vmatpush.msrb.mxu0 %v3172_v32  ;;  %896 = vmatpush.msra.mxu2 %v3172_v32 }
 0x373   :  { %v565_v43 = vadd.f32 %v564_v42, %v562_v41  ;;  %v566_v47 = vadd.f32 %v564_v42, %v563_v45  ;;  %876 = vmatpush.msrb.mxu0 %v3176_v33  ;;  %897 = vmatpush.msra.mxu2 %v3176_v33 }
 0x375   :  { %v567_v44 = vmul.f32 0.05, %v565_v43  ;;  %v568_v48 = vmul.f32 0.05, %v566_v47  ;;  %877 = vmatpush.msrb.mxu0 %v3180_v34  ;;  %898 = vmatpush.msra.mxu2 %v3180_v34 }
 0x377   :  { %v569_v46 = vmax.f32 %v565_v43, %v567_v44  ;;  %v570_v49 = vmax.f32 %v566_v47, %v568_v48 }
 0x379   :  { %603 = vmatmul.f32.vlgmr.msrb.gmra.mxu3 %v569_v46  ;;  %644 = vmatmul.f32.vlgmr.msra.gmra.mxu0 %v569_v46 }
 0x37a   :  { %733 = vmatmul.f32.vlgmr.msrb.gmra.mxu2 %v569_v46 }
 0x381   :  { %606 = vmatmul.f32.gmra.mxu3 %v570_v49  ;;  %647 = vmatmul.f32.gmra.mxu0 %v570_v49 }
 0x382   :  { %736 = vmatmul.f32.gmra.mxu2 %v570_v49 }
 0x3f6   :  { %v645_v50 = vpop.f32.mrf.mxu0 }
 0x3fc   :  { %v604_v51 = vpop.f32.mrf.mxu3 }
 0x3fd   :  { %v734_v52 = vpop.f32.mrf.mxu2 }
 0x3fe   :  { %v648_v53 = vpop.f32.mrf.mxu0 }
 0x3ff   :  { %671 = vmatpush.msra.mxu1 %v648_v53  ;;  %v2291_v53 = vld [vmem:[%s3827_s6 + $0xf0] sm:$0xff] }
 0x401   :  { %672 = vmatpush.msra.mxu1 %v645_v50  ;;  %v945_v50 = vld [vmem:[%s3827_s6 + $0x78] sm:$0xff] }
 0x402   :  { %2239 = vmatmul.msk.f32.vlgmr.msra.gmra.mxu1 %vm653_vm5, %v2238_v15  ;;  %v943_v15 = vld [vmem:[%s3827_s6 + $0x68] sm:$0xff] }
 0x404   :  { %v607_v17 = vpop.f32.mrf.mxu3 }
 0x405   :  { %694 = vmatpush.msrb.mxu1 %v607_v17  ;;  %v737_v54 = vpop.f32.mrf.mxu2  ;;  %v2290_v17 = vld [vmem:[%s3827_s6 + $0xe8] sm:$0xff] }
 0x407   :  { %695 = vmatpush.msrb.mxu1 %v604_v51  ;;  %v2292_v51 = vld [vmem:[%s3827_s6 + $0xf8] sm:$0xff] }
 0x409   :  { %759 = vmatpush.msra.mxu1 %v737_v54  ;;  %v942_v54 = vld [vmem:[%s3827_s6 + $0x60] sm:$0xff] }
 0x40a   :  { %2240 = vmatmul.msk.f32.vlgmr.msrb.gmra.mxu1 %vm653_vm5, %v610_v55  ;;  %v2289_v55 = vld [vmem:[%s3827_s6 + $0xe0] sm:$0xff] }
 0x40b   :  { %760 = vmatpush.msra.mxu1 %v734_v52  ;;  %v944_v52 = vld [vmem:[%s3827_s6 + $0x70] sm:$0xff] }
 0x40d   :  { %783 = vmatpush.msrb.mxu1 %v2274_v56  ;;  %v941_v56 = vld [vmem:[%s3827_s6 + $0x58] sm:$0xff] }
 0x40f   :  { %784 = vmatpush.msrb.mxu1 %v2273_v57  ;;  %v2288_v57 = vld [vmem:[%s3827_s6 + $0xd8] sm:$0xff] }
 0x411   :  { %785 = vmatpush.msrb.mxu1 %v2272_v58  ;;  %v940_v58 = vld [vmem:[%s3827_s6 + $0x50] sm:$0xff] }
 0x412   :  { %2258 = vmatmul.msk.f32.vlgmr.msra.gmra.mxu1 %vm653_vm5, %v2257_v60  ;;  %v939_v60 = vld [vmem:[%s3827_s6 + $0x48] sm:$0xff] }
 0x413   :  { %786 = vmatpush.msrb.mxu1 %v2271_v59  ;;  %v2287_v59 = vld [vmem:[%s3827_s6 + $0xd0] sm:$0xff] }
 0x415   :  { %787 = vmatpush.msrb.mxu1 %v2270_v61  ;;  %v2286_v61 = vld [vmem:[%s3827_s6 + $0xc8] sm:$0xff] }
 0x417   :  { %788 = vmatpush.msrb.mxu1 %v2269_v62  ;;  %v938_v62 = vld [vmem:[%s3827_s6 + $0x40] sm:$0xff] }
 0x419   :  { %789 = vmatpush.msrb.mxu1 %v2268_v63  ;;  %v2285_v63 = vld [vmem:[%s3827_s6 + $0xc0] sm:$0xff] }
 0x41b   :  { %790 = vmatpush.msrb.mxu1 %v2267_v0 }
 0x41d   :  { %791 = vmatpush.msrb.mxu1 %v2266_v1  ;;  %v937_v1 = vld [vmem:[%s3827_s6 + $0x38] sm:$0xff] }
 0x41f   :  { %792 = vmatpush.msrb.mxu1 %v2265_v2  ;;  %v2284_v2 = vld [vmem:[%s3827_s6 + $0xb8] sm:$0xff] }
 0x421   :  { %793 = vmatpush.msrb.mxu1 %v2264_v3 }
 0x423   :  { %794 = vmatpush.msrb.mxu1 %v2263_v4  ;;  %v936_v4 = vld [vmem:[%s3827_s6 + $0x30] sm:$0xff] }
 0x425   :  { %795 = vmatpush.msrb.mxu1 %v2262_v5  ;;  %v2283_v5 = vld [vmem:[%s3827_s6 + $0xb0] sm:$0xff] }
 0x427   :  { %796 = vmatpush.msrb.mxu1 %v2261_v6  ;;  %v935_v6 = vld [vmem:[%s3827_s6 + $0x28] sm:$0xff] }
 0x429   :  { %797 = vmatpush.msrb.mxu1 %v2260_v7  ;;  %v2282_v7 = vld [vmem:[%s3827_s6 + $0xa8] sm:$0xff] }
 0x42b   :  { %798 = vmatpush.msrb.mxu1 %v2259_v8  ;;  %v934_v8 = vld [vmem:[%s3827_s6 + $0x20] sm:$0xff] }
 0x42c   :  { %799 = vmatmul.f32.vlgmr.msrb.gmra.mxu1 %v569_v46 }
 0x42d   :  { %984 = vmatpush.msra.mxu1 %v2292_v51 }
 0x42f   :  { %985 = vmatpush.msra.mxu1 %v2291_v53 }
 0x431   :  { %986 = vmatpush.msra.mxu1 %v2290_v17 }
 0x433   :  { %987 = vmatpush.msra.mxu1 %v2289_v55 }
 0x434   :  { %802 = vmatmul.f32.gmra.mxu1 %v570_v49 }
 0x435   :  { %988 = vmatpush.msra.mxu1 %v2288_v57 }
 0x437   :  { %989 = vmatpush.msra.mxu1 %v2287_v59  ;;  %v2310_v59 = vld [vmem:[%s3827_s6 + $0x178] sm:$0xff] }
 0x439   :  { %990 = vmatpush.msra.mxu1 %v2286_v61  ;;  %v1005_v61 = vld [vmem:[#allocation6 + $0x8] sm:$0xff] }
 0x43b   :  { %991 = vmatpush.msra.mxu1 %v2285_v63  ;;  %v2307_v63 = vld [vmem:[%s3827_s6 + $0x160] sm:$0xff] }
 0x43d   :  { %992 = vmatpush.msra.mxu1 %v2284_v2  ;;  %v2306_v2 = vld [vmem:[%s3827_s6 + $0x158] sm:$0xff] }
 0x43f   :  { %993 = vmatpush.msra.mxu1 %v2283_v5  ;;  %v2303_v5 = vld [vmem:[%s3827_s6 + $0x140] sm:$0xff] }
 0x441   :  { %994 = vmatpush.msra.mxu1 %v2282_v7  ;;  %v2301_v7 = vld [vmem:[%s3827_s6 + $0x130] sm:$0xff] }
 0x47f   :  { %v674_v9 = vpop.f32.mrf.mxu1 }
 0x487   :  { %v697_v10 = vpop.f32.mrf.mxu1 }
 0x488   :  { %v698_v11 = vadd.f32 %v697_v10, %v674_v9  ;;  %v2281_v9 = vld [vmem:[%s3827_s6 + $0xa0] sm:$0xff] }
 0x489   :  { %995 = vmatpush.msra.mxu1 %v2281_v9  ;;  %v2299_v9 = vld [vmem:[%s3827_s6 + $0x120] sm:$0xff] }
 0x48f   :  { %v762_v12 = vpop.f32.mrf.mxu1 }
 0x490   :  { %v765_v13 = vadd.f32 %v762_v12, %v698_v11 }
 0x4a9   :  { %v800_v24 = vpop.f32.mrf.mxu1 }
 0x4b1   :  { %v803_v25 = vpop.f32.mrf.mxu1 }
 0x4b2   :  { %825 = vmatpush.msra.mxu3 %v803_v25 }
 0x4b4   :  { %826 = vmatpush.msra.mxu3 %v800_v24  ;;  %v2280_v24 = vld [vmem:[%s3827_s6 + $0x98] sm:$0xff] }
 0x4b5   :  { %2276 = vmatmul.msk.f32.vlgmr.msra.gmra.mxu3 %vm653_vm5, %v2275_v26  ;;  %v932_v26 = vld [vmem:[%s3827_s6 + $0x10] sm:$0xff]  ;;  %996 = vmatpush.msra.mxu1 %v2280_v24 }
 0x4b6   :  { %946 = vmatpush.msrb.mxu3 %v945_v50 }
 0x4b8   :  { %947 = vmatpush.msrb.mxu3 %v944_v52 }
 0x4ba   :  { %948 = vmatpush.msrb.mxu3 %v943_v15 }
 0x4bc   :  { %949 = vmatpush.msrb.mxu3 %v942_v54 }
 0x4be   :  { %950 = vmatpush.msrb.mxu3 %v941_v56 }
 0x4c0   :  { %951 = vmatpush.msrb.mxu3 %v940_v58 }
 0x4c2   :  { %952 = vmatpush.msrb.mxu3 %v939_v60 }
 0x4c4   :  { %953 = vmatpush.msrb.mxu3 %v938_v62  ;;  %v2309_v62 = vld [vmem:[%s3827_s6 + $0x170] sm:$0xff] }
 0x4c6   :  { %954 = vmatpush.msrb.mxu3 %v937_v1 }
 0x4c8   :  { %955 = vmatpush.msrb.mxu3 %v936_v4  ;;  %v2304_v4 = vld [vmem:[%s3827_s6 + $0x148] sm:$0xff] }
 0x4ca   :  { %956 = vmatpush.msrb.mxu3 %v935_v6  ;;  %v2302_v6 = vld [vmem:[%s3827_s6 + $0x138] sm:$0xff] }
 0x4cc   :  { %957 = vmatpush.msrb.mxu3 %v934_v8  ;;  %v2300_v8 = vld [vmem:[%s3827_s6 + $0x128] sm:$0xff] }
 0x538   :  { %v828_v35 = vpop.f32.mrf.mxu3 }
 0x539   :  { %v3186_v36 = vadd.f32 %v828_v35, %v765_v13  ;;  %v933_v13 = vld [vmem:[%s3827_s6 + $0x18] sm:$0xff]  ;;  %v2279_v35 = vld [vmem:[%s3827_s6 + $0x90] sm:$0xff] }
 0x53a   :  { %958 = vmatpush.msrb.mxu3 %v933_v13  ;;  %997 = vmatpush.msra.mxu1 %v2279_v35  ;;  %v2295_v13 = vld [vmem:[%s3827_s6 + $0x100] sm:$0xff] }
 0x53b   :  { %v849_v37 = vrot.slane %v3186_v36, 4  ;;  %v855_v38 = vmul.f32 %v3186_v36, %v3186_v36 }
 0x53c   :  { %959 = vmatpush.msrb.mxu3 %v932_v26 }
 0x53d   :  { %v850_v39 = vadd.f32 %v849_v37, %v3186_v36  ;;  %v856_v40 = vrot.slane %v855_v38, 4 }
 0x53f   :  { %v851_v41 = vrot.slane %v850_v39, 2  ;;  %v857_v42 = vadd.f32 %v856_v40, %v855_v38  ;;  %v931_v38 = vld [vmem:[%s3827_s6 + $0x8] sm:$0xff] }
 0x540   :  { %960 = vmatpush.msrb.mxu3 %v931_v38 }
 0x541   :  { %v852_v43 = vadd.f32 %v851_v41, %v850_v39  ;;  %v858_v44 = vrot.slane %v857_v42, 2  ;;  %v2278_v39 = vld [vmem:[%s3827_s6 + $0x88] sm:$0xff]  ;;  %v930_v41 = vld [vmem:[%s3827_s6] sm:$0xff] }
 0x542   :  { %998 = vmatpush.msra.mxu1 %v2278_v39  ;;  %961 = vmatpush.msrb.mxu3 %v930_v41 }
 0x543   :  { %v853_v45 = vrot.slane %v852_v43, 1  ;;  %v859_v46 = vadd.f32 %v858_v44, %v857_v42  ;;  %v2277_v42 = vld [vmem:[%s3827_s6 + $0x80] sm:$0xff] }
 0x544   :  { %999 = vmatpush.msra.mxu1 %v2277_v42 }
 0x545   :  { %v854_v47 = vadd.f32 %v853_v45, %v852_v43  ;;  %v860_v48 = vrot.slane %v859_v46, 1 }
 0x547   :  { %878 = vmatmul.f32.vlgmr.msrb.gmra.mxu0 %v854_v47  ;;  %v861_v49 = vadd.f32 %v860_v48, %v859_v46  ;;  %v848_v48 = vld [vmem:[%s3837_s16] sm:$0x3] }
 0x549   :  { %899 = vmatmul.f32.vlgmr.msra.gmra.mxu2 %v861_v49 }
 0x5c4   :  { %v879_v0 = vpop.f32.mrf.mxu0 }
 0x5c5   :  { %v882_v3 = vmul.f32 0.03125, %v879_v0  ;;  %v966_v0 = vld [vmem:[#allocation6] sm:$0xff] }
 0x5c7   :  { %v904_v11 = vmul.f32 %v882_v3, %v882_v3 }
 0x5cc   :  { %v900_v10 = vpop.f32.mrf.mxu2 }
 0x5cd   :  { %v903_v12 = vmul.f32 0.03125, %v900_v10  ;;  %v2298_v10 = vld [vmem:[%s3827_s6 + $0x118] sm:$0xff] }
 0x5cf   :  { %v905_v25 = vsub.f32 %v903_v12, %v904_v11  ;;  %v2297_v11 = vld [vmem:[%s3827_s6 + $0x110] sm:$0xff]  ;;  %v2296_v12 = vld [vmem:[%s3827_s6 + $0x108] sm:$0xff] }
 0x5d1   :  { %v906_v37 = vmax.f32 %v905_v25, 0.0  ;;  %v1091_v25 = vld [vmem:[#allocation6 + $0x10] sm:$0xff] }
 0x5d3   :  { %v907_v40 = vadd.f32 1e-05, %v906_v37 }
 0x5d5   :  { %2416 = vrsqrt.f32 %v907_v40  ;;  %vm914_vm7 = vweird.f32 %v907_v40 }
 0x5db   :  { %v2417_v43 = vpop.eup %2416 }
 0x5dc   :  { %v909_v44 = vmul.f32 %v2417_v43, %v907_v40  ;;  %vm915_vm6 = vweird.f32 %v2417_v43 }
 0x5dd   :  { %vm916_vm8 = vmor %vm914_vm7, %vm915_vm6 }
 0x5de   :  { %v910_v45 = vmul.f32 %v2417_v43, %v909_v44 }
 0x5e0   :  { %v911_v46 = vmul.f32 0.5, %v910_v45 }
 0x5e2   :  { %v912_v47 = vsub.f32 1.5, %v911_v46 }
 0x5e4   :  { %v913_v49 = vmul.f32 %v2417_v43, %v912_v47 }
 0x5e6   :  { %v917_v50 = vsel %vm916_vm8, %v2417_v43, %v913_v49 }
 0x5e7   :  { %v918_v51 = vmul.f32 %v917_v50, %v848_v48 }
 0x5e9   :  { %v919_v52 = vmul.f32 %v918_v51, %v882_v3  ;;  %v924_v15 = vperm.slane %v918_v51, 0  ;;  %v2305_v3 = vld [vmem:[%s3827_s6 + $0x150] sm:$0xff] }
 0x5eb   :  { %v921_v53 = vrot.slane %v919_v52, 7  ;;  %v925_v54 = vmul.f32 %v924_v15, %v3186_v36  ;;  %v2308_v36 = vld [vmem:[%s3827_s6 + $0x168] sm:$0xff] }
 0x5ec   :  { %v1251_v15 = vld [vmem:[#allocation9 + $0xf8] sm:$0xff] }
 0x5ed   :  { %v923_v17 = vsub.f32 %v848_v48, %v921_v53  ;;  %v1213_v53 = vld [vmem:[#allocation9 + $0x78] sm:$0xff] }
 0x5ee   :  { %1214 = vmatpush.msrb.mxu1 %v1213_v53 }
 0x5ef   :  { %v926_v55 = vperm.slane %v923_v17, 1  ;;  %v1212_v17 = vld [vmem:[#allocation9 + $0x70] sm:$0xff] }
 0x5f0   :  { %1215 = vmatpush.msrb.mxu1 %v1212_v17 }
 0x5f1   :  { %v927_v56 = vadd.f32 %v926_v55, %v925_v54  ;;  %v1250_v54 = vld [vmem:[#allocation9 + $0xf0] sm:$0xff]  ;;  %v1211_v55 = vld [vmem:[#allocation9 + $0x68] sm:$0xff] }
 0x5f2   :  { %1216 = vmatpush.msrb.mxu1 %v1211_v55 }
 0x5f3   :  { %v928_v57 = vmul.f32 0.05, %v927_v56 }
 0x5f5   :  { %v929_v58 = vmax.f32 %v927_v56, %v928_v57  ;;  %v1249_v56 = vld [vmem:[#allocation9 + $0xe8] sm:$0xff]  ;;  %v1210_v57 = vld [vmem:[#allocation9 + $0x60] sm:$0xff] }
 0x5f6   :  { %1217 = vmatpush.msrb.mxu1 %v1210_v57 }
 0x5f7   :  { %962 = vmatmul.f32.vlgmr.msrb.gmra.mxu3 %v929_v58  ;;  %1000 = vmatmul.f32.vlgmr.msra.gmra.mxu1 %v929_v58 }
 0x674   :  { %v1001_v60 = vpop.f32.mrf.mxu1 }
 0x675   :  { %1025 = vmatpush.msrb.mxu2 %v1001_v60  ;;  %v1247_v60 = vld [vmem:[#allocation9 + $0xd8] sm:$0xff] }
 0x676   :  { %2293 = vmatmul.msk.f32.vlgmr.msrb.gmra.mxu2 %vm1006_vm9, %v1005_v61  ;;  %v1208_v61 = vld [vmem:[#allocation9 + $0x50] sm:$0xff] }
 0x677   :  { %1070 = vmatpush.msra.mxu2 %v2310_v59  ;;  %v1209_v59 = vld [vmem:[#allocation9 + $0x58] sm:$0xff] }
 0x678   :  { %1218 = vmatpush.msrb.mxu1 %v1209_v59 }
 0x679   :  { %1071 = vmatpush.msra.mxu2 %v2309_v62  ;;  %v1246_v62 = vld [vmem:[#allocation9 + $0xd0] sm:$0xff] }
 0x67a   :  { %v963_v1 = vpop.f32.mrf.mxu3  ;;  %1219 = vmatpush.msrb.mxu1 %v1208_v61 }
 0x67b   :  { %1072 = vmatpush.msra.mxu2 %v2308_v36  ;;  %1048 = vmatpush.msra.mxu0 %v963_v1  ;;  %v1207_v36 = vld [vmem:[#allocation9 + $0x48] sm:$0xff]  ;;  %v1244_v1 = vld [vmem:[#allocation9 + $0xc0] sm:$0xff] }
 0x67c   :  { %2294 = vmatmul.msk.f32.vlgmr.msra.gmra.mxu0 %vm1006_vm9, %v966_v0  ;;  %1220 = vmatpush.msrb.mxu1 %v1207_v36  ;;  %v1206_v0 = vld [vmem:[#allocation9 + $0x40] sm:$0xff] }
 0x67d   :  { %1073 = vmatpush.msra.mxu2 %v2307_v63  ;;  %1130 = vmatpush.msrb.mxu0 %v3118_v14  ;;  %v1245_v63 = vld [vmem:[#allocation9 + $0xc8] sm:$0xff] }
 0x67e   :  { %1221 = vmatpush.msrb.mxu1 %v1206_v0 }
 0x67f   :  { %1074 = vmatpush.msra.mxu2 %v2306_v2  ;;  %1131 = vmatpush.msrb.mxu0 %v3120_v16 }
 0x681   :  { %1075 = vmatpush.msra.mxu2 %v2305_v3  ;;  %1132 = vmatpush.msrb.mxu0 %v3124_v18  ;;  %v1205_v3 = vld [vmem:[#allocation9 + $0x38] sm:$0xff] }
 0x682   :  { %1222 = vmatpush.msrb.mxu1 %v1205_v3  ;;  %v1333_v3 = vld [vmem:[#allocation9 + $0x160] sm:$0xff] }
 0x683   :  { %1076 = vmatpush.msra.mxu2 %v2304_v4  ;;  %1133 = vmatpush.msrb.mxu0 %v3128_v19  ;;  %v1243_v4 = vld [vmem:[#allocation9 + $0xb8] sm:$0xff] }
 0x685   :  { %1077 = vmatpush.msra.mxu2 %v2303_v5  ;;  %1134 = vmatpush.msrb.mxu0 %v3132_v20 }
 0x687   :  { %1078 = vmatpush.msra.mxu2 %v2302_v6  ;;  %1135 = vmatpush.msrb.mxu0 %v3136_v21  ;;  %v1204_v6 = vld [vmem:[#allocation9 + $0x30] sm:$0xff] }
 0x688   :  { %1223 = vmatpush.msrb.mxu1 %v1204_v6  ;;  %v1330_v6 = vld [vmem:[#allocation9 + $0x148] sm:$0xff] }
 0x689   :  { %1079 = vmatpush.msra.mxu2 %v2301_v7  ;;  %1136 = vmatpush.msrb.mxu0 %v3140_v22  ;;  %v1242_v7 = vld [vmem:[#allocation9 + $0xb0] sm:$0xff] }
 0x68b   :  { %1080 = vmatpush.msra.mxu2 %v2300_v8  ;;  %1137 = vmatpush.msrb.mxu0 %v3144_v23  ;;  %v1203_v8 = vld [vmem:[#allocation9 + $0x28] sm:$0xff] }
 0x68c   :  { %1224 = vmatpush.msrb.mxu1 %v1203_v8  ;;  %v1328_v8 = vld [vmem:[#allocation9 + $0x138] sm:$0xff] }
 0x68d   :  { %1081 = vmatpush.msra.mxu2 %v2299_v9  ;;  %1138 = vmatpush.msrb.mxu0 %v3154_v27  ;;  %v1241_v9 = vld [vmem:[#allocation9 + $0xa8] sm:$0xff] }
 0x68f   :  { %1082 = vmatpush.msra.mxu2 %v2298_v10  ;;  %1139 = vmatpush.msrb.mxu0 %v3158_v28  ;;  %v1202_v10 = vld [vmem:[#allocation9 + $0x20] sm:$0xff] }
 0x690   :  { %1225 = vmatpush.msrb.mxu1 %v1202_v10  ;;  %v1326_v10 = vld [vmem:[#allocation9 + $0x128] sm:$0xff] }
 0x691   :  { %1083 = vmatpush.msra.mxu2 %v2297_v11  ;;  %1140 = vmatpush.msrb.mxu0 %v3162_v29  ;;  %v1240_v11 = vld [vmem:[#allocation9 + $0xa0] sm:$0xff] }
 0x693   :  { %1084 = vmatpush.msra.mxu2 %v2296_v12  ;;  %1141 = vmatpush.msrb.mxu0 %v3166_v30 }
 0x695   :  { %1085 = vmatpush.msra.mxu2 %v2295_v13  ;;  %1142 = vmatpush.msrb.mxu0 %v3170_v31 }
 0x696   :  { %1086 = vmatmul.f32.vlgmr.msra.gmra.mxu2 %v929_v58  ;;  %v1248_v58 = vld [vmem:[#allocation9 + $0xe0] sm:$0xff] }
 0x697   :  { %1143 = vmatpush.msrb.mxu0 %v3172_v32  ;;  %1252 = vmatpush.msrb.mxu2 %v1251_v15 }
 0x699   :  { %1144 = vmatpush.msrb.mxu0 %v3176_v33  ;;  %1253 = vmatpush.msrb.mxu2 %v1250_v54 }
 0x69b   :  { %1145 = vmatpush.msrb.mxu0 %v3180_v34  ;;  %1254 = vmatpush.msrb.mxu2 %v1249_v56 }
 0x69d   :  { %1255 = vmatpush.msrb.mxu2 %v1248_v58 }
 0x69f   :  { %1256 = vmatpush.msrb.mxu2 %v1247_v60 }
 0x6a1   :  { %1257 = vmatpush.msrb.mxu2 %v1246_v62  ;;  %v1234_v62 = vld [vmem:[#allocation7] sm:$0xff] }
 0x6a3   :  { %1258 = vmatpush.msrb.mxu2 %v1245_v63  ;;  %v1336_v63 = vld [vmem:[#allocation9 + $0x178] sm:$0xff] }
 0x6a5   :  { %1259 = vmatpush.msrb.mxu2 %v1244_v1  ;;  %v1273_v1 = vld [vmem:[#allocation7 + $0x8] sm:$0xff] }
 0x6a7   :  { %1260 = vmatpush.msrb.mxu2 %v1243_v4  ;;  %v1332_v4 = vld [vmem:[#allocation9 + $0x158] sm:$0xff] }
 0x6a9   :  { %1261 = vmatpush.msrb.mxu2 %v1242_v7  ;;  %v1329_v7 = vld [vmem:[#allocation9 + $0x140] sm:$0xff] }
 0x6ab   :  { %1262 = vmatpush.msrb.mxu2 %v1241_v9  ;;  %v1327_v9 = vld [vmem:[#allocation9 + $0x130] sm:$0xff] }
 0x6ad   :  { %1263 = vmatpush.msrb.mxu2 %v1240_v11  ;;  %v1325_v11 = vld [vmem:[#allocation9 + $0x120] sm:$0xff] }
 0x6f9   :  { %v1027_v24 = vpop.f32.mrf.mxu2  ;;  %v1050_v35 = vpop.f32.mrf.mxu0 }
 0x6fa   :  { %v1051_v37 = vadd.f32 %v1050_v35, %v1027_v24 }
 0x719   :  { %v1087_v26 = vpop.f32.mrf.mxu2 }
 0x71a   :  { %1110 = vmatpush.msra.mxu3 %v1087_v26  ;;  %v1239_v26 = vld [vmem:[#allocation9 + $0x98] sm:$0xff] }
 0x71b   :  { %2311 = vmatmul.msk.f32.vlgmr.msra.gmra.mxu3 %vm1006_vm9, %v1091_v25  ;;  %v1201_v25 = vld [vmem:[#allocation9 + $0x18] sm:$0xff]  ;;  %1264 = vmatpush.msrb.mxu2 %v1239_v26 }
 0x71c   :  { %1151 = vmatpush.msrb.mxu3 %v3118_v14  ;;  %1226 = vmatpush.msrb.mxu1 %v1201_v25  ;;  %v1321_v25 = vld [vmem:[#allocation9 + $0x100] sm:$0xff] }
 0x71e   :  { %1152 = vmatpush.msrb.mxu3 %v3120_v16 }
 0x720   :  { %1153 = vmatpush.msrb.mxu3 %v3124_v18 }
 0x722   :  { %1154 = vmatpush.msrb.mxu3 %v3128_v19 }
 0x724   :  { %1155 = vmatpush.msrb.mxu3 %v3132_v20 }
 0x726   :  { %1156 = vmatpush.msrb.mxu3 %v3136_v21 }
 0x728   :  { %1157 = vmatpush.msrb.mxu3 %v3140_v22 }
 0x72a   :  { %1158 = vmatpush.msrb.mxu3 %v3144_v23 }
 0x72c   :  { %1159 = vmatpush.msrb.mxu3 %v3154_v27 }
 0x72e   :  { %1160 = vmatpush.msrb.mxu3 %v3158_v28 }
 0x730   :  { %1161 = vmatpush.msrb.mxu3 %v3162_v29 }
 0x732   :  { %1162 = vmatpush.msrb.mxu3 %v3166_v30 }
 0x734   :  { %1163 = vmatpush.msrb.mxu3 %v3170_v31 }
 0x736   :  { %1164 = vmatpush.msrb.mxu3 %v3172_v32 }
 0x738   :  { %1165 = vmatpush.msrb.mxu3 %v3176_v33 }
 0x73a   :  { %1166 = vmatpush.msrb.mxu3 %v3180_v34 }
 0x79e   :  { %v1112_v38 = vpop.f32.mrf.mxu3 }
 0x79f   :  { %v3375_v39 = vadd.f32 %v1112_v38, %v1051_v37  ;;  %v1200_v37 = vld [vmem:[#allocation9 + $0x10] sm:$0xff] }
 0x7a0   :  { %v1238_v38 = vld [vmem:[#allocation9 + $0x90] sm:$0xff]  ;;  %1227 = vmatpush.msrb.mxu1 %v1200_v37 }
 0x7a1   :  { %v1117_v40 = vrot.slane %v3375_v39, 4  ;;  %v1123_v41 = vmul.f32 %v3375_v39, %v3375_v39  ;;  %1265 = vmatpush.msrb.mxu2 %v1238_v38 }
 0x7a3   :  { %v1118_v42 = vadd.f32 %v1117_v40, %v3375_v39  ;;  %v1124_v43 = vrot.slane %v1123_v41, 4 }
 0x7a5   :  { %v1119_v44 = vrot.slane %v1118_v42, 2  ;;  %v1125_v45 = vadd.f32 %v1124_v43, %v1123_v41  ;;  %v1199_v41 = vld [vmem:[#allocation9 + $0x8] sm:$0xff] }
 0x7a6   :  { %1228 = vmatpush.msrb.mxu1 %v1199_v41  ;;  %v1519_v41 = vld [vmem:[#allocation10 + $0xf8] sm:$0xff] }
 0x7a7   :  { %v1120_v46 = vadd.f32 %v1119_v44, %v1118_v42  ;;  %v1126_v47 = vrot.slane %v1125_v45, 2  ;;  %v1237_v42 = vld [vmem:[#allocation9 + $0x88] sm:$0xff]  ;;  %v1198_v44 = vld [vmem:[#allocation9] sm:$0xff] }
 0x7a8   :  { %1266 = vmatpush.msrb.mxu2 %v1237_v42  ;;  %1229 = vmatpush.msrb.mxu1 %v1198_v44  ;;  %v1479_v42 = vld [vmem:[#allocation10 + $0x70] sm:$0xff]  ;;  %v1478_v44 = vld [vmem:[#allocation10 + $0x68] sm:$0xff] }
 0x7a9   :  { %v1121_v48 = vrot.slane %v1120_v46, 1  ;;  %v1127_v49 = vadd.f32 %v1126_v47, %v1125_v45  ;;  %v1236_v45 = vld [vmem:[#allocation9 + $0x80] sm:$0xff] }
 0x7aa   :  { %1267 = vmatpush.msrb.mxu2 %v1236_v45  ;;  %v1517_v45 = vld [vmem:[#allocation10 + $0xe8] sm:$0xff] }
 0x7ab   :  { %v1122_v50 = vadd.f32 %v1121_v48, %v1120_v46  ;;  %v1128_v51 = vrot.slane %v1127_v49, 1 }
 0x7ad   :  { %1146 = vmatmul.f32.vlgmr.msrb.gmra.mxu0 %v1122_v50  ;;  %v1129_v52 = vadd.f32 %v1128_v51, %v1127_v49  ;;  %v1116_v51 = vld [vmem:[%s3838_s17] sm:$0x3] }
 0x7af   :  { %1167 = vmatmul.f32.vlgmr.msrb.gmra.mxu3 %v1129_v52 }
 0x82a   :  { %v1147_v2 = vpop.f32.mrf.mxu0 }
 0x82b   :  { %v1150_v5 = vmul.f32 0.03125, %v1147_v2  ;;  %v1334_v2 = vld [vmem:[#allocation9 + $0x168] sm:$0xff] }
 0x82d   :  { %v1172_v13 = vmul.f32 %v1150_v5, %v1150_v5 }
 0x832   :  { %v1168_v12 = vpop.f32.mrf.mxu3 }
 0x833   :  { %v1171_v24 = vmul.f32 0.03125, %v1168_v12  ;;  %v1324_v12 = vld [vmem:[#allocation9 + $0x118] sm:$0xff] }
 0x835   :  { %v1173_v35 = vsub.f32 %v1171_v24, %v1172_v13  ;;  %v1323_v13 = vld [vmem:[#allocation9 + $0x110] sm:$0xff]  ;;  %v1322_v24 = vld [vmem:[#allocation9 + $0x108] sm:$0xff] }
 0x837   :  { %v1174_v40 = vmax.f32 %v1173_v35, 0.0  ;;  %v1358_v35 = vld [vmem:[#allocation7 + $0x10] sm:$0xff] }
 0x839   :  { %v1175_v43 = vadd.f32 1e-05, %v1174_v40  ;;  %v1480_v40 = vld [vmem:[#allocation10 + $0x78] sm:$0xff] }
 0x83a   :  { %1481 = vmatpush.msra.mxu2 %v1480_v40  ;;  %v1688_v40 = vld [vmem:[#allocation10 + $0x1f8] sm:$0xff] }
 0x83b   :  { %2418 = vrsqrt.f32 %v1175_v43  ;;  %vm1182_vm11 = vweird.f32 %v1175_v43 }
 0x83c   :  { %1482 = vmatpush.msra.mxu2 %v1479_v42  ;;  %v1501_v42 = vld [vmem:[%s3830_s9] sm:$0xff] }
 0x83e   :  { %1483 = vmatpush.msra.mxu2 %v1478_v44  ;;  %v1687_v44 = vld [vmem:[#allocation10 + $0x1f0] sm:$0xff] }
 0x841   :  { %v2419_v46 = vpop.eup %2418 }
 0x842   :  { %v1177_v47 = vmul.f32 %v2419_v46, %v1175_v43  ;;  %vm1183_vm10 = vweird.f32 %v2419_v46  ;;  %v1518_v43 = vld [vmem:[#allocation10 + $0xf0] sm:$0xff] }
 0x843   :  { %vm1184_vm12 = vmor %vm1182_vm11, %vm1183_vm10 }
 0x844   :  { %v1178_v48 = vmul.f32 %v2419_v46, %v1177_v47  ;;  %v1516_v47 = vld [vmem:[#allocation10 + $0xe0] sm:$0xff] }
 0x846   :  { %v1179_v49 = vmul.f32 0.5, %v1178_v48  ;;  %v1476_v48 = vld [vmem:[#allocation10 + $0x58] sm:$0xff] }
 0x848   :  { %v1180_v50 = vsub.f32 1.5, %v1179_v49  ;;  %v1515_v49 = vld [vmem:[#allocation10 + $0xd8] sm:$0xff] }
 0x84a   :  { %v1181_v52 = vmul.f32 %v2419_v46, %v1180_v50  ;;  %v1475_v50 = vld [vmem:[#allocation10 + $0x50] sm:$0xff] }
 0x84c   :  { %v1185_v53 = vsel %vm1184_vm12, %v2419_v46, %v1181_v52  ;;  %v1477_v46 = vld [vmem:[#allocation10 + $0x60] sm:$0xff]  ;;  %v1474_v52 = vld [vmem:[#allocation10 + $0x48] sm:$0xff] }
 0x84d   :  { %v1186_v15 = vmul.f32 %v1185_v53, %v1116_v51  ;;  %1484 = vmatpush.msra.mxu2 %v1477_v46  ;;  %v1513_v53 = vld [vmem:[#allocation10 + $0xc8] sm:$0xff]  ;;  %v1612_v46 = vld [vmem:[#allocation10 + $0x150] sm:$0xff] }
 0x84f   :  { %v1187_v17 = vmul.f32 %v1186_v15, %v1150_v5  ;;  %v1192_v55 = vperm.slane %v1186_v15, 0  ;;  %v1331_v5 = vld [vmem:[#allocation9 + $0x150] sm:$0xff]  ;;  %1485 = vmatpush.msra.mxu2 %v1476_v48  ;;  %v1473_v15 = vld [vmem:[#allocation10 + $0x40] sm:$0xff]  ;;  %v1611_v48 = vld [vmem:[#allocation10 + $0x148] sm:$0xff] }
 0x851   :  { %v1189_v54 = vrot.slane %v1187_v17, 7  ;;  %v1193_v57 = vmul.f32 %v1192_v55, %v3375_v39  ;;  %v1335_v39 = vld [vmem:[#allocation9 + $0x170] sm:$0xff]  ;;  %1486 = vmatpush.msra.mxu2 %v1475_v50  ;;  %v1512_v17 = vld [vmem:[#allocation10 + $0xc0] sm:$0xff]  ;;  %v1511_v55 = vld [vmem:[#allocation10 + $0xb8] sm:$0xff] }
 0x852   :  { %v1610_v50 = vld [vmem:[#allocation10 + $0x140] sm:$0xff] }
 0x853   :  { %v1191_v56 = vsub.f32 %v1116_v51, %v1189_v54  ;;  %v1514_v51 = vld [vmem:[#allocation10 + $0xd0] sm:$0xff]  ;;  %1487 = vmatpush.msra.mxu2 %v1474_v52  ;;  %v1472_v54 = vld [vmem:[#allocation10 + $0x38] sm:$0xff] }
 0x854   :  { %v1502_v52 = vld [vmem:[%s3830_s9 + $0x8] sm:$0xff] }
 0x855   :  { %v1194_v58 = vperm.slane %v1191_v56, 1  ;;  %1488 = vmatpush.msra.mxu2 %v1473_v15  ;;  %v1471_v56 = vld [vmem:[#allocation10 + $0x30] sm:$0xff] }
 0x856   :  { %v1683_v15 = vld [vmem:[#allocation10 + $0x1d0] sm:$0xff] }
 0x857   :  { %v1195_v59 = vadd.f32 %v1194_v58, %v1193_v57  ;;  %1489 = vmatpush.msra.mxu2 %v1472_v54  ;;  %v1510_v57 = vld [vmem:[#allocation10 + $0xb0] sm:$0xff]  ;;  %v1682_v54 = vld [vmem:[#allocation10 + $0x1c8] sm:$0xff] }
 0x859   :  { %v1196_v60 = vmul.f32 0.05, %v1195_v59  ;;  %1490 = vmatpush.msra.mxu2 %v1471_v56  ;;  %v1681_v56 = vld [vmem:[#allocation10 + $0x1c0] sm:$0xff] }
 0x85b   :  { %v1197_v61 = vmax.f32 %v1195_v59, %v1196_v60 }
 0x85d   :  { %1230 = vmatmul.f32.vlgmr.msrb.gmra.mxu1 %v1197_v61  ;;  %1268 = vmatmul.f32.vlgmr.msrb.gmra.mxu2 %v1197_v61 }
 0x8da   :  { %v1231_v36 = vpop.f32.mrf.mxu1 }
 0x8db   :  { %1315 = vmatpush.msra.mxu3 %v1231_v36 }
 0x8dc   :  { %2313 = vmatmul.msk.f32.vlgmr.msra.gmra.mxu3 %vm1006_vm9, %v1234_v62  ;;  %v1509_v62 = vld [vmem:[#allocation10 + $0xa8] sm:$0xff] }
 0x8dd   :  { %1397 = vmatpush.msrb.mxu3 %v3118_v14 }
 0x8df   :  { %1398 = vmatpush.msrb.mxu3 %v3120_v16 }
 0x8e0   :  { %v1269_v0 = vpop.f32.mrf.mxu2 }
 0x8e1   :  { %1292 = vmatpush.msra.mxu0 %v1269_v0  ;;  %1399 = vmatpush.msrb.mxu3 %v3124_v18  ;;  %v1469_v0 = vld [vmem:[#allocation10 + $0x20] sm:$0xff] }
 0x8e2   :  { %2312 = vmatmul.msk.f32.vlgmr.msra.gmra.mxu0 %vm1006_vm9, %v1273_v1  ;;  %v1508_v1 = vld [vmem:[#allocation10 + $0xa0] sm:$0xff] }
 0x8e3   :  { %1337 = vmatpush.msrb.mxu0 %v1336_v63  ;;  %1400 = vmatpush.msrb.mxu3 %v3128_v19 }
 0x8e5   :  { %1338 = vmatpush.msrb.mxu0 %v1335_v39  ;;  %1401 = vmatpush.msrb.mxu3 %v3132_v20 }
 0x8e7   :  { %1339 = vmatpush.msrb.mxu0 %v1334_v2  ;;  %1402 = vmatpush.msrb.mxu3 %v3136_v21  ;;  %v1468_v2 = vld [vmem:[#allocation10 + $0x18] sm:$0xff] }
 0x8e9   :  { %1340 = vmatpush.msrb.mxu0 %v1333_v3  ;;  %1403 = vmatpush.msrb.mxu3 %v3140_v22  ;;  %v1507_v3 = vld [vmem:[#allocation10 + $0x98] sm:$0xff] }
 0x8eb   :  { %1341 = vmatpush.msrb.mxu0 %v1332_v4  ;;  %1404 = vmatpush.msrb.mxu3 %v3144_v23 }
 0x8ed   :  { %1342 = vmatpush.msrb.mxu0 %v1331_v5  ;;  %1405 = vmatpush.msrb.mxu3 %v3154_v27  ;;  %v1467_v5 = vld [vmem:[#allocation10 + $0x10] sm:$0xff] }
 0x8ef   :  { %1343 = vmatpush.msrb.mxu0 %v1330_v6  ;;  %1406 = vmatpush.msrb.mxu3 %v3158_v28  ;;  %v1506_v6 = vld [vmem:[#allocation10 + $0x90] sm:$0xff] }
 0x8f1   :  { %1344 = vmatpush.msrb.mxu0 %v1329_v7  ;;  %1407 = vmatpush.msrb.mxu3 %v3162_v29  ;;  %v1466_v7 = vld [vmem:[#allocation10 + $0x8] sm:$0xff] }
 0x8f3   :  { %1345 = vmatpush.msrb.mxu0 %v1328_v8  ;;  %1408 = vmatpush.msrb.mxu3 %v3166_v30  ;;  %v1505_v8 = vld [vmem:[#allocation10 + $0x88] sm:$0xff] }
 0x8f5   :  { %1346 = vmatpush.msrb.mxu0 %v1327_v9  ;;  %1409 = vmatpush.msrb.mxu3 %v3170_v31 }
 0x8f7   :  { %1347 = vmatpush.msrb.mxu0 %v1326_v10  ;;  %1410 = vmatpush.msrb.mxu3 %v3172_v32  ;;  %v1465_v10 = vld [vmem:[#allocation10] sm:$0xff] }
 0x8f9   :  { %1348 = vmatpush.msrb.mxu0 %v1325_v11  ;;  %1411 = vmatpush.msrb.mxu3 %v3176_v33  ;;  %v1504_v11 = vld [vmem:[#allocation10 + $0x80] sm:$0xff] }
 0x8fb   :  { %1349 = vmatpush.msrb.mxu0 %v1324_v12  ;;  %1412 = vmatpush.msrb.mxu3 %v3180_v34 }
 0x8fd   :  { %1350 = vmatpush.msrb.mxu0 %v1323_v13 }
 0x8ff   :  { %1351 = vmatpush.msrb.mxu0 %v1322_v24 }
 0x901   :  { %1352 = vmatpush.msrb.mxu0 %v1321_v25 }
 0x902   :  { %1353 = vmatmul.f32.vlgmr.msrb.gmra.mxu0 %v1197_v61  ;;  %v1470_v61 = vld [vmem:[#allocation10 + $0x28] sm:$0xff] }
 0x903   :  { %1520 = vmatpush.msra.mxu0 %v1519_v41  ;;  %1491 = vmatpush.msra.mxu2 %v1470_v61  ;;  %v1604_v61 = vld [vmem:[#allocation10 + $0x110] sm:$0xff] }
 0x905   :  { %1521 = vmatpush.msra.mxu0 %v1518_v43  ;;  %1492 = vmatpush.msra.mxu2 %v1469_v0  ;;  %v1613_v43 = vld [vmem:[#allocation10 + $0x158] sm:$0xff]  ;;  %v1602_v0 = vld [vmem:[#allocation10 + $0x100] sm:$0xff] }
 0x907   :  { %1522 = vmatpush.msra.mxu0 %v1517_v45  ;;  %1493 = vmatpush.msra.mxu2 %v1468_v2  ;;  %v2316_v45 = vld [vmem:[%s3830_s9 + $0x18] sm:$0xff] }
 0x908   :  { %v1674_v2 = vld [vmem:[#allocation10 + $0x188] sm:$0xff] }
 0x909   :  { %1523 = vmatpush.msra.mxu0 %v1516_v47  ;;  %1494 = vmatpush.msra.mxu2 %v1467_v5  ;;  %v1686_v47 = vld [vmem:[#allocation10 + $0x1e8] sm:$0xff] }
 0x90b   :  { %1524 = vmatpush.msra.mxu0 %v1515_v49  ;;  %1495 = vmatpush.msra.mxu2 %v1466_v7  ;;  %v1685_v49 = vld [vmem:[#allocation10 + $0x1e0] sm:$0xff] }
 0x90d   :  { %1525 = vmatpush.msra.mxu0 %v1514_v51  ;;  %1496 = vmatpush.msra.mxu2 %v1465_v10  ;;  %v1684_v51 = vld [vmem:[#allocation10 + $0x1d8] sm:$0xff]  ;;  %v2321_v10 = vld [vmem:[%s3830_s9 + $0x20] sm:$0xff] }
 0x90f   :  { %1526 = vmatpush.msra.mxu0 %v1513_v53  ;;  %v1609_v53 = vld [vmem:[#allocation10 + $0x138] sm:$0xff] }
 0x911   :  { %1527 = vmatpush.msra.mxu0 %v1512_v17  ;;  %v1608_v17 = vld [vmem:[#allocation10 + $0x130] sm:$0xff] }
 0x913   :  { %1528 = vmatpush.msra.mxu0 %v1511_v55  ;;  %v1607_v55 = vld [vmem:[#allocation10 + $0x128] sm:$0xff] }
 0x915   :  { %1529 = vmatpush.msra.mxu0 %v1510_v57  ;;  %v1606_v57 = vld [vmem:[#allocation10 + $0x120] sm:$0xff] }
 0x917   :  { %1530 = vmatpush.msra.mxu0 %v1509_v62  ;;  %v1678_v62 = vld [vmem:[#allocation10 + $0x1a8] sm:$0xff] }
 0x919   :  { %1531 = vmatpush.msra.mxu0 %v1508_v1  ;;  %v1676_v1 = vld [vmem:[#allocation10 + $0x198] sm:$0xff] }
 0x91b   :  { %1532 = vmatpush.msra.mxu0 %v1507_v3  ;;  %v1673_v3 = vld [vmem:[#allocation10 + $0x180] sm:$0xff] }
 0x91d   :  { %1533 = vmatpush.msra.mxu0 %v1506_v6 }
 0x91f   :  { %1534 = vmatpush.msra.mxu0 %v1505_v8 }
 0x921   :  { %1535 = vmatpush.msra.mxu0 %v1504_v11  ;;  %v2325_v11 = vld [vmem:[%s3830_s9 + $0x30] sm:$0xff] }
 0x95f   :  { %v1294_v26 = vpop.f32.mrf.mxu0 }
 0x97f   :  { %v1354_v37 = vpop.f32.mrf.mxu0 }
 0x980   :  { %1377 = vmatpush.msra.mxu1 %v1354_v37 }
 0x981   :  { %2314 = vmatmul.msk.f32.vlgmr.msra.gmra.mxu1 %vm1006_vm9, %v1358_v35  ;;  %v1383_v35 = vld [vmem:[%s3839_s18] sm:$0x3] }
 0x982   :  { %1418 = vmatpush.msrb.mxu1 %v3118_v14  ;;  %v1317_v14 = vpop.f32.mrf.mxu3 }
 0x984   :  { %1419 = vmatpush.msrb.mxu1 %v3120_v16  ;;  %v1318_v16 = vadd.f32 %v1317_v14, %v1294_v26 }
 0x986   :  { %1420 = vmatpush.msrb.mxu1 %v3124_v18 }
 0x988   :  { %1421 = vmatpush.msrb.mxu1 %v3128_v19 }
 0x98a   :  { %1422 = vmatpush.msrb.mxu1 %v3132_v20 }
 0x98c   :  { %1423 = vmatpush.msrb.mxu1 %v3136_v21 }
 0x98e   :  { %1424 = vmatpush.msrb.mxu1 %v3140_v22 }
 0x990   :  { %1425 = vmatpush.msrb.mxu1 %v3144_v23 }
 0x992   :  { %1426 = vmatpush.msrb.mxu1 %v3154_v27 }
 0x994   :  { %1427 = vmatpush.msrb.mxu1 %v3158_v28 }
 0x996   :  { %1428 = vmatpush.msrb.mxu1 %v3162_v29 }
 0x998   :  { %1429 = vmatpush.msrb.mxu1 %v3166_v30 }
 0x99a   :  { %1430 = vmatpush.msrb.mxu1 %v3170_v31 }
 0x99c   :  { %1431 = vmatpush.msrb.mxu1 %v3172_v32 }
 0x99e   :  { %1432 = vmatpush.msrb.mxu1 %v3176_v33 }
 0x9a0   :  { %1433 = vmatpush.msrb.mxu1 %v3180_v34 }
 0x9fe   :  { %v1379_v18 = vpop.f32.mrf.mxu1 }
 0x9ff   :  { %v3420_v19 = vadd.f32 %v1379_v18, %v1318_v16 }
 0xa01   :  { %v1384_v20 = vrot.slane %v3420_v19, 4  ;;  %v1390_v21 = vmul.f32 %v3420_v19, %v3420_v19 }
 0xa03   :  { %v1385_v22 = vadd.f32 %v1384_v20, %v3420_v19  ;;  %v1391_v23 = vrot.slane %v1390_v21, 4 }
 0xa05   :  { %v1386_v27 = vrot.slane %v1385_v22, 2  ;;  %v1392_v28 = vadd.f32 %v1391_v23, %v1390_v21 }
 0xa07   :  { %v1387_v29 = vadd.f32 %v1386_v27, %v1385_v22  ;;  %v1393_v30 = vrot.slane %v1392_v28, 2 }
 0xa09   :  { %v1388_v31 = vrot.slane %v1387_v29, 1  ;;  %v1394_v32 = vadd.f32 %v1393_v30, %v1392_v28 }
 0xa0b   :  { %v1389_v33 = vadd.f32 %v1388_v31, %v1387_v29  ;;  %v1395_v34 = vrot.slane %v1394_v32, 1  ;;  %v1617_v31 = vld [vmem:[#allocation10 + $0x178] sm:$0xff] }
 0xa0d   :  { %1413 = vmatmul.f32.vlgmr.msrb.gmra.mxu3 %v1389_v33  ;;  %v1396_v38 = vadd.f32 %v1395_v34, %v1394_v32  ;;  %v2315_v33 = vld [vmem:[%s3830_s9 + $0x10] sm:$0xff]  ;;  %v1616_v34 = vld [vmem:[#allocation10 + $0x170] sm:$0xff] }
 0xa0f   :  { %1434 = vmatmul.f32.vlgmr.msrb.gmra.mxu1 %v1396_v38  ;;  %v1615_v38 = vld [vmem:[#allocation10 + $0x168] sm:$0xff] }
 0xa8c   :  { %v1435_v58 = vpop.f32.mrf.mxu1 }
 0xa8d   :  { %v1438_v36 = vmul.f32 0.03125, %v1435_v58  ;;  %v1680_v58 = vld [vmem:[#allocation10 + $0x1b8] sm:$0xff] }
 0xa90   :  { %v1414_v59 = vpop.f32.mrf.mxu3 }
 0xa91   :  { %v1417_v60 = vmul.f32 0.03125, %v1414_v59  ;;  %v1605_v59 = vld [vmem:[#allocation10 + $0x118] sm:$0xff] }
 0xa93   :  { %v1439_v63 = vmul.f32 %v1417_v60, %v1417_v60 }
 0xa95   :  { %v1440_v39 = vsub.f32 %v1438_v36, %v1439_v63  ;;  %v1603_v36 = vld [vmem:[#allocation10 + $0x108] sm:$0xff]  ;;  %v1677_v63 = vld [vmem:[#allocation10 + $0x1a0] sm:$0xff] }
 0xa97   :  { %v1441_v4 = vmax.f32 %v1440_v39, 0.0  ;;  %v1675_v39 = vld [vmem:[#allocation10 + $0x190] sm:$0xff] }
 0xa99   :  { %v1442_v9 = vadd.f32 1e-05, %v1441_v4 }
 0xa9b   :  { %2420 = vrsqrt.f32 %v1442_v9  ;;  %vm1449_vm14 = vweird.f32 %v1442_v9 }
 0xaa1   :  { %v2421_v12 = vpop.eup %2420 }
 0xaa2   :  { %v1444_v13 = vmul.f32 %v2421_v12, %v1442_v9  ;;  %vm1450_vm13 = vweird.f32 %v2421_v12 }
 0xaa3   :  { %vm1451_vm15 = vmor %vm1449_vm14, %vm1450_vm13 }
 0xaa4   :  { %v1445_v24 = vmul.f32 %v2421_v12, %v1444_v13 }
 0xaa6   :  { %v1446_v25 = vmul.f32 0.5, %v1445_v24  ;;  %v2432_v24 = vld [vmem:[%s3834_s13 + $0x78] sm:$0xff] }
 0xaa8   :  { %v1447_v26 = vsub.f32 1.5, %v1446_v25  ;;  %v2433_v25 = vld [vmem:[%s3834_s13 + $0x70] sm:$0xff] }
 0xaaa   :  { %v1448_v37 = vmul.f32 %v2421_v12, %v1447_v26  ;;  %v2322_v26 = vld [vmem:[%s3830_s9 + $0x28] sm:$0xff] }
 0xaac   :  { %v1452_v14 = vsel %vm1451_vm15, %v2421_v12, %v1448_v37  ;;  %v2434_v37 = vld [vmem:[%s3834_s13 + $0x68] sm:$0xff] }
 0xaad   :  { %v1453_v16 = vmul.f32 %v1452_v14, %v1383_v35  ;;  %v2435_v14 = vld [vmem:[%s3834_s13 + $0x60] sm:$0xff] }
 0xaaf   :  { %v1454_v18 = vmul.f32 %v1453_v16, %v1417_v60  ;;  %v1459_v21 = vperm.slane %v1453_v16, 0  ;;  %v1679_v60 = vld [vmem:[#allocation10 + $0x1b0] sm:$0xff]  ;;  %v2436_v16 = vld [vmem:[%s3834_s13 + $0x58] sm:$0xff] }
 0xab1   :  { %v1456_v20 = vrot.slane %v1454_v18, 7  ;;  %v1460_v23 = vmul.f32 %v1459_v21, %v3420_v19  ;;  %v1614_v19 = vld [vmem:[#allocation10 + $0x160] sm:$0xff]  ;;  %v2439_v21 = vld [vmem:[%s3834_s13 + $0x40] sm:$0xff] }
 0xab2   :  { %v2437_v18 = vld [vmem:[%s3834_s13 + $0x50] sm:$0xff] }
 0xab3   :  { %v1458_v22 = vsub.f32 %v1383_v35, %v1456_v20  ;;  %v2326_v35 = vld [vmem:[%s3830_s9 + $0x38] sm:$0xff]  ;;  %v2438_v20 = vld [vmem:[%s3834_s13 + $0x48] sm:$0xff] }
 0xab5   :  { %v1461_v27 = vperm.slane %v1458_v22, 1  ;;  %v2440_v22 = vld [vmem:[%s3834_s13 + $0x38] sm:$0xff] }
 0xab7   :  { %v1462_v28 = vadd.f32 %v1461_v27, %v1460_v23  ;;  %v2441_v23 = vld [vmem:[%s3834_s13 + $0x30] sm:$0xff]  ;;  %v2442_v27 = vld [vmem:[%s3834_s13 + $0x28] sm:$0xff] }
 0xab9   :  { %v1463_v29 = vmul.f32 0.05, %v1462_v28 }
 0xabb   :  { %v3430_v30 = vmax.f32 %v1462_v28, %v1463_v29  ;;  %v2443_v28 = vld [vmem:[%s3834_s13 + $0x20] sm:$0xff]  ;;  %v2444_v29 = vld [vmem:[%s3834_s13 + $0x18] sm:$0xff] }
 0xabd   :  { %1497 = vmatmul.f32.vlgmr.msra.gmra.mxu2 %v3430_v30  ;;  %1536 = vmatmul.f32.vlgmr.msra.gmra.mxu0 %v3430_v30 }
 0xb3a   :  { %v1537_v32 = vpop.f32.mrf.mxu0 }
 0xb3b   :  { %1564 = vmatpush.msra.mxu3 %v1537_v32  ;;  %v2447_v32 = vld [vmem:[%s3834_s13] sm:$0xff] }
 0xb3c   :  { %2317 = vmatmul.msk.f32.vlgmr.msra.gmra.mxu3 %vm1006_vm9, %v2315_v33 }
 0xb3d   :  { %1618 = vmatpush.msrb.mxu3 %v1617_v31  ;;  %v2446_v31 = vld [vmem:[%s3834_s13 + $0x8] sm:$0xff] }
 0xb3f   :  { %1619 = vmatpush.msrb.mxu3 %v1616_v34 }
 0xb40   :  { %v1498_v41 = vpop.f32.mrf.mxu2 }
 0xb41   :  { %1620 = vmatpush.msrb.mxu3 %v1615_v38  ;;  %1593 = vmatpush.msra.mxu1 %v1498_v41 }
 0xb42   :  { %2319 = vmatmul.msk.f32.vlgmr.msra.gmra.mxu1 %vm1006_vm9, %v1501_v42 }
 0xb43   :  { %1621 = vmatpush.msrb.mxu3 %v1614_v19  ;;  %1689 = vmatpush.msrb.mxu1 %v1688_v40 }
 0xb44   :  { %2318 = vmatmul.msk.f32.gmra.mxu3 %vm1006_vm9, %v2316_v45 }
 0xb45   :  { %1622 = vmatpush.msrb.mxu3 %v1613_v43  ;;  %1690 = vmatpush.msrb.mxu1 %v1687_v44 }
 0xb47   :  { %1623 = vmatpush.msrb.mxu3 %v1612_v46  ;;  %1691 = vmatpush.msrb.mxu1 %v1686_v47 }
 0xb49   :  { %1624 = vmatpush.msrb.mxu3 %v1611_v48  ;;  %1692 = vmatpush.msrb.mxu1 %v1685_v49 }
 0xb4a   :  { %2320 = vmatmul.msk.f32.gmra.mxu1 %vm1006_vm9, %v1502_v52 }
 0xb4b   :  { %1625 = vmatpush.msrb.mxu3 %v1610_v50  ;;  %1693 = vmatpush.msrb.mxu1 %v1684_v51 }
 0xb4d   :  { %1626 = vmatpush.msrb.mxu3 %v1609_v53  ;;  %1694 = vmatpush.msrb.mxu1 %v1683_v15 }
 0xb4f   :  { %1627 = vmatpush.msrb.mxu3 %v1608_v17  ;;  %1695 = vmatpush.msrb.mxu1 %v1682_v54 }
 0xb51   :  { %1628 = vmatpush.msrb.mxu3 %v1607_v55  ;;  %1696 = vmatpush.msrb.mxu1 %v1681_v56 }
 0xb53   :  { %1629 = vmatpush.msrb.mxu3 %v1606_v57  ;;  %1697 = vmatpush.msrb.mxu1 %v1680_v58  ;;  %v1847_v58 = vld [vmem:[%s3833_s12 + $0x78] sm:$0xff] }
 0xb55   :  { %1630 = vmatpush.msrb.mxu3 %v1605_v59  ;;  %1698 = vmatpush.msrb.mxu1 %v1679_v60  ;;  %v2344_v59 = vld [vmem:[%s3833_s12 + $0xf8] sm:$0xff]  ;;  %v1846_v60 = vld [vmem:[%s3833_s12 + $0x70] sm:$0xff] }
 0xb57   :  { %1631 = vmatpush.msrb.mxu3 %v1604_v61  ;;  %1699 = vmatpush.msrb.mxu1 %v1678_v62  ;;  %v2343_v61 = vld [vmem:[%s3833_s12 + $0xf0] sm:$0xff]  ;;  %v1845_v62 = vld [vmem:[%s3833_s12 + $0x68] sm:$0xff] }
 0xb59   :  { %1632 = vmatpush.msrb.mxu3 %v1603_v36  ;;  %1700 = vmatpush.msrb.mxu1 %v1677_v63  ;;  %v2342_v36 = vld [vmem:[%s3833_s12 + $0xe8] sm:$0xff]  ;;  %v1844_v63 = vld [vmem:[%s3833_s12 + $0x60] sm:$0xff] }
 0xb5b   :  { %1633 = vmatpush.msrb.mxu3 %v1602_v0  ;;  %1701 = vmatpush.msrb.mxu1 %v1676_v1  ;;  %v2341_v0 = vld [vmem:[%s3833_s12 + $0xe0] sm:$0xff]  ;;  %v1843_v1 = vld [vmem:[%s3833_s12 + $0x58] sm:$0xff] }
 0xb5c   :  { %1634 = vmatmul.f32.vlgmr.msrb.gmra.mxu3 %v3430_v30 }
 0xb5d   :  { %1702 = vmatpush.msrb.mxu1 %v1675_v39  ;;  %1848 = vmatpush.msra.mxu3 %v1847_v58  ;;  %v2340_v39 = vld [vmem:[%s3833_s12 + $0xd8] sm:$0xff] }
 0xb5f   :  { %1703 = vmatpush.msrb.mxu1 %v1674_v2  ;;  %1849 = vmatpush.msra.mxu3 %v1846_v60  ;;  %v1842_v2 = vld [vmem:[%s3833_s12 + $0x50] sm:$0xff]  ;;  %v2372_v60 = vld [vmem:[%s3833_s12 + $0x178] sm:$0xff] }
 0xb61   :  { %1704 = vmatpush.msrb.mxu1 %v1673_v3  ;;  %1850 = vmatpush.msra.mxu3 %v1845_v62  ;;  %v2339_v3 = vld [vmem:[%s3833_s12 + $0xd0] sm:$0xff] }
 0xb62   :  { %1705 = vmatmul.f32.vlgmr.msrb.gmra.mxu1 %v3430_v30  ;;  %v2445_v30 = vld [vmem:[%s3834_s13 + $0x10] sm:$0xff] }
 0xb63   :  { %1892 = vmatpush.msra.mxu1 %v2344_v59  ;;  %1851 = vmatpush.msra.mxu3 %v1844_v63  ;;  %v1871_v63 = vld [vmem:[%s3832_s11] sm:$0xff] }
 0xb65   :  { %1893 = vmatpush.msra.mxu1 %v2343_v61  ;;  %1852 = vmatpush.msra.mxu3 %v1843_v1  ;;  %v2371_v61 = vld [vmem:[%s3833_s12 + $0x170] sm:$0xff]  ;;  %v2396_v1 = vld [vmem:[%s3833_s12 + $0x1f8] sm:$0xff] }
 0xb67   :  { %1894 = vmatpush.msra.mxu1 %v2342_v36  ;;  %1853 = vmatpush.msra.mxu3 %v1842_v2  ;;  %v2370_v36 = vld [vmem:[%s3833_s12 + $0x168] sm:$0xff]  ;;  %v2368_v2 = vld [vmem:[%s3833_s12 + $0x158] sm:$0xff] }
 0xb69   :  { %1895 = vmatpush.msra.mxu1 %v2341_v0  ;;  %v2369_v0 = vld [vmem:[%s3833_s12 + $0x160] sm:$0xff] }
 0xb6b   :  { %1896 = vmatpush.msra.mxu1 %v2340_v39  ;;  %v2346_v39 = vld [vmem:[%s3832_s11 + $0x28] sm:$0xff] }
 0xb6d   :  { %1897 = vmatpush.msra.mxu1 %v2339_v3  ;;  %v2395_v3 = vld [vmem:[%s3833_s12 + $0x1f0] sm:$0xff] }
 0xbbf   :  { %v1566_v4 = vpop.f32.mrf.mxu3  ;;  %v1595_v5 = vpop.f32.mrf.mxu1 }
 0xbc0   :  { %v3452_v6 = vadd.f32 %v1595_v5, %v1566_v4  ;;  %v1841_v4 = vld [vmem:[%s3833_s12 + $0x48] sm:$0xff] }
 0xbc1   :  { %v2338_v5 = vld [vmem:[%s3833_s12 + $0xc8] sm:$0xff]  ;;  %1854 = vmatpush.msra.mxu3 %v1841_v4  ;;  %v2367_v4 = vld [vmem:[%s3833_s12 + $0x150] sm:$0xff] }
 0xbc2   :  { %1898 = vmatpush.msra.mxu1 %v2338_v5  ;;  %v2394_v5 = vld [vmem:[%s3833_s12 + $0x1e8] sm:$0xff] }
 0xbc7   :  { %v1569_v7 = vpop.f32.mrf.mxu3  ;;  %v1598_v8 = vpop.f32.mrf.mxu1 }
 0xbc8   :  { %v3454_v9 = vadd.f32 %v1598_v8, %v1569_v7  ;;  %v2337_v7 = vld [vmem:[%s3833_s12 + $0xc0] sm:$0xff]  ;;  %v1839_v8 = vld [vmem:[%s3833_s12 + $0x38] sm:$0xff] }
 0xbc9   :  { %1899 = vmatpush.msra.mxu1 %v2337_v7  ;;  %v2393_v7 = vld [vmem:[%s3833_s12 + $0x1e0] sm:$0xff] }
 0xbdf   :  { %v1635_v12 = vpop.f32.mrf.mxu3  ;;  %v1706_v13 = vpop.f32.mrf.mxu1 }
 0xbe0   :  { %1662 = vmatpush.msrb.mxu2 %v1635_v12  ;;  %1733 = vmatpush.msrb.mxu0 %v1706_v13 }
 0xbe1   :  { %2323 = vmatmul.msk.f32.vlgmr.msrb.gmra.mxu2 %vm1006_vm9, %v2321_v10  ;;  %2327 = vmatmul.msk.f32.vlgmr.msrb.gmra.mxu0 %vm1006_vm9, %v2325_v11  ;;  %v1838_v10 = vld [vmem:[%s3833_s12 + $0x30] sm:$0xff] }
 0xbe2   :  { %1760 = vmatpush.msra.mxu2 %v2432_v24  ;;  %1781 = vmatpush.msra.mxu0 %v2432_v24  ;;  %v2335_v11 = vld [vmem:[%s3833_s12 + $0xb0] sm:$0xff] }
 0xbe4   :  { %1761 = vmatpush.msra.mxu2 %v2433_v25  ;;  %1782 = vmatpush.msra.mxu0 %v2433_v25  ;;  %v1837_v25 = vld [vmem:[%s3833_s12 + $0x28] sm:$0xff] }
 0xbe6   :  { %1762 = vmatpush.msra.mxu2 %v2434_v37  ;;  %1783 = vmatpush.msra.mxu0 %v2434_v37 }
 0xbe8   :  { %1763 = vmatpush.msra.mxu2 %v2435_v14  ;;  %1784 = vmatpush.msra.mxu0 %v2435_v14  ;;  %v1836_v14 = vld [vmem:[%s3833_s12 + $0x20] sm:$0xff] }
 0xbe9   :  { %2324 = vmatmul.msk.f32.gmra.mxu2 %vm1006_vm9, %v2322_v26  ;;  %2328 = vmatmul.msk.f32.gmra.mxu0 %vm1006_vm9, %v2326_v35  ;;  %v2334_v26 = vld [vmem:[%s3833_s12 + $0xa8] sm:$0xff] }
 0xbea   :  { %1764 = vmatpush.msra.mxu2 %v2436_v16  ;;  %1785 = vmatpush.msra.mxu0 %v2436_v16  ;;  %v2333_v16 = vld [vmem:[%s3833_s12 + $0xa0] sm:$0xff] }
 0xbec   :  { %1765 = vmatpush.msra.mxu2 %v2437_v18  ;;  %1786 = vmatpush.msra.mxu0 %v2437_v18 }
 0xbee   :  { %1766 = vmatpush.msra.mxu2 %v2438_v20  ;;  %1787 = vmatpush.msra.mxu0 %v2438_v20  ;;  %v1835_v20 = vld [vmem:[%s3833_s12 + $0x18] sm:$0xff] }
 0xbf0   :  { %1767 = vmatpush.msra.mxu2 %v2439_v21  ;;  %1788 = vmatpush.msra.mxu0 %v2439_v21  ;;  %v2332_v21 = vld [vmem:[%s3833_s12 + $0x98] sm:$0xff] }
 0xbf2   :  { %1768 = vmatpush.msra.mxu2 %v2440_v22  ;;  %1789 = vmatpush.msra.mxu0 %v2440_v22 }
 0xbf4   :  { %1769 = vmatpush.msra.mxu2 %v2441_v23  ;;  %1790 = vmatpush.msra.mxu0 %v2441_v23  ;;  %v1834_v23 = vld [vmem:[%s3833_s12 + $0x10] sm:$0xff] }
 0xbf6   :  { %1770 = vmatpush.msra.mxu2 %v2442_v27  ;;  %1791 = vmatpush.msra.mxu0 %v2442_v27  ;;  %v2331_v27 = vld [vmem:[%s3833_s12 + $0x90] sm:$0xff] }
 0xbf8   :  { %1771 = vmatpush.msra.mxu2 %v2443_v28  ;;  %1792 = vmatpush.msra.mxu0 %v2443_v28  ;;  %v1833_v28 = vld [vmem:[%s3833_s12 + $0x8] sm:$0xff] }
 0xbfa   :  { %1772 = vmatpush.msra.mxu2 %v2444_v29  ;;  %1793 = vmatpush.msra.mxu0 %v2444_v29  ;;  %v2330_v29 = vld [vmem:[%s3833_s12 + $0x88] sm:$0xff] }
 0xbfc   :  { %1773 = vmatpush.msra.mxu2 %v2445_v30  ;;  %1794 = vmatpush.msra.mxu0 %v2445_v30 }
 0xbfe   :  { %1774 = vmatpush.msra.mxu2 %v2446_v31  ;;  %1795 = vmatpush.msra.mxu0 %v2446_v31  ;;  %v1832_v31 = vld [vmem:[%s3833_s12] sm:$0xff] }
 0xc00   :  { %1775 = vmatpush.msra.mxu2 %v2447_v32  ;;  %1796 = vmatpush.msra.mxu0 %v2447_v32  ;;  %v2329_v32 = vld [vmem:[%s3833_s12 + $0x80] sm:$0xff] }
 0xc5e   :  { %v1735_v33 = vpop.f32.mrf.mxu0 }
 0xc64   :  { %v1664_v34 = vpop.f32.mrf.mxu2 }
 0xc65   :  { %v1670_v38 = vadd.f32 %v1664_v34, %v3452_v6  ;;  %v1840_v6 = vld [vmem:[%s3833_s12 + $0x40] sm:$0xff] }
 0xc66   :  { %v1738_v40 = vpop.f32.mrf.mxu0  ;;  %1855 = vmatpush.msra.mxu3 %v1840_v6  ;;  %v2366_v6 = vld [vmem:[%s3833_s12 + $0x148] sm:$0xff] }
 0xc67   :  { %v3521_v41 = vadd.f32 %v1735_v33, %v1670_v38 }
 0xc68   :  { %1856 = vmatpush.msra.mxu3 %v1839_v8  ;;  %v1872_v8 = vld [vmem:[%s3832_s11 + $0x8] sm:$0xff] }
 0xc69   :  { %v1751_v44 = vmul.f32 %v3521_v41, %v3521_v41 }
 0xc6a   :  { %1857 = vmatpush.msra.mxu3 %v1838_v10  ;;  %v2392_v10 = vld [vmem:[%s3833_s12 + $0x1d8] sm:$0xff] }
 0xc6c   :  { %v1667_v19 = vpop.f32.mrf.mxu2  ;;  %1858 = vmatpush.msra.mxu3 %v1837_v25  ;;  %v2390_v25 = vld [vmem:[%s3833_s12 + $0x1c8] sm:$0xff] }
 0xc6d   :  { %v1671_v42 = vadd.f32 %v1667_v19, %v3454_v9  ;;  %v2336_v9 = vld [vmem:[%s3833_s12 + $0xb8] sm:$0xff] }
 0xc6e   :  { %1900 = vmatpush.msra.mxu1 %v2336_v9  ;;  %1859 = vmatpush.msra.mxu3 %v1836_v14  ;;  %v2365_v9 = vld [vmem:[%s3833_s12 + $0x140] sm:$0xff] }
 0xc6f   :  { %v3524_v43 = vadd.f32 %v1738_v40, %v1671_v42  ;;  %v1743_v42 = vld [vmem:[%s3840_s19] sm:$0x3] }
 0xc70   :  { %1901 = vmatpush.msra.mxu1 %v2335_v11  ;;  %1860 = vmatpush.msra.mxu3 %v1835_v20  ;;  %v2347_v11 = vld [vmem:[%s3832_s11 + $0x30] sm:$0xff]  ;;  %v2361_v14 = vld [vmem:[%s3833_s12 + $0x120] sm:$0xff]  ;;  %v2360_v20 = vld [vmem:[%s3833_s12 + $0x118] sm:$0xff] }
 0xc71   :  { %v1744_v45 = vadd.f32 %v3524_v43, %v3521_v41  ;;  %v1752_v46 = vmul.f32 %v3524_v43, %v3524_v43 }
 0xc72   :  { %1902 = vmatpush.msra.mxu1 %v2334_v26  ;;  %1861 = vmatpush.msra.mxu3 %v1834_v23  ;;  %v2362_v26 = vld [vmem:[%s3833_s12 + $0x128] sm:$0xff] }
 0xc73   :  { %v1745_v47 = vrot.slane %v1744_v45, 4  ;;  %v1753_v48 = vadd.f32 %v1752_v46, %v1751_v44  ;;  %v2386_v23 = vld [vmem:[%s3833_s12 + $0x1a8] sm:$0xff] }
 0xc74   :  { %1903 = vmatpush.msra.mxu1 %v2333_v16  ;;  %1862 = vmatpush.msra.mxu3 %v1833_v28  ;;  %v2388_v16 = vld [vmem:[%s3833_s12 + $0x1b8] sm:$0xff]  ;;  %v2385_v28 = vld [vmem:[%s3833_s12 + $0x1a0] sm:$0xff] }
 0xc75   :  { %v1746_v49 = vadd.f32 %v1745_v47, %v1744_v45  ;;  %v1754_v50 = vrot.slane %v1753_v48, 4 }
 0xc76   :  { %1904 = vmatpush.msra.mxu1 %v2332_v21  ;;  %1863 = vmatpush.msra.mxu3 %v1832_v31  ;;  %v2387_v21 = vld [vmem:[%s3833_s12 + $0x1b0] sm:$0xff]  ;;  %v2384_v31 = vld [vmem:[%s3833_s12 + $0x198] sm:$0xff] }
 0xc77   :  { %v1747_v51 = vrot.slane %v1746_v49, 2  ;;  %v1755_v52 = vadd.f32 %v1754_v50, %v1753_v48 }
 0xc78   :  { %1905 = vmatpush.msra.mxu1 %v2331_v27  ;;  %v2358_v27 = vld [vmem:[%s3833_s12 + $0x108] sm:$0xff] }
 0xc79   :  { %v1748_v53 = vadd.f32 %v1747_v51, %v1746_v49  ;;  %v1756_v15 = vrot.slane %v1755_v52, 2 }
 0xc7a   :  { %1906 = vmatpush.msra.mxu1 %v2330_v29  ;;  %v1874_v29 = vld [vmem:[%s3832_s11 + $0x18] sm:$0xff] }
 0xc7b   :  { %v1749_v17 = vrot.slane %v1748_v53, 1  ;;  %v1757_v54 = vadd.f32 %v1756_v15, %v1755_v52 }
 0xc7c   :  { %1907 = vmatpush.msra.mxu1 %v2329_v32  ;;  %v2383_v32 = vld [vmem:[%s3833_s12 + $0x190] sm:$0xff] }
 0xc7d   :  { %v1750_v55 = vadd.f32 %v1749_v17, %v1748_v53  ;;  %v1758_v56 = vrot.slane %v1757_v54, 1 }
 0xc7f   :  { %1776 = vmatmul.f32.vlgmr.msra.gmra.mxu2 %v1750_v55  ;;  %v1759_v57 = vadd.f32 %v1758_v56, %v1757_v54 }
 0xc81   :  { %1797 = vmatmul.f32.vlgmr.msra.gmra.mxu0 %v1759_v57 }
 0xcfe   :  { %v1798_v12 = vpop.f32.mrf.mxu0 }
 0xcff   :  { %v1801_v35 = vmul.f32 0.0078125, %v1798_v12  ;;  %v2364_v12 = vld [vmem:[%s3833_s12 + $0x138] sm:$0xff] }
 0xd02   :  { %v1777_v13 = vpop.f32.mrf.mxu2 }
 0xd03   :  { %v1780_v24 = vmul.f32 0.0078125, %v1777_v13  ;;  %v2391_v13 = vld [vmem:[%s3833_s12 + $0x1d0] sm:$0xff] }
 0xd05   :  { %v1802_v37 = vmul.f32 %v1780_v24, %v1780_v24 }
 0xd07   :  { %v1803_v18 = vsub.f32 %v1801_v35, %v1802_v37  ;;  %v2389_v35 = vld [vmem:[%s3833_s12 + $0x1c0] sm:$0xff]  ;;  %v1873_v37 = vld [vmem:[%s3832_s11 + $0x10] sm:$0xff] }
 0xd09   :  { %v1804_v22 = vmax.f32 %v1803_v18, 0.0  ;;  %v2348_v18 = vld [vmem:[%s3832_s11 + $0x38] sm:$0xff] }
 0xd0b   :  { %v1805_v30 = vadd.f32 1e-05, %v1804_v22  ;;  %v2359_v22 = vld [vmem:[%s3833_s12 + $0x110] sm:$0xff] }
 0xd0d   :  { %2422 = vrsqrt.f32 %v1805_v30  ;;  %vm1812_vm2 = vweird.f32 %v1805_v30 }
 0xd13   :  { %v2423_v33 = vpop.eup %2422 }
 0xd14   :  { %v1807_v34 = vmul.f32 %v2423_v33, %v1805_v30  ;;  %vm1813_vm1 = vweird.f32 %v2423_v33  ;;  %v2357_v30 = vld [vmem:[%s3833_s12 + $0x100] sm:$0xff] }
 0xd15   :  { %vm1814_vm3 = vmor %vm1812_vm2, %vm1813_vm1 }
 0xd16   :  { %v1808_v38 = vmul.f32 %v2423_v33, %v1807_v34  ;;  %v2381_v34 = vld [vmem:[%s3833_s12 + $0x180] sm:$0xff] }
 0xd18   :  { %v1809_v19 = vmul.f32 0.5, %v1808_v38 }
 0xd1a   :  { %v1810_v40 = vsub.f32 1.5, %v1809_v19 }
 0xd1c   :  { %v1811_v44 = vmul.f32 %v2423_v33, %v1810_v40 }
 0xd1e   :  { %v1815_v45 = vsel %vm1814_vm3, %v2423_v33, %v1811_v44  ;;  %v2382_v33 = vld [vmem:[%s3833_s12 + $0x188] sm:$0xff] }
 0xd1f   :  { %v1816_v46 = vmul.f32 %v1815_v45, %v1743_v42 }
 0xd21   :  { %v1817_v47 = vmul.f32 %v1816_v46, %v1780_v24  ;;  %v1822_v49 = vperm.slane %v1816_v46, 0  ;;  %v2363_v24 = vld [vmem:[%s3833_s12 + $0x130] sm:$0xff] }
 0xd23   :  { %v1819_v48 = vrot.slane %v1817_v47, 7  ;;  %v1823_v51 = vmul.f32 %v1822_v49, %v3521_v41  ;;  %v1824_v15 = vmul.f32 %v1822_v49, %v3524_v43  ;;  %v2345_v43 = vld [vmem:[%s3832_s11 + $0x20] sm:$0xff] }
 0xd25   :  { %v1821_v50 = vsub.f32 %v1743_v42, %v1819_v48 }
 0xd27   :  { %v1825_v52 = vperm.slane %v1821_v50, 1 }
 0xd29   :  { %v1826_v53 = vadd.f32 %v1825_v52, %v1823_v51  ;;  %v1827_v54 = vadd.f32 %v1825_v52, %v1824_v15 }
 0xd2b   :  { %v1828_v17 = vmul.f32 0.05, %v1826_v53  ;;  %v1829_v56 = vmul.f32 0.05, %v1827_v54 }
 0xd2d   :  { %v3633_v55 = vmax.f32 %v1826_v53, %v1828_v17  ;;  %v3637_v57 = vmax.f32 %v1827_v54, %v1829_v56  ;;  %v2373_v54 = vld [vmem:[%s3832_s11 + $0x40] sm:$0xff]  ;;  %v2374_v56 = vld [vmem:[%s3832_s11 + $0x48] sm:$0xff] }
 0xd2f   :  { %1864 = vmatmul.f32.vlgmr.msra.gmra.mxu3 %v3633_v55  ;;  %1908 = vmatmul.f32.vlgmr.msra.gmra.mxu1 %v3633_v55 }
 0xd37   :  { %1867 = vmatmul.f32.gmra.mxu3 %v3637_v57  ;;  %1911 = vmatmul.f32.gmra.mxu1 %v3637_v57 }
 0xdac   :  { %v1909_v41 = vpop.f32.mrf.mxu1 }
 0xdb2   :  { %v1865_v58 = vpop.f32.mrf.mxu3 }
 0xdb4   :  { %v1912_v59 = vpop.f32.mrf.mxu1 }
 0xdb5   :  { %1946 = vmatpush.msrb.mxu2 %v1912_v59  ;;  %v2376_v59 = vld [vmem:[%s3832_s11 + $0x58] sm:$0xff] }
 0xdb7   :  { %1947 = vmatpush.msrb.mxu2 %v1909_v41  ;;  %v2375_v41 = vld [vmem:[%s3832_s11 + $0x50] sm:$0xff] }
 0xdb8   :  { %2349 = vmatmul.msk.f32.vlgmr.msrb.gmra.mxu2 %vm653_vm5, %v2345_v43  ;;  %v2400_v43 = vld [vmem:[%s3832_s11 + $0x78] sm:$0xff] }
 0xdb9   :  { %2019 = vmatpush.msra.mxu2 %v2372_v60 }
 0xdba   :  { %v1868_v62 = vpop.f32.mrf.mxu3 }
 0xdbb   :  { %1987 = vmatpush.msrb.mxu0 %v1868_v62  ;;  %2020 = vmatpush.msra.mxu2 %v2371_v61 }
 0xdbd   :  { %1988 = vmatpush.msrb.mxu0 %v1865_v58  ;;  %2021 = vmatpush.msra.mxu2 %v2370_v36  ;;  %v2399_v58 = vld [vmem:[%s3832_s11 + $0x70] sm:$0xff] }
 0xdbe   :  { %2353 = vmatmul.msk.f32.vlgmr.msrb.gmra.mxu0 %vm653_vm5, %v1871_v63 }
 0xdbf   :  { %2022 = vmatpush.msra.mxu2 %v2369_v0  ;;  %2109 = vmatpush.msra.mxu0 %v2396_v1 }
 0xdc0   :  { %2350 = vmatmul.msk.f32.gmra.mxu2 %vm653_vm5, %v2346_v39 }
 0xdc1   :  { %2023 = vmatpush.msra.mxu2 %v2368_v2  ;;  %2110 = vmatpush.msra.mxu0 %v2395_v3 }
 0xdc3   :  { %2024 = vmatpush.msra.mxu2 %v2367_v4  ;;  %2111 = vmatpush.msra.mxu0 %v2394_v5 }
 0xdc5   :  { %2025 = vmatpush.msra.mxu2 %v2366_v6  ;;  %2112 = vmatpush.msra.mxu0 %v2393_v7 }
 0xdc6   :  { %2354 = vmatmul.msk.f32.gmra.mxu0 %vm653_vm5, %v1872_v8 }
 0xdc7   :  { %2026 = vmatpush.msra.mxu2 %v2365_v9  ;;  %2113 = vmatpush.msra.mxu0 %v2392_v10 }
 0xdc8   :  { %2351 = vmatmul.msk.f32.gmra.mxu2 %vm653_vm5, %v2347_v11 }
 0xdc9   :  { %2027 = vmatpush.msra.mxu2 %v2364_v12  ;;  %2114 = vmatpush.msra.mxu0 %v2391_v13 }
 0xdcb   :  { %2028 = vmatpush.msra.mxu2 %v2363_v24  ;;  %2115 = vmatpush.msra.mxu0 %v2390_v25 }
 0xdcd   :  { %2029 = vmatpush.msra.mxu2 %v2362_v26  ;;  %2116 = vmatpush.msra.mxu0 %v2389_v35 }
 0xdce   :  { %2355 = vmatmul.msk.f32.gmra.mxu0 %vm653_vm5, %v1873_v37 }
 0xdcf   :  { %2030 = vmatpush.msra.mxu2 %v2361_v14  ;;  %2117 = vmatpush.msra.mxu0 %v2388_v16 }
 0xdd0   :  { %2352 = vmatmul.msk.f32.gmra.mxu2 %vm653_vm5, %v2348_v18 }
 0xdd1   :  { %2031 = vmatpush.msra.mxu2 %v2360_v20  ;;  %2118 = vmatpush.msra.mxu0 %v2387_v21 }
 0xdd3   :  { %2032 = vmatpush.msra.mxu2 %v2359_v22  ;;  %2119 = vmatpush.msra.mxu0 %v2386_v23 }
 0xdd5   :  { %2033 = vmatpush.msra.mxu2 %v2358_v27  ;;  %2120 = vmatpush.msra.mxu0 %v2385_v28 }
 0xdd6   :  { %2356 = vmatmul.msk.f32.gmra.mxu0 %vm653_vm5, %v1874_v29 }
 0xdd7   :  { %2034 = vmatpush.msra.mxu2 %v2357_v30  ;;  %2121 = vmatpush.msra.mxu0 %v2384_v31 }
 0xdd8   :  { %2035 = vmatmul.f32.vlgmr.msra.gmra.mxu2 %v3633_v55 }
 0xdd9   :  { %2122 = vmatpush.msra.mxu0 %v2383_v32 }
 0xddb   :  { %2123 = vmatpush.msra.mxu0 %v2382_v33 }
 0xddd   :  { %2124 = vmatpush.msra.mxu0 %v2381_v34 }
 0xdde   :  { %2125 = vmatmul.f32.vlgmr.msra.gmra.mxu0 %v3633_v55  ;;  %v2397_v55 = vld [vmem:[%s3832_s11 + $0x60] sm:$0xff] }
 0xde0   :  { %2038 = vmatmul.f32.gmra.mxu2 %v3637_v57 }
 0xde6   :  { %2128 = vmatmul.f32.gmra.mxu0 %v3637_v57  ;;  %v2398_v57 = vld [vmem:[%s3832_s11 + $0x68] sm:$0xff] }
 0xe3b   :  { %v1949_v38 = vpop.f32.mrf.mxu2  ;;  %v1990_v19 = vpop.f32.mrf.mxu0 }
 0xe3c   :  { %v1991_v40 = vadd.f32 %v1990_v19, %v1949_v38 }
 0xe43   :  { %v1952_v42 = vpop.f32.mrf.mxu2  ;;  %v1993_v44 = vpop.f32.mrf.mxu0 }
 0xe44   :  { %v1994_v45 = vadd.f32 %v1993_v44, %v1952_v42 }
 0xe4b   :  { %v1955_v46 = vpop.f32.mrf.mxu2  ;;  %v1996_v47 = vpop.f32.mrf.mxu0 }
 0xe4c   :  { %v1997_v48 = vadd.f32 %v1996_v47, %v1955_v46 }
 0xe53   :  { %v1958_v49 = vpop.f32.mrf.mxu2  ;;  %v1999_v50 = vpop.f32.mrf.mxu0 }
 0xe54   :  { %v2000_v51 = vadd.f32 %v1999_v50, %v1958_v49 }
 0xe5b   :  { %v2036_v52 = vpop.f32.mrf.mxu2  ;;  %v2126_v53 = vpop.f32.mrf.mxu0 }
 0xe63   :  { %v2039_v15 = vpop.f32.mrf.mxu2  ;;  %v2129_v17 = vpop.f32.mrf.mxu0 }
 0xe64   :  { %2073 = vmatpush.msrb.mxu3 %v2039_v15  ;;  %2163 = vmatpush.msrb.mxu1 %v2129_v17 }
 0xe66   :  { %2074 = vmatpush.msrb.mxu3 %v2036_v52  ;;  %2164 = vmatpush.msrb.mxu1 %v2126_v53 }
 0xe67   :  { %2377 = vmatmul.msk.f32.vlgmr.msrb.gmra.mxu3 %vm653_vm5, %v2373_v54  ;;  %2401 = vmatmul.msk.f32.vlgmr.msrb.gmra.mxu1 %vm653_vm5, %v2397_v55 }
 0xe6f   :  { %2378 = vmatmul.msk.f32.gmra.mxu3 %vm653_vm5, %v2374_v56  ;;  %2402 = vmatmul.msk.f32.gmra.mxu1 %vm653_vm5, %v2398_v57 }
 0xe77   :  { %2379 = vmatmul.msk.f32.gmra.mxu3 %vm653_vm5, %v2375_v41  ;;  %2403 = vmatmul.msk.f32.gmra.mxu1 %vm653_vm5, %v2399_v58 }
 0xe7f   :  { %2380 = vmatmul.msk.f32.gmra.mxu3 %vm653_vm5, %v2376_v59  ;;  %2404 = vmatmul.msk.f32.gmra.mxu1 %vm653_vm5, %v2400_v43 }
 0xee4   :  { %v2166_v60 = vpop.f32.mrf.mxu1 }
 0xeea   :  { %v2076_v61 = vpop.f32.mrf.mxu3 }
 0xeeb   :  { %v2088_v62 = vadd.f32 %v2076_v61, %v1991_v40 }
 0xeec   :  { %v2169_v63 = vpop.f32.mrf.mxu1 }
 0xeed   :  { %v2178_v36 = vadd.f32 %v2166_v60, %v2088_v62 }
 0xeef   :  { %2424 = vtanh.f32 %v2178_v36 }
 0xef2   :  { %v2079_v0 = vpop.f32.mrf.mxu3 }
 0xef3   :  { %v2089_v1 = vadd.f32 %v2079_v0, %v1994_v45 }
 0xef4   :  { %v2172_v3 = vpop.f32.mrf.mxu1 }
 0xef5   :  { %v2425_v39 = vpop.eup %2424  ;;  %v2179_v2 = vadd.f32 %v2169_v63, %v2089_v1 }
 0xef6   :  { %2186 = vst.msk [vmem:[%s3841_s20] sm:$0xff] %vm184_vm0, %v2425_v39 }
 0xef7   :  { %2426 = vtanh.f32 %v2179_v2 }
 0xefa   :  { %v2082_v4 = vpop.f32.mrf.mxu3 }
 0xefb   :  { %v2090_v5 = vadd.f32 %v2082_v4, %v1997_v48 }
 0xefc   :  { %v2175_v9 = vpop.f32.mrf.mxu1 }
 0xefd   :  { %v2427_v6 = vpop.eup %2426  ;;  %v2180_v7 = vadd.f32 %v2172_v3, %v2090_v5 }
 0xefe   :  { %2187 = vst.msk [vmem:[%s3841_s20 + $0x8] sm:$0xff] %vm184_vm0, %v2427_v6 }
 0xeff   :  { %2428 = vtanh.f32 %v2180_v7 }
 0xf02   :  { %v2085_v8 = vpop.f32.mrf.mxu3 }
 0xf03   :  { %v2091_v10 = vadd.f32 %v2085_v8, %v2000_v51 }
 0xf05   :  { %v2429_v11 = vpop.eup %2428  ;;  %v2181_v12 = vadd.f32 %v2175_v9, %v2091_v10 }
 0xf06   :  { %2188 = vst.msk [vmem:[%s3841_s20 + $0x10] sm:$0xff] %vm184_vm0, %v2429_v11 }
 0xf07   :  { %2430 = vtanh.f32 %v2181_v12 }
 0xf0d   :  { %v2431_v13 = vpop.eup %2430 }
 0xf0e   :  { %2189 = vst.msk [vmem:[%s3841_s20 + $0x18] sm:$0xff] %vm184_vm0, %v2431_v13 }
 0xf0f   :  { %2194 = vsyncpa [#allocation3], 1 }
 0xf10   :  { %2195 = vsyncpa [#allocation5], 1 }
 0xf11   :  { %2196 = vsyncpa [#allocation8], 1 }
 0xf12   :  { %2197 = vsyncpa [#allocation11], 1 }

</bundles_post_ra>
